<compile_context>
chip_gen: v5e
topology: v5e:2x2
jax: 0.10.0
libtpu: 0.0.40
codegen_flags: <defaults>
</compile_context>

<pallas_src>
import functools

import jax
import jax.numpy as jnp
from jax import lax
from jax.experimental import pallas as pl
from jax.experimental.pallas import tpu as pltpu


def _round_up(x, m):
    return (x + m - 1) // m * m


def _tpu_generation():
    """Best-effort TPU generation detection (None if unknown)."""
    try:
        kind = jax.devices()[0].device_kind.lower()
    except Exception:
        return None
    for gen in (7, 6, 5, 4):
        if f"v{gen}" in kind:
            return gen
    return None


def _pick_batch_block(b_pad8, gen):
    if gen == 7:
        if b_pad8 >= 512:
            return 256                      # fill the 256-row MXU, halve serial passes
        if b_pad8 > 128:
            return 128
        if b_pad8 >= 16:
            # split the lone batch block in two so both v7x TensorCores get work
            return _round_up((b_pad8 + 1) // 2, 8)
        return b_pad8
    if gen == 6 and b_pad8 >= 256:
        return 256
    return min(b_pad8, 128)


def _sigmoid(x):
    # One EUP tanh per activation instead of exp + reciprocal.
    return 0.5 * (jnp.tanh(0.5 * x) + 1.0)


def lstm_head_kernel(x_ref, wih_ref, whh_ref, b_ref, wfc_ref, bfc_ref,
                     out_ref, xw_scr, h_scr, c_scr,
                     *, seq_len, t_chunk, b_blk):
    """One grid step == one (batch block, time chunk). h/c state persists in VMEM."""
    tc = pl.program_id(1)                  # time-chunk index (innermost, "arbitrary")
    h_dim = h_scr.shape[-1]                # padded hidden size (multiple of 128)
    ragged = (seq_len % t_chunk) != 0      # static Python bool

    @pl.when(tc == 0)
    def _():
        h_scr[...] = jnp.zeros_like(h_scr)
        c_scr[...] = jnp.zeros_like(c_scr)

    # ---- batched (non-recurrent) input projection for the whole chunk ----
    # x_ref: (t_chunk*b_blk, D), rows ordered t-major / b-minor.  Bias folded in here.
    xw = (jnp.dot(x_ref[...], wih_ref[...], preferred_element_type=jnp.float32)
          + b_ref[...])
    xw_scr[...] = xw.astype(xw_scr.dtype)  # (t_chunk*b_blk, 4*H_pad)

    chunk_start = tc * t_chunk

    def step(t, carry):
        h, c = carry                                     # f32 (b_blk, H_pad), carried
        row = pl.multiple_of(t * b_blk, 8)               # sublane-aligned slice start
        gx = xw_scr[pl.ds(row, b_blk), :].astype(jnp.float32)
        gates = gx + jnp.dot(h.astype(whh_ref.dtype), whh_ref[...],
                             preferred_element_type=jnp.float32)

        i_g = _sigmoid(gates[:, 0 * h_dim:1 * h_dim])
        f_g = _sigmoid(gates[:, 1 * h_dim:2 * h_dim])
        g_g = jnp.tanh(gates[:, 2 * h_dim:3 * h_dim])
        o_g = _sigmoid(gates[:, 3 * h_dim:4 * h_dim])

        c_new = f_g * c + i_g * g_g
        h_new = o_g * jnp.tanh(c_new)
        if ragged:
            # Predicated tail: keep the static unrolled loop, freeze state on padded
            # timesteps (must skip the state update, not just a store).
            valid = (chunk_start + t) < seq_len
            h_new = jnp.where(valid, h_new, h)
            c_new = jnp.where(valid, c_new, c)
        return (h_new, c_new)

    h_t, c_t = lax.fori_loop(0, t_chunk, step, (h_scr[...], c_scr[...]),
                             unroll=min(int(t_chunk), 8))
    # Write state back once per chunk (not per timestep).
    h_scr[...] = h_t
    c_scr[...] = c_t

    # Classifier on the final hidden state (lane-dense padded output).
    @pl.when(tc == pl.num_programs(1) - 1)
    def _():
        out_ref[...] = (
            jnp.dot(h_t.astype(wfc_ref.dtype), wfc_ref[...],
                    preferred_element_type=jnp.float32)
            + bfc_ref[...]
        )


def lstm_head(x_btd, w_ih, w_hh, b_ih, b_hh, w_fc, b_fc,
              *, t_chunk=None, compute_dtype=jnp.bfloat16):
    """x_btd: (B, T, in_dim) float32 (PyTorch batch_first). Returns (B, num_classes) f32.

    Weights use PyTorch LSTM conventions: w_ih (4H, D), w_hh (4H, H), gate order
    [i, f, g, o]; w_fc (C, H).
    """
    B, T, D = x_btd.shape
    H = w_hh.shape[1]
    C = w_fc.shape[0]
    if T < 1:
        raise ValueError("sequence length must be >= 1")

    gen = _tpu_generation()

    # ---- generation-aware blocked / padded sizes ----
    if t_chunk is None:
        t_chunk = 8 if gen == 7 else 16      # v7x: 64 MiB VMEM -> smaller chunk scratch
    t_chunk = max(1, min(int(t_chunk), T))
    n_chunks = pl.cdiv(T, t_chunk)
    T_pad = n_chunks * t_chunk

    B_pad8 = _round_up(B, 8)
    B_blk = _pick_batch_block(B_pad8, gen)
    B_pad = _round_up(B_pad8, B_blk)
    nb = B_pad // B_blk
    H_pad = _round_up(H, 128)                # lane-aligned gate slices
    C_pad = _round_up(C, 128)                # lane-dense output store

    # ---- one-time weight prep (pad per-gate to H_pad, pre-transpose, bf16 cast) ----
    def pad_gate_rows(w):                    # (4H, X) -> (4*H_pad, X)
        x_cols = w.shape[1]
        w = w.reshape(4, H, x_cols)
        w = jnp.pad(w, ((0, 0), (0, H_pad - H), (0, 0)))
        return w.reshape(4 * H_pad, x_cols)

    wih_p = pad_gate_rows(w_ih.astype(jnp.float32))                   # (4H_pad, D)
    whh_p = pad_gate_rows(w_hh.astype(jnp.float32))                   # (4H_pad, H)
    whh_p = jnp.pad(whh_p, ((0, 0), (0, H_pad - H)))                  # (4H_pad, H_pad)
    b_all = (b_ih + b_hh).astype(jnp.float32).reshape(4, H)
    b_all = jnp.pad(b_all, ((0, 0), (0, H_pad - H))).reshape(1, 4 * H_pad)
    wfc_p = jnp.pad(w_fc.astype(jnp.float32),
                    ((0, C_pad - C), (0, H_pad - H)))                 # (C_pad, H_pad)
    bfc_p = jnp.pad(b_fc.astype(jnp.float32), (0, C_pad - C)).reshape(1, C_pad)

    wih_t = wih_p.T.astype(compute_dtype)    # (D,     4*H_pad)
    whh_t = whh_p.T.astype(compute_dtype)    # (H_pad, 4*H_pad)
    wfc_t = wfc_p.T.astype(compute_dtype)    # (H_pad, C_pad)

    # ---- one-time x relayout: cast to bf16 FIRST so pad/transpose move half the
    #      bytes, then (nb, T_pad*B_blk, D) t-major / b-minor within each block. ----
    x_c = x_btd.astype(compute_dtype)
    x_p = jnp.pad(x_c, ((0, B_pad - B), (0, T_pad - T), (0, 0)))      # (B_pad,T_pad,D)
    x_p = x_p.reshape(nb, B_blk, T_pad, D)
    x_p = jnp.transpose(x_p, (0, 2, 1, 3))                            # (nb,T_pad,B_blk,D)
    x_km = x_p.reshape(nb, T_pad * B_blk, D)

    # ---- chunk-projection scratch dtype: bf16 when the f32 footprint is large ----
    cdt = jnp.dtype(compute_dtype)
    xw_f32_bytes = t_chunk * B_blk * 4 * H_pad * 4
    xw_dtype = compute_dtype if (cdt != jnp.dtype(jnp.float32)
                                 and xw_f32_bytes > (4 << 20)) else jnp.float32

    # ---- explicit VMEM budget (weights single-buffered, x double-buffered) ----
    footprint = (
        2 * t_chunk * B_blk * D * cdt.itemsize            # x block (double-buffered)
        + D * 4 * H_pad * cdt.itemsize                    # W_ih^T
        + H_pad * 4 * H_pad * cdt.itemsize                # W_hh^T
        + 4 * H_pad * 4                                   # bias (f32)
        + H_pad * C_pad * cdt.itemsize                    # W_fc^T
        + C_pad * 4                                       # b_fc
        + 2 * B_blk * C_pad * 4                           # out block
        + t_chunk * B_blk * 4 * H_pad * jnp.dtype(xw_dtype).itemsize  # xw scratch
        + 2 * B_blk * H_pad * 4                           # h, c scratch
    )
    vmem_cap = (60 << 20) if gen == 7 else (120 << 20)
    vmem_limit = int(min(max(int(footprint * 1.5) + (2 << 20), 24 << 20), vmem_cap))

    kernel = functools.partial(lstm_head_kernel,
                               seq_len=T, t_chunk=t_chunk, b_blk=B_blk)

    def build(single_buffer_weights):
        const_kw = {"pipeline_mode": pl.Buffered(1)} if single_buffer_weights else {}

        def const_spec(shape):
            return pl.BlockSpec(shape, lambda b, tc: (0, 0), **const_kw)

        return pl.pallas_call(
            kernel,
            out_shape=jax.ShapeDtypeStruct((B_pad, C_pad), jnp.float32),
            grid_spec=pltpu.PrefetchScalarGridSpec(
                num_scalar_prefetch=0,
                grid=(nb, n_chunks),
                in_specs=[
                    # x chunk: (t_chunk*B_blk, D), leading batch-block dim squeezed out.
                    pl.BlockSpec((None, t_chunk * B_blk, D), lambda b, tc: (b, tc, 0)),
                    const_spec((D, 4 * H_pad)),          # W_ih^T  (single-buffered)
                    const_spec((H_pad, 4 * H_pad)),      # W_hh^T
                    const_spec((1, 4 * H_pad)),          # b_ih + b_hh
                    const_spec((H_pad, C_pad)),          # W_fc^T
                    const_spec((1, C_pad)),              # b_fc
                ],
                out_specs=pl.BlockSpec((B_blk, C_pad), lambda b, tc: (b, 0)),
                scratch_shapes=[
                    pltpu.VMEM((t_chunk * B_blk, 4 * H_pad), xw_dtype),  # x@Wih + b
                    pltpu.VMEM((B_blk, H_pad), jnp.float32),             # h state
                    pltpu.VMEM((B_blk, H_pad), jnp.float32),             # c state
                ],
            ),
            compiler_params=pltpu.CompilerParams(
                # batch blocks independent (-> 2 TCs on v7x); time recurrence sequential.
                dimension_semantics=("parallel", "arbitrary"),
                vmem_limit_bytes=vmem_limit,
            ),
        )

    args = (x_km, wih_t, whh_t, b_all, wfc_t, bfc_p)
    try:
        out = jax.block_until_ready(build(True)(*args))
    except Exception:
        # Fallback if single-buffered (Buffered(1)) constant specs are rejected.
        out = jax.block_until_ready(build(False)(*args))

    return out[:B, :C]


def lstm_head_ref(x_btd, w_ih, w_hh, b_ih, b_hh, w_fc, b_fc):
    """Pure-JAX f32 reference matching torch.nn.LSTM(batch_first=True) + Linear."""
    B, T, D = x_btd.shape
    H = w_hh.shape[1]

    def step(carry, x_t):
        h, c = carry
        gates = x_t @ w_ih.T + h @ w_hh.T + b_ih + b_hh
        i = jax.nn.sigmoid(gates[:, 0 * H:1 * H])
        f = jax.nn.sigmoid(gates[:, 1 * H:2 * H])
        g = jnp.tanh(gates[:, 2 * H:3 * H])
        o = jax.nn.sigmoid(gates[:, 3 * H:4 * H])
        c_new = f * c + i * g
        h_new = o * jnp.tanh(c_new)
        return (h_new, c_new), None

    h0 = jnp.zeros((B, H), jnp.float32)
    c0 = jnp.zeros((B, H), jnp.float32)
    (h_T, _), _ = lax.scan(step, (h0, c0), jnp.transpose(x_btd, (1, 0, 2)))
    return h_T @ w_fc.T + b_fc


if __name__ == "__main__":
    # Shapes consistent with LSTMHead(in_dim=16, hid_dim=32, num_classes=2) on a
    # (B=2, T=8, 16) input.  H/C/B deliberately NOT multiples of the vreg tiling.
    B, T, D = 2, 8, 16
    H, C = 32, 2

    key = jax.random.PRNGKey(0)
    keys = jax.random.split(key, 7)
    scale = 0.1
    x    = jax.random.normal(keys[0], (B, T, D), dtype=jnp.float32)
    w_ih = jax.random.uniform(keys[1], (4 * H, D), jnp.float32, -scale, scale)
    w_hh = jax.random.uniform(keys[2], (4 * H, H), jnp.float32, -scale, scale)
    b_ih = jax.random.uniform(keys[3], (4 * H,), jnp.float32, -scale, scale)
    b_hh = jax.random.uniform(keys[4], (4 * H,), jnp.float32, -scale, scale)
    w_fc = jax.random.uniform(keys[5], (C, H), jnp.float32, -scale, scale)
    b_fc = jax.random.uniform(keys[6], (C,), jnp.float32, -scale, scale)

    out = lstm_head(x, w_ih, w_hh, b_ih, b_hh, w_fc, b_fc)
    out = jax.block_until_ready(out)
    ref = jax.block_until_ready(lstm_head_ref(x, w_ih, w_hh, b_ih, b_hh, w_fc, b_fc))
    assert out.shape == (B, C), out.shape
    # bf16 matmul operands (f32 state/accumulation) -> bf16-appropriate tolerance.
    assert jnp.allclose(out, ref, atol=1e-2, rtol=1e-2), (out, ref)

    # Ragged-tail check: T not a multiple of t_chunk exercises the predicated path.
    x2 = jax.random.normal(keys[0], (3, 10, D), dtype=jnp.float32)
    out2 = jax.block_until_ready(
        lstm_head(x2, w_ih, w_hh, b_ih, b_hh, w_fc, b_fc, t_chunk=4))
    ref2 = jax.block_until_ready(lstm_head_ref(x2, w_ih, w_hh, b_ih, b_hh, w_fc, b_fc))
    assert out2.shape == (3, C), out2.shape
    assert jnp.allclose(out2, ref2, atol=1e-2, rtol=1e-2), (out2, ref2)

    print("KERNEL_OK")
</pallas_src>

<mosaic_0001>
module attributes {stable_mosaic.version = 11 : i64} {
  func.func @lstm_head_kernel(%arg0: i32, %arg1: i32, %arg2: memref<1x64x16xbf16, #tpu.memory_space<vmem>>, %arg3: memref<16x512xbf16, #tpu.memory_space<vmem>>, %arg4: memref<128x512xbf16, #tpu.memory_space<vmem>>, %arg5: memref<1x512xf32, #tpu.memory_space<vmem>>, %arg6: memref<128x128xbf16, #tpu.memory_space<vmem>>, %arg7: memref<1x128xf32, #tpu.memory_space<vmem>>, %arg8: memref<8x128xf32, #tpu.memory_space<vmem>>, %arg9: memref<64x512xf32, #tpu.memory_space<vmem>>, %arg10: memref<8x128xf32, #tpu.memory_space<vmem>>, %arg11: memref<8x128xf32, #tpu.memory_space<vmem>>) attributes {dimension_semantics = [#tpu.dimension_semantics<parallel>, #tpu.dimension_semantics<arbitrary>], iteration_bounds = array<i64: 1, 1>, scalar_prefetch = 0 : i64, scratch_operands = 3 : i64, tpu.core_type = #tpu.core_type<tc>, window_params = [{transform_indices = @transform_0, window_bounds = array<i64: 1, 64, 16>}, {pipeline_mode = #tpu.pipeline_mode<synchronous>, transform_indices = @transform_1, window_bounds = array<i64: 16, 512>}, {pipeline_mode = #tpu.pipeline_mode<synchronous>, transform_indices = @transform_2, window_bounds = array<i64: 128, 512>}, {pipeline_mode = #tpu.pipeline_mode<synchronous>, transform_indices = @transform_3, window_bounds = array<i64: 1, 512>}, {pipeline_mode = #tpu.pipeline_mode<synchronous>, transform_indices = @transform_4, window_bounds = array<i64: 128, 128>}, {pipeline_mode = #tpu.pipeline_mode<synchronous>, transform_indices = @transform_5, window_bounds = array<i64: 1, 128>}, {transform_indices = @transform_6, window_bounds = array<i64: 8, 128>}]} {
    %c0_i32 = arith.constant 0 : i32
    %0 = arith.cmpi eq, %arg1, %c0_i32 : i32
    %1 = arith.extui %0 : i1 to i32
    %c0_i32_0 = arith.constant 0 : i32
    %2 = arith.cmpi ne, %1, %c0_i32_0 : i32
    scf.if %2 {
      %cst_132 = arith.constant 0.000000e+00 : f32
      %330 = vector.broadcast %cst_132 : f32 to vector<8x128xf32>
      %c0_133 = arith.constant 0 : index
      %c0_134 = arith.constant 0 : index
      %331 = vector.load %arg10[%c0_133, %c0_134] : memref<8x128xf32, #tpu.memory_space<vmem>>, vector<8x128xf32>
      tpu.vector_store %arg10[%c0_133, %c0_134], %330 {strides = array<i32>} : memref<8x128xf32, #tpu.memory_space<vmem>>, vector<8x128xf32>,
      %cst_135 = arith.constant 0.000000e+00 : f32
      %332 = vector.broadcast %cst_135 : f32 to vector<8x128xf32>
      %c0_136 = arith.constant 0 : index
      %c0_137 = arith.constant 0 : index
      %333 = vector.load %arg11[%c0_136, %c0_137] : memref<8x128xf32, #tpu.memory_space<vmem>>, vector<8x128xf32>
      tpu.vector_store %arg11[%c0_136, %c0_137], %332 {strides = array<i32>} : memref<8x128xf32, #tpu.memory_space<vmem>>, vector<8x128xf32>,
    } else {
    }
    %c0 = arith.constant 0 : index
    %c0_1 = arith.constant 0 : index
    %c0_2 = arith.constant 0 : index
    %3 = vector.load %arg2[%c0, %c0_1, %c0_2] : memref<1x64x16xbf16, #tpu.memory_space<vmem>>, vector<1x64x16xbf16>
    %4 = vector.shape_cast %3 : vector<1x64x16xbf16> to vector<64x16xbf16>
    %c0_3 = arith.constant 0 : index
    %c0_4 = arith.constant 0 : index
    %5 = vector.load %arg3[%c0_3, %c0_4] : memref<16x512xbf16, #tpu.memory_space<vmem>>, vector<16x512xbf16>
    %cst = arith.constant dense<0.000000e+00> : vector<64x512xf32>
    %6 = tpu.matmul %4, %5, %cst {dimension_numbers = #tpu.dot_dimension_numbers<[1], [0], [0], [1], [0, 0, 1, 1], [], []>} : vector<64x16xbf16>, vector<16x512xbf16>, vector<64x512xf32> -> vector<64x512xf32>
    %c0_5 = arith.constant 0 : index
    %c0_6 = arith.constant 0 : index
    %7 = vector.load %arg5[%c0_5, %c0_6] : memref<1x512xf32, #tpu.memory_space<vmem>>, vector<1x512xf32>
    %8 = vector.broadcast %7 : vector<1x512xf32> to vector<64x512xf32>
    %9 = arith.addf %6, %8 : vector<64x512xf32>
    %c0_7 = arith.constant 0 : index
    %c0_8 = arith.constant 0 : index
    %10 = vector.load %arg9[%c0_7, %c0_8] : memref<64x512xf32, #tpu.memory_space<vmem>>, vector<64x512xf32>
    tpu.vector_store %arg9[%c0_7, %c0_8], %9 {strides = array<i32>} : memref<64x512xf32, #tpu.memory_space<vmem>>, vector<64x512xf32>,
    %c0_9 = arith.constant 0 : index
    %c0_10 = arith.constant 0 : index
    %11 = vector.load %arg10[%c0_9, %c0_10] : memref<8x128xf32, #tpu.memory_space<vmem>>, vector<8x128xf32>
    %c0_11 = arith.constant 0 : index
    %c0_12 = arith.constant 0 : index
    %12 = vector.load %arg11[%c0_11, %c0_12] : memref<8x128xf32, #tpu.memory_space<vmem>>, vector<8x128xf32>
    %c0_i32_13 = arith.constant 0 : i32
    %c8_i32 = arith.constant 8 : i32
    %13 = arith.muli %c0_i32_13, %c8_i32 : i32
    %14 = tpu.assume_multiple %13, 8 : i32
    %15 = arith.index_cast %14 : i32 to index
    %c0_14 = arith.constant 0 : index
    %16 = vector.load %arg9[%15, %c0_14] : memref<64x512xf32, #tpu.memory_space<vmem>>, vector<8x512xf32>
    %17 = arith.truncf %11 : vector<8x128xf32> to vector<8x128xbf16>
    %c0_15 = arith.constant 0 : index
    %c0_16 = arith.constant 0 : index
    %18 = vector.load %arg4[%c0_15, %c0_16] : memref<128x512xbf16, #tpu.memory_space<vmem>>, vector<128x512xbf16>
    %cst_17 = arith.constant dense<0.000000e+00> : vector<8x512xf32>
    %19 = tpu.matmul %17, %18, %cst_17 {dimension_numbers = #tpu.dot_dimension_numbers<[1], [0], [0], [1], [0, 0, 1, 1], [], []>} : vector<8x128xbf16>, vector<128x512xbf16>, vector<8x512xf32> -> vector<8x512xf32>
    %20 = arith.addf %16, %19 : vector<8x512xf32>
    %21 = vector.extract_strided_slice %20 {offsets = [0, 0], sizes = [8, 128], strides = [1, 1]} : vector<8x512xf32> to vector<8x128xf32>
    %cst_18 = arith.constant 5.000000e-01 : f32
    %22 = vector.broadcast %cst_18 : f32 to vector<8x128xf32>
    %23 = arith.mulf %22, %21 : vector<8x128xf32>
    %24 = math.tanh %23 : vector<8x128xf32>
    %cst_19 = arith.constant 1.000000e+00 : f32
    %25 = vector.broadcast %cst_19 : f32 to vector<8x128xf32>
    %26 = arith.addf %24, %25 : vector<8x128xf32>
    %cst_20 = arith.constant 5.000000e-01 : f32
    %27 = vector.broadcast %cst_20 : f32 to vector<8x128xf32>
    %28 = arith.mulf %27, %26 : vector<8x128xf32>
    %29 = vector.extract_strided_slice %20 {offsets = [0, 128], sizes = [8, 128], strides = [1, 1]} : vector<8x512xf32> to vector<8x128xf32>
    %cst_21 = arith.constant 5.000000e-01 : f32
    %30 = vector.broadcast %cst_21 : f32 to vector<8x128xf32>
    %31 = arith.mulf %30, %29 : vector<8x128xf32>
    %32 = math.tanh %31 : vector<8x128xf32>
    %cst_22 = arith.constant 1.000000e+00 : f32
    %33 = vector.broadcast %cst_22 : f32 to vector<8x128xf32>
    %34 = arith.addf %32, %33 : vector<8x128xf32>
    %cst_23 = arith.constant 5.000000e-01 : f32
    %35 = vector.broadcast %cst_23 : f32 to vector<8x128xf32>
    %36 = arith.mulf %35, %34 : vector<8x128xf32>
    %37 = vector.extract_strided_slice %20 {offsets = [0, 256], sizes = [8, 128], strides = [1, 1]} : vector<8x512xf32> to vector<8x128xf32>
    %38 = math.tanh %37 : vector<8x128xf32>
    %39 = vector.extract_strided_slice %20 {offsets = [0, 384], sizes = [8, 128], strides = [1, 1]} : vector<8x512xf32> to vector<8x128xf32>
    %cst_24 = arith.constant 5.000000e-01 : f32
    %40 = vector.broadcast %cst_24 : f32 to vector<8x128xf32>
    %41 = arith.mulf %40, %39 : vector<8x128xf32>
    %42 = math.tanh %41 : vector<8x128xf32>
    %cst_25 = arith.constant 1.000000e+00 : f32
    %43 = vector.broadcast %cst_25 : f32 to vector<8x128xf32>
    %44 = arith.addf %42, %43 : vector<8x128xf32>
    %cst_26 = arith.constant 5.000000e-01 : f32
    %45 = vector.broadcast %cst_26 : f32 to vector<8x128xf32>
    %46 = arith.mulf %45, %44 : vector<8x128xf32>
    %47 = arith.mulf %36, %12 : vector<8x128xf32>
    %48 = arith.mulf %28, %38 : vector<8x128xf32>
    %49 = arith.addf %47, %48 : vector<8x128xf32>
    %50 = math.tanh %49 : vector<8x128xf32>
    %51 = arith.mulf %46, %50 : vector<8x128xf32>
    %c1_i32 = arith.constant 1 : i32
    %c8_i32_27 = arith.constant 8 : i32
    %52 = arith.muli %c1_i32, %c8_i32_27 : i32
    %53 = tpu.assume_multiple %52, 8 : i32
    %54 = arith.index_cast %53 : i32 to index
    %c0_28 = arith.constant 0 : index
    %55 = vector.load %arg9[%54, %c0_28] : memref<64x512xf32, #tpu.memory_space<vmem>>, vector<8x512xf32>
    %56 = arith.truncf %51 : vector<8x128xf32> to vector<8x128xbf16>
    %c0_29 = arith.constant 0 : index
    %c0_30 = arith.constant 0 : index
    %57 = vector.load %arg4[%c0_29, %c0_30] : memref<128x512xbf16, #tpu.memory_space<vmem>>, vector<128x512xbf16>
    %cst_31 = arith.constant dense<0.000000e+00> : vector<8x512xf32>
    %58 = tpu.matmul %56, %57, %cst_31 {dimension_numbers = #tpu.dot_dimension_numbers<[1], [0], [0], [1], [0, 0, 1, 1], [], []>} : vector<8x128xbf16>, vector<128x512xbf16>, vector<8x512xf32> -> vector<8x512xf32>
    %59 = arith.addf %55, %58 : vector<8x512xf32>
    %60 = vector.extract_strided_slice %59 {offsets = [0, 0], sizes = [8, 128], strides = [1, 1]} : vector<8x512xf32> to vector<8x128xf32>
    %cst_32 = arith.constant 5.000000e-01 : f32
    %61 = vector.broadcast %cst_32 : f32 to vector<8x128xf32>
    %62 = arith.mulf %61, %60 : vector<8x128xf32>
    %63 = math.tanh %62 : vector<8x128xf32>
    %cst_33 = arith.constant 1.000000e+00 : f32
    %64 = vector.broadcast %cst_33 : f32 to vector<8x128xf32>
    %65 = arith.addf %63, %64 : vector<8x128xf32>
    %cst_34 = arith.constant 5.000000e-01 : f32
    %66 = vector.broadcast %cst_34 : f32 to vector<8x128xf32>
    %67 = arith.mulf %66, %65 : vector<8x128xf32>
    %68 = vector.extract_strided_slice %59 {offsets = [0, 128], sizes = [8, 128], strides = [1, 1]} : vector<8x512xf32> to vector<8x128xf32>
    %cst_35 = arith.constant 5.000000e-01 : f32
    %69 = vector.broadcast %cst_35 : f32 to vector<8x128xf32>
    %70 = arith.mulf %69, %68 : vector<8x128xf32>
    %71 = math.tanh %70 : vector<8x128xf32>
    %cst_36 = arith.constant 1.000000e+00 : f32
    %72 = vector.broadcast %cst_36 : f32 to vector<8x128xf32>
    %73 = arith.addf %71, %72 : vector<8x128xf32>
    %cst_37 = arith.constant 5.000000e-01 : f32
    %74 = vector.broadcast %cst_37 : f32 to vector<8x128xf32>
    %75 = arith.mulf %74, %73 : vector<8x128xf32>
    %76 = vector.extract_strided_slice %59 {offsets = [0, 256], sizes = [8, 128], strides = [1, 1]} : vector<8x512xf32> to vector<8x128xf32>
    %77 = math.tanh %76 : vector<8x128xf32>
    %78 = vector.extract_strided_slice %59 {offsets = [0, 384], sizes = [8, 128], strides = [1, 1]} : vector<8x512xf32> to vector<8x128xf32>
    %cst_38 = arith.constant 5.000000e-01 : f32
    %79 = vector.broadcast %cst_38 : f32 to vector<8x128xf32>
    %80 = arith.mulf %79, %78 : vector<8x128xf32>
    %81 = math.tanh %80 : vector<8x128xf32>
    %cst_39 = arith.constant 1.000000e+00 : f32
    %82 = vector.broadcast %cst_39 : f32 to vector<8x128xf32>
    %83 = arith.addf %81, %82 : vector<8x128xf32>
    %cst_40 = arith.constant 5.000000e-01 : f32
    %84 = vector.broadcast %cst_40 : f32 to vector<8x128xf32>
    %85 = arith.mulf %84, %83 : vector<8x128xf32>
    %86 = arith.mulf %75, %49 : vector<8x128xf32>
    %87 = arith.mulf %67, %77 : vector<8x128xf32>
    %88 = arith.addf %86, %87 : vector<8x128xf32>
    %89 = math.tanh %88 : vector<8x128xf32>
    %90 = arith.mulf %85, %89 : vector<8x128xf32>
    %c2_i32 = arith.constant 2 : i32
    %c8_i32_41 = arith.constant 8 : i32
    %91 = arith.muli %c2_i32, %c8_i32_41 : i32
    %92 = tpu.assume_multiple %91, 8 : i32
    %93 = arith.index_cast %92 : i32 to index
    %c0_42 = arith.constant 0 : index
    %94 = vector.load %arg9[%93, %c0_42] : memref<64x512xf32, #tpu.memory_space<vmem>>, vector<8x512xf32>
    %95 = arith.truncf %90 : vector<8x128xf32> to vector<8x128xbf16>
    %c0_43 = arith.constant 0 : index
    %c0_44 = arith.constant 0 : index
    %96 = vector.load %arg4[%c0_43, %c0_44] : memref<128x512xbf16, #tpu.memory_space<vmem>>, vector<128x512xbf16>
    %cst_45 = arith.constant dense<0.000000e+00> : vector<8x512xf32>
    %97 = tpu.matmul %95, %96, %cst_45 {dimension_numbers = #tpu.dot_dimension_numbers<[1], [0], [0], [1], [0, 0, 1, 1], [], []>} : vector<8x128xbf16>, vector<128x512xbf16>, vector<8x512xf32> -> vector<8x512xf32>
    %98 = arith.addf %94, %97 : vector<8x512xf32>
    %99 = vector.extract_strided_slice %98 {offsets = [0, 0], sizes = [8, 128], strides = [1, 1]} : vector<8x512xf32> to vector<8x128xf32>
    %cst_46 = arith.constant 5.000000e-01 : f32
    %100 = vector.broadcast %cst_46 : f32 to vector<8x128xf32>
    %101 = arith.mulf %100, %99 : vector<8x128xf32>
    %102 = math.tanh %101 : vector<8x128xf32>
    %cst_47 = arith.constant 1.000000e+00 : f32
    %103 = vector.broadcast %cst_47 : f32 to vector<8x128xf32>
    %104 = arith.addf %102, %103 : vector<8x128xf32>
    %cst_48 = arith.constant 5.000000e-01 : f32
    %105 = vector.broadcast %cst_48 : f32 to vector<8x128xf32>
    %106 = arith.mulf %105, %104 : vector<8x128xf32>
    %107 = vector.extract_strided_slice %98 {offsets = [0, 128], sizes = [8, 128], strides = [1, 1]} : vector<8x512xf32> to vector<8x128xf32>
    %cst_49 = arith.constant 5.000000e-01 : f32
    %108 = vector.broadcast %cst_49 : f32 to vector<8x128xf32>
    %109 = arith.mulf %108, %107 : vector<8x128xf32>
    %110 = math.tanh %109 : vector<8x128xf32>
    %cst_50 = arith.constant 1.000000e+00 : f32
    %111 = vector.broadcast %cst_50 : f32 to vector<8x128xf32>
    %112 = arith.addf %110, %111 : vector<8x128xf32>
    %cst_51 = arith.constant 5.000000e-01 : f32
    %113 = vector.broadcast %cst_51 : f32 to vector<8x128xf32>
    %114 = arith.mulf %113, %112 : vector<8x128xf32>
    %115 = vector.extract_strided_slice %98 {offsets = [0, 256], sizes = [8, 128], strides = [1, 1]} : vector<8x512xf32> to vector<8x128xf32>
    %116 = math.tanh %115 : vector<8x128xf32>
    %117 = vector.extract_strided_slice %98 {offsets = [0, 384], sizes = [8, 128], strides = [1, 1]} : vector<8x512xf32> to vector<8x128xf32>
    %cst_52 = arith.constant 5.000000e-01 : f32
    %118 = vector.broadcast %cst_52 : f32 to vector<8x128xf32>
    %119 = arith.mulf %118, %117 : vector<8x128xf32>
    %120 = math.tanh %119 : vector<8x128xf32>
    %cst_53 = arith.constant 1.000000e+00 : f32
    %121 = vector.broadcast %cst_53 : f32 to vector<8x128xf32>
    %122 = arith.addf %120, %121 : vector<8x128xf32>
    %cst_54 = arith.constant 5.000000e-01 : f32
    %123 = vector.broadcast %cst_54 : f32 to vector<8x128xf32>
    %124 = arith.mulf %123, %122 : vector<8x128xf32>
    %125 = arith.mulf %114, %88 : vector<8x128xf32>
    %126 = arith.mulf %106, %116 : vector<8x128xf32>
    %127 = arith.addf %125, %126 : vector<8x128xf32>
    %128 = math.tanh %127 : vector<8x128xf32>
    %129 = arith.mulf %124, %128 : vector<8x128xf32>
    %c3_i32 = arith.constant 3 : i32
    %c8_i32_55 = arith.constant 8 : i32
    %130 = arith.muli %c3_i32, %c8_i32_55 : i32
    %131 = tpu.assume_multiple %130, 8 : i32
    %132 = arith.index_cast %131 : i32 to index
    %c0_56 = arith.constant 0 : index
    %133 = vector.load %arg9[%132, %c0_56] : memref<64x512xf32, #tpu.memory_space<vmem>>, vector<8x512xf32>
    %134 = arith.truncf %129 : vector<8x128xf32> to vector<8x128xbf16>
    %c0_57 = arith.constant 0 : index
    %c0_58 = arith.constant 0 : index
    %135 = vector.load %arg4[%c0_57, %c0_58] : memref<128x512xbf16, #tpu.memory_space<vmem>>, vector<128x512xbf16>
    %cst_59 = arith.constant dense<0.000000e+00> : vector<8x512xf32>
    %136 = tpu.matmul %134, %135, %cst_59 {dimension_numbers = #tpu.dot_dimension_numbers<[1], [0], [0], [1], [0, 0, 1, 1], [], []>} : vector<8x128xbf16>, vector<128x512xbf16>, vector<8x512xf32> -> vector<8x512xf32>
    %137 = arith.addf %133, %136 : vector<8x512xf32>
    %138 = vector.extract_strided_slice %137 {offsets = [0, 0], sizes = [8, 128], strides = [1, 1]} : vector<8x512xf32> to vector<8x128xf32>
    %cst_60 = arith.constant 5.000000e-01 : f32
    %139 = vector.broadcast %cst_60 : f32 to vector<8x128xf32>
    %140 = arith.mulf %139, %138 : vector<8x128xf32>
    %141 = math.tanh %140 : vector<8x128xf32>
    %cst_61 = arith.constant 1.000000e+00 : f32
    %142 = vector.broadcast %cst_61 : f32 to vector<8x128xf32>
    %143 = arith.addf %141, %142 : vector<8x128xf32>
    %cst_62 = arith.constant 5.000000e-01 : f32
    %144 = vector.broadcast %cst_62 : f32 to vector<8x128xf32>
    %145 = arith.mulf %144, %143 : vector<8x128xf32>
    %146 = vector.extract_strided_slice %137 {offsets = [0, 128], sizes = [8, 128], strides = [1, 1]} : vector<8x512xf32> to vector<8x128xf32>
    %cst_63 = arith.constant 5.000000e-01 : f32
    %147 = vector.broadcast %cst_63 : f32 to vector<8x128xf32>
    %148 = arith.mulf %147, %146 : vector<8x128xf32>
    %149 = math.tanh %148 : vector<8x128xf32>
    %cst_64 = arith.constant 1.000000e+00 : f32
    %150 = vector.broadcast %cst_64 : f32 to vector<8x128xf32>
    %151 = arith.addf %149, %150 : vector<8x128xf32>
    %cst_65 = arith.constant 5.000000e-01 : f32
    %152 = vector.broadcast %cst_65 : f32 to vector<8x128xf32>
    %153 = arith.mulf %152, %151 : vector<8x128xf32>
    %154 = vector.extract_strided_slice %137 {offsets = [0, 256], sizes = [8, 128], strides = [1, 1]} : vector<8x512xf32> to vector<8x128xf32>
    %155 = math.tanh %154 : vector<8x128xf32>
    %156 = vector.extract_strided_slice %137 {offsets = [0, 384], sizes = [8, 128], strides = [1, 1]} : vector<8x512xf32> to vector<8x128xf32>
    %cst_66 = arith.constant 5.000000e-01 : f32
    %157 = vector.broadcast %cst_66 : f32 to vector<8x128xf32>
    %158 = arith.mulf %157, %156 : vector<8x128xf32>
    %159 = math.tanh %158 : vector<8x128xf32>
    %cst_67 = arith.constant 1.000000e+00 : f32
    %160 = vector.broadcast %cst_67 : f32 to vector<8x128xf32>
    %161 = arith.addf %159, %160 : vector<8x128xf32>
    %cst_68 = arith.constant 5.000000e-01 : f32
    %162 = vector.broadcast %cst_68 : f32 to vector<8x128xf32>
    %163 = arith.mulf %162, %161 : vector<8x128xf32>
    %164 = arith.mulf %153, %127 : vector<8x128xf32>
    %165 = arith.mulf %145, %155 : vector<8x128xf32>
    %166 = arith.addf %164, %165 : vector<8x128xf32>
    %167 = math.tanh %166 : vector<8x128xf32>
    %168 = arith.mulf %163, %167 : vector<8x128xf32>
    %c4_i32 = arith.constant 4 : i32
    %c8_i32_69 = arith.constant 8 : i32
    %169 = arith.muli %c4_i32, %c8_i32_69 : i32
    %170 = tpu.assume_multiple %169, 8 : i32
    %171 = arith.index_cast %170 : i32 to index
    %c0_70 = arith.constant 0 : index
    %172 = vector.load %arg9[%171, %c0_70] : memref<64x512xf32, #tpu.memory_space<vmem>>, vector<8x512xf32>
    %173 = arith.truncf %168 : vector<8x128xf32> to vector<8x128xbf16>
    %c0_71 = arith.constant 0 : index
    %c0_72 = arith.constant 0 : index
    %174 = vector.load %arg4[%c0_71, %c0_72] : memref<128x512xbf16, #tpu.memory_space<vmem>>, vector<128x512xbf16>
    %cst_73 = arith.constant dense<0.000000e+00> : vector<8x512xf32>
    %175 = tpu.matmul %173, %174, %cst_73 {dimension_numbers = #tpu.dot_dimension_numbers<[1], [0], [0], [1], [0, 0, 1, 1], [], []>} : vector<8x128xbf16>, vector<128x512xbf16>, vector<8x512xf32> -> vector<8x512xf32>
    %176 = arith.addf %172, %175 : vector<8x512xf32>
    %177 = vector.extract_strided_slice %176 {offsets = [0, 0], sizes = [8, 128], strides = [1, 1]} : vector<8x512xf32> to vector<8x128xf32>
    %cst_74 = arith.constant 5.000000e-01 : f32
    %178 = vector.broadcast %cst_74 : f32 to vector<8x128xf32>
    %179 = arith.mulf %178, %177 : vector<8x128xf32>
    %180 = math.tanh %179 : vector<8x128xf32>
    %cst_75 = arith.constant 1.000000e+00 : f32
    %181 = vector.broadcast %cst_75 : f32 to vector<8x128xf32>
    %182 = arith.addf %180, %181 : vector<8x128xf32>
    %cst_76 = arith.constant 5.000000e-01 : f32
    %183 = vector.broadcast %cst_76 : f32 to vector<8x128xf32>
    %184 = arith.mulf %183, %182 : vector<8x128xf32>
    %185 = vector.extract_strided_slice %176 {offsets = [0, 128], sizes = [8, 128], strides = [1, 1]} : vector<8x512xf32> to vector<8x128xf32>
    %cst_77 = arith.constant 5.000000e-01 : f32
    %186 = vector.broadcast %cst_77 : f32 to vector<8x128xf32>
    %187 = arith.mulf %186, %185 : vector<8x128xf32>
    %188 = math.tanh %187 : vector<8x128xf32>
    %cst_78 = arith.constant 1.000000e+00 : f32
    %189 = vector.broadcast %cst_78 : f32 to vector<8x128xf32>
    %190 = arith.addf %188, %189 : vector<8x128xf32>
    %cst_79 = arith.constant 5.000000e-01 : f32
    %191 = vector.broadcast %cst_79 : f32 to vector<8x128xf32>
    %192 = arith.mulf %191, %190 : vector<8x128xf32>
    %193 = vector.extract_strided_slice %176 {offsets = [0, 256], sizes = [8, 128], strides = [1, 1]} : vector<8x512xf32> to vector<8x128xf32>
    %194 = math.tanh %193 : vector<8x128xf32>
    %195 = vector.extract_strided_slice %176 {offsets = [0, 384], sizes = [8, 128], strides = [1, 1]} : vector<8x512xf32> to vector<8x128xf32>
    %cst_80 = arith.constant 5.000000e-01 : f32
    %196 = vector.broadcast %cst_80 : f32 to vector<8x128xf32>
    %197 = arith.mulf %196, %195 : vector<8x128xf32>
    %198 = math.tanh %197 : vector<8x128xf32>
    %cst_81 = arith.constant 1.000000e+00 : f32
    %199 = vector.broadcast %cst_81 : f32 to vector<8x128xf32>
    %200 = arith.addf %198, %199 : vector<8x128xf32>
    %cst_82 = arith.constant 5.000000e-01 : f32
    %201 = vector.broadcast %cst_82 : f32 to vector<8x128xf32>
    %202 = arith.mulf %201, %200 : vector<8x128xf32>
    %203 = arith.mulf %192, %166 : vector<8x128xf32>
    %204 = arith.mulf %184, %194 : vector<8x128xf32>
    %205 = arith.addf %203, %204 : vector<8x128xf32>
    %206 = math.tanh %205 : vector<8x128xf32>
    %207 = arith.mulf %202, %206 : vector<8x128xf32>
    %c5_i32 = arith.constant 5 : i32
    %c8_i32_83 = arith.constant 8 : i32
    %208 = arith.muli %c5_i32, %c8_i32_83 : i32
    %209 = tpu.assume_multiple %208, 8 : i32
    %210 = arith.index_cast %209 : i32 to index
    %c0_84 = arith.constant 0 : index
    %211 = vector.load %arg9[%210, %c0_84] : memref<64x512xf32, #tpu.memory_space<vmem>>, vector<8x512xf32>
    %212 = arith.truncf %207 : vector<8x128xf32> to vector<8x128xbf16>
    %c0_85 = arith.constant 0 : index
    %c0_86 = arith.constant 0 : index
    %213 = vector.load %arg4[%c0_85, %c0_86] : memref<128x512xbf16, #tpu.memory_space<vmem>>, vector<128x512xbf16>
    %cst_87 = arith.constant dense<0.000000e+00> : vector<8x512xf32>
    %214 = tpu.matmul %212, %213, %cst_87 {dimension_numbers = #tpu.dot_dimension_numbers<[1], [0], [0], [1], [0, 0, 1, 1], [], []>} : vector<8x128xbf16>, vector<128x512xbf16>, vector<8x512xf32> -> vector<8x512xf32>
    %215 = arith.addf %211, %214 : vector<8x512xf32>
    %216 = vector.extract_strided_slice %215 {offsets = [0, 0], sizes = [8, 128], strides = [1, 1]} : vector<8x512xf32> to vector<8x128xf32>
    %cst_88 = arith.constant 5.000000e-01 : f32
    %217 = vector.broadcast %cst_88 : f32 to vector<8x128xf32>
    %218 = arith.mulf %217, %216 : vector<8x128xf32>
    %219 = math.tanh %218 : vector<8x128xf32>
    %cst_89 = arith.constant 1.000000e+00 : f32
    %220 = vector.broadcast %cst_89 : f32 to vector<8x128xf32>
    %221 = arith.addf %219, %220 : vector<8x128xf32>
    %cst_90 = arith.constant 5.000000e-01 : f32
    %222 = vector.broadcast %cst_90 : f32 to vector<8x128xf32>
    %223 = arith.mulf %222, %221 : vector<8x128xf32>
    %224 = vector.extract_strided_slice %215 {offsets = [0, 128], sizes = [8, 128], strides = [1, 1]} : vector<8x512xf32> to vector<8x128xf32>
    %cst_91 = arith.constant 5.000000e-01 : f32
    %225 = vector.broadcast %cst_91 : f32 to vector<8x128xf32>
    %226 = arith.mulf %225, %224 : vector<8x128xf32>
    %227 = math.tanh %226 : vector<8x128xf32>
    %cst_92 = arith.constant 1.000000e+00 : f32
    %228 = vector.broadcast %cst_92 : f32 to vector<8x128xf32>
    %229 = arith.addf %227, %228 : vector<8x128xf32>
    %cst_93 = arith.constant 5.000000e-01 : f32
    %230 = vector.broadcast %cst_93 : f32 to vector<8x128xf32>
    %231 = arith.mulf %230, %229 : vector<8x128xf32>
    %232 = vector.extract_strided_slice %215 {offsets = [0, 256], sizes = [8, 128], strides = [1, 1]} : vector<8x512xf32> to vector<8x128xf32>
    %233 = math.tanh %232 : vector<8x128xf32>
    %234 = vector.extract_strided_slice %215 {offsets = [0, 384], sizes = [8, 128], strides = [1, 1]} : vector<8x512xf32> to vector<8x128xf32>
    %cst_94 = arith.constant 5.000000e-01 : f32
    %235 = vector.broadcast %cst_94 : f32 to vector<8x128xf32>
    %236 = arith.mulf %235, %234 : vector<8x128xf32>
    %237 = math.tanh %236 : vector<8x128xf32>
    %cst_95 = arith.constant 1.000000e+00 : f32
    %238 = vector.broadcast %cst_95 : f32 to vector<8x128xf32>
    %239 = arith.addf %237, %238 : vector<8x128xf32>
    %cst_96 = arith.constant 5.000000e-01 : f32
    %240 = vector.broadcast %cst_96 : f32 to vector<8x128xf32>
    %241 = arith.mulf %240, %239 : vector<8x128xf32>
    %242 = arith.mulf %231, %205 : vector<8x128xf32>
    %243 = arith.mulf %223, %233 : vector<8x128xf32>
    %244 = arith.addf %242, %243 : vector<8x128xf32>
    %245 = math.tanh %244 : vector<8x128xf32>
    %246 = arith.mulf %241, %245 : vector<8x128xf32>
    %c6_i32 = arith.constant 6 : i32
    %c8_i32_97 = arith.constant 8 : i32
    %247 = arith.muli %c6_i32, %c8_i32_97 : i32
    %248 = tpu.assume_multiple %247, 8 : i32
    %249 = arith.index_cast %248 : i32 to index
    %c0_98 = arith.constant 0 : index
    %250 = vector.load %arg9[%249, %c0_98] : memref<64x512xf32, #tpu.memory_space<vmem>>, vector<8x512xf32>
    %251 = arith.truncf %246 : vector<8x128xf32> to vector<8x128xbf16>
    %c0_99 = arith.constant 0 : index
    %c0_100 = arith.constant 0 : index
    %252 = vector.load %arg4[%c0_99, %c0_100] : memref<128x512xbf16, #tpu.memory_space<vmem>>, vector<128x512xbf16>
    %cst_101 = arith.constant dense<0.000000e+00> : vector<8x512xf32>
    %253 = tpu.matmul %251, %252, %cst_101 {dimension_numbers = #tpu.dot_dimension_numbers<[1], [0], [0], [1], [0, 0, 1, 1], [], []>} : vector<8x128xbf16>, vector<128x512xbf16>, vector<8x512xf32> -> vector<8x512xf32>
    %254 = arith.addf %250, %253 : vector<8x512xf32>
    %255 = vector.extract_strided_slice %254 {offsets = [0, 0], sizes = [8, 128], strides = [1, 1]} : vector<8x512xf32> to vector<8x128xf32>
    %cst_102 = arith.constant 5.000000e-01 : f32
    %256 = vector.broadcast %cst_102 : f32 to vector<8x128xf32>
    %257 = arith.mulf %256, %255 : vector<8x128xf32>
    %258 = math.tanh %257 : vector<8x128xf32>
    %cst_103 = arith.constant 1.000000e+00 : f32
    %259 = vector.broadcast %cst_103 : f32 to vector<8x128xf32>
    %260 = arith.addf %258, %259 : vector<8x128xf32>
    %cst_104 = arith.constant 5.000000e-01 : f32
    %261 = vector.broadcast %cst_104 : f32 to vector<8x128xf32>
    %262 = arith.mulf %261, %260 : vector<8x128xf32>
    %263 = vector.extract_strided_slice %254 {offsets = [0, 128], sizes = [8, 128], strides = [1, 1]} : vector<8x512xf32> to vector<8x128xf32>
    %cst_105 = arith.constant 5.000000e-01 : f32
    %264 = vector.broadcast %cst_105 : f32 to vector<8x128xf32>
    %265 = arith.mulf %264, %263 : vector<8x128xf32>
    %266 = math.tanh %265 : vector<8x128xf32>
    %cst_106 = arith.constant 1.000000e+00 : f32
    %267 = vector.broadcast %cst_106 : f32 to vector<8x128xf32>
    %268 = arith.addf %266, %267 : vector<8x128xf32>
    %cst_107 = arith.constant 5.000000e-01 : f32
    %269 = vector.broadcast %cst_107 : f32 to vector<8x128xf32>
    %270 = arith.mulf %269, %268 : vector<8x128xf32>
    %271 = vector.extract_strided_slice %254 {offsets = [0, 256], sizes = [8, 128], strides = [1, 1]} : vector<8x512xf32> to vector<8x128xf32>
    %272 = math.tanh %271 : vector<8x128xf32>
    %273 = vector.extract_strided_slice %254 {offsets = [0, 384], sizes = [8, 128], strides = [1, 1]} : vector<8x512xf32> to vector<8x128xf32>
    %cst_108 = arith.constant 5.000000e-01 : f32
    %274 = vector.broadcast %cst_108 : f32 to vector<8x128xf32>
    %275 = arith.mulf %274, %273 : vector<8x128xf32>
    %276 = math.tanh %275 : vector<8x128xf32>
    %cst_109 = arith.constant 1.000000e+00 : f32
    %277 = vector.broadcast %cst_109 : f32 to vector<8x128xf32>
    %278 = arith.addf %276, %277 : vector<8x128xf32>
    %cst_110 = arith.constant 5.000000e-01 : f32
    %279 = vector.broadcast %cst_110 : f32 to vector<8x128xf32>
    %280 = arith.mulf %279, %278 : vector<8x128xf32>
    %281 = arith.mulf %270, %244 : vector<8x128xf32>
    %282 = arith.mulf %262, %272 : vector<8x128xf32>
    %283 = arith.addf %281, %282 : vector<8x128xf32>
    %284 = math.tanh %283 : vector<8x128xf32>
    %285 = arith.mulf %280, %284 : vector<8x128xf32>
    %c7_i32 = arith.constant 7 : i32
    %c8_i32_111 = arith.constant 8 : i32
    %286 = arith.muli %c7_i32, %c8_i32_111 : i32
    %287 = tpu.assume_multiple %286, 8 : i32
    %288 = arith.index_cast %287 : i32 to index
    %c0_112 = arith.constant 0 : index
    %289 = vector.load %arg9[%288, %c0_112] : memref<64x512xf32, #tpu.memory_space<vmem>>, vector<8x512xf32>
    %290 = arith.truncf %285 : vector<8x128xf32> to vector<8x128xbf16>
    %c0_113 = arith.constant 0 : index
    %c0_114 = arith.constant 0 : index
    %291 = vector.load %arg4[%c0_113, %c0_114] : memref<128x512xbf16, #tpu.memory_space<vmem>>, vector<128x512xbf16>
    %cst_115 = arith.constant dense<0.000000e+00> : vector<8x512xf32>
    %292 = tpu.matmul %290, %291, %cst_115 {dimension_numbers = #tpu.dot_dimension_numbers<[1], [0], [0], [1], [0, 0, 1, 1], [], []>} : vector<8x128xbf16>, vector<128x512xbf16>, vector<8x512xf32> -> vector<8x512xf32>
    %293 = arith.addf %289, %292 : vector<8x512xf32>
    %294 = vector.extract_strided_slice %293 {offsets = [0, 0], sizes = [8, 128], strides = [1, 1]} : vector<8x512xf32> to vector<8x128xf32>
    %cst_116 = arith.constant 5.000000e-01 : f32
    %295 = vector.broadcast %cst_116 : f32 to vector<8x128xf32>
    %296 = arith.mulf %295, %294 : vector<8x128xf32>
    %297 = math.tanh %296 : vector<8x128xf32>
    %cst_117 = arith.constant 1.000000e+00 : f32
    %298 = vector.broadcast %cst_117 : f32 to vector<8x128xf32>
    %299 = arith.addf %297, %298 : vector<8x128xf32>
    %cst_118 = arith.constant 5.000000e-01 : f32
    %300 = vector.broadcast %cst_118 : f32 to vector<8x128xf32>
    %301 = arith.mulf %300, %299 : vector<8x128xf32>
    %302 = vector.extract_strided_slice %293 {offsets = [0, 128], sizes = [8, 128], strides = [1, 1]} : vector<8x512xf32> to vector<8x128xf32>
    %cst_119 = arith.constant 5.000000e-01 : f32
    %303 = vector.broadcast %cst_119 : f32 to vector<8x128xf32>
    %304 = arith.mulf %303, %302 : vector<8x128xf32>
    %305 = math.tanh %304 : vector<8x128xf32>
    %cst_120 = arith.constant 1.000000e+00 : f32
    %306 = vector.broadcast %cst_120 : f32 to vector<8x128xf32>
    %307 = arith.addf %305, %306 : vector<8x128xf32>
    %cst_121 = arith.constant 5.000000e-01 : f32
    %308 = vector.broadcast %cst_121 : f32 to vector<8x128xf32>
    %309 = arith.mulf %308, %307 : vector<8x128xf32>
    %310 = vector.extract_strided_slice %293 {offsets = [0, 256], sizes = [8, 128], strides = [1, 1]} : vector<8x512xf32> to vector<8x128xf32>
    %311 = math.tanh %310 : vector<8x128xf32>
    %312 = vector.extract_strided_slice %293 {offsets = [0, 384], sizes = [8, 128], strides = [1, 1]} : vector<8x512xf32> to vector<8x128xf32>
    %cst_122 = arith.constant 5.000000e-01 : f32
    %313 = vector.broadcast %cst_122 : f32 to vector<8x128xf32>
    %314 = arith.mulf %313, %312 : vector<8x128xf32>
    %315 = math.tanh %314 : vector<8x128xf32>
    %cst_123 = arith.constant 1.000000e+00 : f32
    %316 = vector.broadcast %cst_123 : f32 to vector<8x128xf32>
    %317 = arith.addf %315, %316 : vector<8x128xf32>
    %cst_124 = arith.constant 5.000000e-01 : f32
    %318 = vector.broadcast %cst_124 : f32 to vector<8x128xf32>
    %319 = arith.mulf %318, %317 : vector<8x128xf32>
    %320 = arith.mulf %309, %283 : vector<8x128xf32>
    %321 = arith.mulf %301, %311 : vector<8x128xf32>
    %322 = arith.addf %320, %321 : vector<8x128xf32>
    %323 = math.tanh %322 : vector<8x128xf32>
    %324 = arith.mulf %319, %323 : vector<8x128xf32>
    %c8_i32_125 = arith.constant 8 : i32
    %c0_126 = arith.constant 0 : index
    %c0_127 = arith.constant 0 : index
    %325 = vector.load %arg10[%c0_126, %c0_127] : memref<8x128xf32, #tpu.memory_space<vmem>>, vector<8x128xf32>
    tpu.vector_store %arg10[%c0_126, %c0_127], %324 {strides = array<i32>} : memref<8x128xf32, #tpu.memory_space<vmem>>, vector<8x128xf32>,
    %c0_128 = arith.constant 0 : index
    %c0_129 = arith.constant 0 : index
    %326 = vector.load %arg11[%c0_128, %c0_129] : memref<8x128xf32, #tpu.memory_space<vmem>>, vector<8x128xf32>
    tpu.vector_store %arg11[%c0_128, %c0_129], %322 {strides = array<i32>} : memref<8x128xf32, #tpu.memory_space<vmem>>, vector<8x128xf32>,
    %c0_i32_130 = arith.constant 0 : i32
    %327 = arith.cmpi eq, %arg1, %c0_i32_130 : i32
    %328 = arith.extui %327 : i1 to i32
    %c0_i32_131 = arith.constant 0 : i32
    %329 = arith.cmpi ne, %328, %c0_i32_131 : i32
    scf.if %329 {
      %330 = arith.truncf %324 : vector<8x128xf32> to vector<8x128xbf16>
      %c0_132 = arith.constant 0 : index
      %c0_133 = arith.constant 0 : index
      %331 = vector.load %arg6[%c0_132, %c0_133] : memref<128x128xbf16, #tpu.memory_space<vmem>>, vector<128x128xbf16>
      %cst_134 = arith.constant dense<0.000000e+00> : vector<8x128xf32>
      %332 = tpu.matmul %330, %331, %cst_134 {dimension_numbers = #tpu.dot_dimension_numbers<[1], [0], [0], [1], [0, 0, 1, 1], [], []>} : vector<8x128xbf16>, vector<128x128xbf16>, vector<8x128xf32> -> vector<8x128xf32>
      %c0_135 = arith.constant 0 : index
      %c0_136 = arith.constant 0 : index
      %333 = vector.load %arg7[%c0_135, %c0_136] : memref<1x128xf32, #tpu.memory_space<vmem>>, vector<1x128xf32>
      %334 = vector.broadcast %333 : vector<1x128xf32> to vector<8x128xf32>
      %335 = arith.addf %332, %334 : vector<8x128xf32>
      %c0_137 = arith.constant 0 : index
      %c0_138 = arith.constant 0 : index
      %336 = vector.load %arg8[%c0_137, %c0_138] : memref<8x128xf32, #tpu.memory_space<vmem>>, vector<8x128xf32>
      tpu.vector_store %arg8[%c0_137, %c0_138], %335 {strides = array<i32>} : memref<8x128xf32, #tpu.memory_space<vmem>>, vector<8x128xf32>,
    } else {
    }
    return
  }
  func.func @transform_0(%arg0: i32, %arg1: i32) -> (i32, i32, i32) {
    %c0_i32 = arith.constant 0 : i32
    %c0_i32_0 = arith.constant 0 : i32
    return %arg0, %arg1, %c0_i32 : i32, i32, i32
  }
  func.func @transform_1(%arg0: i32, %arg1: i32) -> (i32, i32) {
    %c0_i32 = arith.constant 0 : i32
    %c0_i32_0 = arith.constant 0 : i32
    %c0_i32_1 = arith.constant 0 : i32
    return %c0_i32, %c0_i32_0 : i32, i32
  }
  func.func @transform_2(%arg0: i32, %arg1: i32) -> (i32, i32) {
    %c0_i32 = arith.constant 0 : i32
    %c0_i32_0 = arith.constant 0 : i32
    %c0_i32_1 = arith.constant 0 : i32
    return %c0_i32, %c0_i32_0 : i32, i32
  }
  func.func @transform_3(%arg0: i32, %arg1: i32) -> (i32, i32) {
    %c0_i32 = arith.constant 0 : i32
    %c0_i32_0 = arith.constant 0 : i32
    %c0_i32_1 = arith.constant 0 : i32
    return %c0_i32, %c0_i32_0 : i32, i32
  }
  func.func @transform_4(%arg0: i32, %arg1: i32) -> (i32, i32) {
    %c0_i32 = arith.constant 0 : i32
    %c0_i32_0 = arith.constant 0 : i32
    %c0_i32_1 = arith.constant 0 : i32
    return %c0_i32, %c0_i32_0 : i32, i32
  }
  func.func @transform_5(%arg0: i32, %arg1: i32) -> (i32, i32) {
    %c0_i32 = arith.constant 0 : i32
    %c0_i32_0 = arith.constant 0 : i32
    %c0_i32_1 = arith.constant 0 : i32
    return %c0_i32, %c0_i32_0 : i32, i32
  }
  func.func @transform_6(%arg0: i32, %arg1: i32) -> (i32, i32) {
    %c0_i32 = arith.constant 0 : i32
    %c0_i32_0 = arith.constant 0 : i32
    return %arg0, %c0_i32 : i32, i32
  }
}

module attributes {stable_mosaic.version = 11 : i64} {
  func.func @lstm_head_kernel(%arg0: i32, %arg1: i32, %arg2: memref<1x64x16xbf16, #tpu.memory_space<vmem>>, %arg3: memref<16x512xbf16, #tpu.memory_space<vmem>>, %arg4: memref<128x512xbf16, #tpu.memory_space<vmem>>, %arg5: memref<1x512xf32, #tpu.memory_space<vmem>>, %arg6: memref<128x128xbf16, #tpu.memory_space<vmem>>, %arg7: memref<1x128xf32, #tpu.memory_space<vmem>>, %arg8: memref<8x128xf32, #tpu.memory_space<vmem>>, %arg9: memref<64x512xf32, #tpu.memory_space<vmem>>, %arg10: memref<8x128xf32, #tpu.memory_space<vmem>>, %arg11: memref<8x128xf32, #tpu.memory_space<vmem>>) attributes {dimension_semantics = [#tpu.dimension_semantics<parallel>, #tpu.dimension_semantics<arbitrary>], iteration_bounds = array<i64: 1, 1>, scalar_prefetch = 0 : i64, scratch_operands = 3 : i64, tpu.core_type = #tpu.core_type<tc>, window_params = [{transform_indices = @transform_0, window_bounds = array<i64: 1, 64, 16>}, {pipeline_mode = #tpu.pipeline_mode<synchronous>, transform_indices = @transform_1, window_bounds = array<i64: 16, 512>}, {pipeline_mode = #tpu.pipeline_mode<synchronous>, transform_indices = @transform_2, window_bounds = array<i64: 128, 512>}, {pipeline_mode = #tpu.pipeline_mode<synchronous>, transform_indices = @transform_3, window_bounds = array<i64: 1, 512>}, {pipeline_mode = #tpu.pipeline_mode<synchronous>, transform_indices = @transform_4, window_bounds = array<i64: 128, 128>}, {pipeline_mode = #tpu.pipeline_mode<synchronous>, transform_indices = @transform_5, window_bounds = array<i64: 1, 128>}, {transform_indices = @transform_6, window_bounds = array<i64: 8, 128>}]} {
    %c0_i32 = arith.constant 0 : i32
    %0 = arith.cmpi eq, %arg1, %c0_i32 : i32
    %1 = arith.extui %0 : i1 to i32
    %c0_i32_0 = arith.constant 0 : i32
    %2 = arith.cmpi ne, %1, %c0_i32_0 : i32
    scf.if %2 {
      %cst_132 = arith.constant 0.000000e+00 : f32
      %330 = vector.broadcast %cst_132 : f32 to vector<8x128xf32>
      %c0_133 = arith.constant 0 : index
      %c0_134 = arith.constant 0 : index
      %331 = vector.load %arg10[%c0_133, %c0_134] : memref<8x128xf32, #tpu.memory_space<vmem>>, vector<8x128xf32>
      tpu.vector_store %arg10[%c0_133, %c0_134], %330 {strides = array<i32>} : memref<8x128xf32, #tpu.memory_space<vmem>>, vector<8x128xf32>,
      %cst_135 = arith.constant 0.000000e+00 : f32
      %332 = vector.broadcast %cst_135 : f32 to vector<8x128xf32>
      %c0_136 = arith.constant 0 : index
      %c0_137 = arith.constant 0 : index
      %333 = vector.load %arg11[%c0_136, %c0_137] : memref<8x128xf32, #tpu.memory_space<vmem>>, vector<8x128xf32>
      tpu.vector_store %arg11[%c0_136, %c0_137], %332 {strides = array<i32>} : memref<8x128xf32, #tpu.memory_space<vmem>>, vector<8x128xf32>,
    } else {
    }
    %c0 = arith.constant 0 : index
    %c0_1 = arith.constant 0 : index
    %c0_2 = arith.constant 0 : index
    %3 = vector.load %arg2[%c0, %c0_1, %c0_2] : memref<1x64x16xbf16, #tpu.memory_space<vmem>>, vector<1x64x16xbf16>
    %4 = vector.shape_cast %3 : vector<1x64x16xbf16> to vector<64x16xbf16>
    %c0_3 = arith.constant 0 : index
    %c0_4 = arith.constant 0 : index
    %5 = vector.load %arg3[%c0_3, %c0_4] : memref<16x512xbf16, #tpu.memory_space<vmem>>, vector<16x512xbf16>
    %cst = arith.constant dense<0.000000e+00> : vector<64x512xf32>
    %6 = tpu.matmul %4, %5, %cst {dimension_numbers = #tpu.dot_dimension_numbers<[1], [0], [0], [1], [0, 0, 1, 1], [], []>} : vector<64x16xbf16>, vector<16x512xbf16>, vector<64x512xf32> -> vector<64x512xf32>
    %c0_5 = arith.constant 0 : index
    %c0_6 = arith.constant 0 : index
    %7 = vector.load %arg5[%c0_5, %c0_6] : memref<1x512xf32, #tpu.memory_space<vmem>>, vector<1x512xf32>
    %8 = vector.broadcast %7 : vector<1x512xf32> to vector<64x512xf32>
    %9 = arith.addf %6, %8 : vector<64x512xf32>
    %c0_7 = arith.constant 0 : index
    %c0_8 = arith.constant 0 : index
    %10 = vector.load %arg9[%c0_7, %c0_8] : memref<64x512xf32, #tpu.memory_space<vmem>>, vector<64x512xf32>
    tpu.vector_store %arg9[%c0_7, %c0_8], %9 {strides = array<i32>} : memref<64x512xf32, #tpu.memory_space<vmem>>, vector<64x512xf32>,
    %c0_9 = arith.constant 0 : index
    %c0_10 = arith.constant 0 : index
    %11 = vector.load %arg10[%c0_9, %c0_10] : memref<8x128xf32, #tpu.memory_space<vmem>>, vector<8x128xf32>
    %c0_11 = arith.constant 0 : index
    %c0_12 = arith.constant 0 : index
    %12 = vector.load %arg11[%c0_11, %c0_12] : memref<8x128xf32, #tpu.memory_space<vmem>>, vector<8x128xf32>
    %c0_i32_13 = arith.constant 0 : i32
    %c8_i32 = arith.constant 8 : i32
    %13 = arith.muli %c0_i32_13, %c8_i32 : i32
    %14 = tpu.assume_multiple %13, 8 : i32
    %15 = arith.index_cast %14 : i32 to index
    %c0_14 = arith.constant 0 : index
    %16 = vector.load %arg9[%15, %c0_14] : memref<64x512xf32, #tpu.memory_space<vmem>>, vector<8x512xf32>
    %17 = arith.truncf %11 : vector<8x128xf32> to vector<8x128xbf16>
    %c0_15 = arith.constant 0 : index
    %c0_16 = arith.constant 0 : index
    %18 = vector.load %arg4[%c0_15, %c0_16] : memref<128x512xbf16, #tpu.memory_space<vmem>>, vector<128x512xbf16>
    %cst_17 = arith.constant dense<0.000000e+00> : vector<8x512xf32>
    %19 = tpu.matmul %17, %18, %cst_17 {dimension_numbers = #tpu.dot_dimension_numbers<[1], [0], [0], [1], [0, 0, 1, 1], [], []>} : vector<8x128xbf16>, vector<128x512xbf16>, vector<8x512xf32> -> vector<8x512xf32>
    %20 = arith.addf %16, %19 : vector<8x512xf32>
    %21 = vector.extract_strided_slice %20 {offsets = [0, 0], sizes = [8, 128], strides = [1, 1]} : vector<8x512xf32> to vector<8x128xf32>
    %cst_18 = arith.constant 5.000000e-01 : f32
    %22 = vector.broadcast %cst_18 : f32 to vector<8x128xf32>
    %23 = arith.mulf %22, %21 : vector<8x128xf32>
    %24 = math.tanh %23 : vector<8x128xf32>
    %cst_19 = arith.constant 1.000000e+00 : f32
    %25 = vector.broadcast %cst_19 : f32 to vector<8x128xf32>
    %26 = arith.addf %24, %25 : vector<8x128xf32>
    %cst_20 = arith.constant 5.000000e-01 : f32
    %27 = vector.broadcast %cst_20 : f32 to vector<8x128xf32>
    %28 = arith.mulf %27, %26 : vector<8x128xf32>
    %29 = vector.extract_strided_slice %20 {offsets = [0, 128], sizes = [8, 128], strides = [1, 1]} : vector<8x512xf32> to vector<8x128xf32>
    %cst_21 = arith.constant 5.000000e-01 : f32
    %30 = vector.broadcast %cst_21 : f32 to vector<8x128xf32>
    %31 = arith.mulf %30, %29 : vector<8x128xf32>
    %32 = math.tanh %31 : vector<8x128xf32>
    %cst_22 = arith.constant 1.000000e+00 : f32
    %33 = vector.broadcast %cst_22 : f32 to vector<8x128xf32>
    %34 = arith.addf %32, %33 : vector<8x128xf32>
    %cst_23 = arith.constant 5.000000e-01 : f32
    %35 = vector.broadcast %cst_23 : f32 to vector<8x128xf32>
    %36 = arith.mulf %35, %34 : vector<8x128xf32>
    %37 = vector.extract_strided_slice %20 {offsets = [0, 256], sizes = [8, 128], strides = [1, 1]} : vector<8x512xf32> to vector<8x128xf32>
    %38 = math.tanh %37 : vector<8x128xf32>
    %39 = vector.extract_strided_slice %20 {offsets = [0, 384], sizes = [8, 128], strides = [1, 1]} : vector<8x512xf32> to vector<8x128xf32>
    %cst_24 = arith.constant 5.000000e-01 : f32
    %40 = vector.broadcast %cst_24 : f32 to vector<8x128xf32>
    %41 = arith.mulf %40, %39 : vector<8x128xf32>
    %42 = math.tanh %41 : vector<8x128xf32>
    %cst_25 = arith.constant 1.000000e+00 : f32
    %43 = vector.broadcast %cst_25 : f32 to vector<8x128xf32>
    %44 = arith.addf %42, %43 : vector<8x128xf32>
    %cst_26 = arith.constant 5.000000e-01 : f32
    %45 = vector.broadcast %cst_26 : f32 to vector<8x128xf32>
    %46 = arith.mulf %45, %44 : vector<8x128xf32>
    %47 = arith.mulf %36, %12 : vector<8x128xf32>
    %48 = arith.mulf %28, %38 : vector<8x128xf32>
    %49 = arith.addf %47, %48 : vector<8x128xf32>
    %50 = math.tanh %49 : vector<8x128xf32>
    %51 = arith.mulf %46, %50 : vector<8x128xf32>
    %c1_i32 = arith.constant 1 : i32
    %c8_i32_27 = arith.constant 8 : i32
    %52 = arith.muli %c1_i32, %c8_i32_27 : i32
    %53 = tpu.assume_multiple %52, 8 : i32
    %54 = arith.index_cast %53 : i32 to index
    %c0_28 = arith.constant 0 : index
    %55 = vector.load %arg9[%54, %c0_28] : memref<64x512xf32, #tpu.memory_space<vmem>>, vector<8x512xf32>
    %56 = arith.truncf %51 : vector<8x128xf32> to vector<8x128xbf16>
    %c0_29 = arith.constant 0 : index
    %c0_30 = arith.constant 0 : index
    %57 = vector.load %arg4[%c0_29, %c0_30] : memref<128x512xbf16, #tpu.memory_space<vmem>>, vector<128x512xbf16>
    %cst_31 = arith.constant dense<0.000000e+00> : vector<8x512xf32>
    %58 = tpu.matmul %56, %57, %cst_31 {dimension_numbers = #tpu.dot_dimension_numbers<[1], [0], [0], [1], [0, 0, 1, 1], [], []>} : vector<8x128xbf16>, vector<128x512xbf16>, vector<8x512xf32> -> vector<8x512xf32>
    %59 = arith.addf %55, %58 : vector<8x512xf32>
    %60 = vector.extract_strided_slice %59 {offsets = [0, 0], sizes = [8, 128], strides = [1, 1]} : vector<8x512xf32> to vector<8x128xf32>
    %cst_32 = arith.constant 5.000000e-01 : f32
    %61 = vector.broadcast %cst_32 : f32 to vector<8x128xf32>
    %62 = arith.mulf %61, %60 : vector<8x128xf32>
    %63 = math.tanh %62 : vector<8x128xf32>
    %cst_33 = arith.constant 1.000000e+00 : f32
    %64 = vector.broadcast %cst_33 : f32 to vector<8x128xf32>
    %65 = arith.addf %63, %64 : vector<8x128xf32>
    %cst_34 = arith.constant 5.000000e-01 : f32
    %66 = vector.broadcast %cst_34 : f32 to vector<8x128xf32>
    %67 = arith.mulf %66, %65 : vector<8x128xf32>
    %68 = vector.extract_strided_slice %59 {offsets = [0, 128], sizes = [8, 128], strides = [1, 1]} : vector<8x512xf32> to vector<8x128xf32>
    %cst_35 = arith.constant 5.000000e-01 : f32
    %69 = vector.broadcast %cst_35 : f32 to vector<8x128xf32>
    %70 = arith.mulf %69, %68 : vector<8x128xf32>
    %71 = math.tanh %70 : vector<8x128xf32>
    %cst_36 = arith.constant 1.000000e+00 : f32
    %72 = vector.broadcast %cst_36 : f32 to vector<8x128xf32>
    %73 = arith.addf %71, %72 : vector<8x128xf32>
    %cst_37 = arith.constant 5.000000e-01 : f32
    %74 = vector.broadcast %cst_37 : f32 to vector<8x128xf32>
    %75 = arith.mulf %74, %73 : vector<8x128xf32>
    %76 = vector.extract_strided_slice %59 {offsets = [0, 256], sizes = [8, 128], strides = [1, 1]} : vector<8x512xf32> to vector<8x128xf32>
    %77 = math.tanh %76 : vector<8x128xf32>
    %78 = vector.extract_strided_slice %59 {offsets = [0, 384], sizes = [8, 128], strides = [1, 1]} : vector<8x512xf32> to vector<8x128xf32>
    %cst_38 = arith.constant 5.000000e-01 : f32
    %79 = vector.broadcast %cst_38 : f32 to vector<8x128xf32>
    %80 = arith.mulf %79, %78 : vector<8x128xf32>
    %81 = math.tanh %80 : vector<8x128xf32>
    %cst_39 = arith.constant 1.000000e+00 : f32
    %82 = vector.broadcast %cst_39 : f32 to vector<8x128xf32>
    %83 = arith.addf %81, %82 : vector<8x128xf32>
    %cst_40 = arith.constant 5.000000e-01 : f32
    %84 = vector.broadcast %cst_40 : f32 to vector<8x128xf32>
    %85 = arith.mulf %84, %83 : vector<8x128xf32>
    %86 = arith.mulf %75, %49 : vector<8x128xf32>
    %87 = arith.mulf %67, %77 : vector<8x128xf32>
    %88 = arith.addf %86, %87 : vector<8x128xf32>
    %89 = math.tanh %88 : vector<8x128xf32>
    %90 = arith.mulf %85, %89 : vector<8x128xf32>
    %c2_i32 = arith.constant 2 : i32
    %c8_i32_41 = arith.constant 8 : i32
    %91 = arith.muli %c2_i32, %c8_i32_41 : i32
    %92 = tpu.assume_multiple %91, 8 : i32
    %93 = arith.index_cast %92 : i32 to index
    %c0_42 = arith.constant 0 : index
    %94 = vector.load %arg9[%93, %c0_42] : memref<64x512xf32, #tpu.memory_space<vmem>>, vector<8x512xf32>
    %95 = arith.truncf %90 : vector<8x128xf32> to vector<8x128xbf16>
    %c0_43 = arith.constant 0 : index
    %c0_44 = arith.constant 0 : index
    %96 = vector.load %arg4[%c0_43, %c0_44] : memref<128x512xbf16, #tpu.memory_space<vmem>>, vector<128x512xbf16>
    %cst_45 = arith.constant dense<0.000000e+00> : vector<8x512xf32>
    %97 = tpu.matmul %95, %96, %cst_45 {dimension_numbers = #tpu.dot_dimension_numbers<[1], [0], [0], [1], [0, 0, 1, 1], [], []>} : vector<8x128xbf16>, vector<128x512xbf16>, vector<8x512xf32> -> vector<8x512xf32>
    %98 = arith.addf %94, %97 : vector<8x512xf32>
    %99 = vector.extract_strided_slice %98 {offsets = [0, 0], sizes = [8, 128], strides = [1, 1]} : vector<8x512xf32> to vector<8x128xf32>
    %cst_46 = arith.constant 5.000000e-01 : f32
    %100 = vector.broadcast %cst_46 : f32 to vector<8x128xf32>
    %101 = arith.mulf %100, %99 : vector<8x128xf32>
    %102 = math.tanh %101 : vector<8x128xf32>
    %cst_47 = arith.constant 1.000000e+00 : f32
    %103 = vector.broadcast %cst_47 : f32 to vector<8x128xf32>
    %104 = arith.addf %102, %103 : vector<8x128xf32>
    %cst_48 = arith.constant 5.000000e-01 : f32
    %105 = vector.broadcast %cst_48 : f32 to vector<8x128xf32>
    %106 = arith.mulf %105, %104 : vector<8x128xf32>
    %107 = vector.extract_strided_slice %98 {offsets = [0, 128], sizes = [8, 128], strides = [1, 1]} : vector<8x512xf32> to vector<8x128xf32>
    %cst_49 = arith.constant 5.000000e-01 : f32
    %108 = vector.broadcast %cst_49 : f32 to vector<8x128xf32>
    %109 = arith.mulf %108, %107 : vector<8x128xf32>
    %110 = math.tanh %109 : vector<8x128xf32>
    %cst_50 = arith.constant 1.000000e+00 : f32
    %111 = vector.broadcast %cst_50 : f32 to vector<8x128xf32>
    %112 = arith.addf %110, %111 : vector<8x128xf32>
    %cst_51 = arith.constant 5.000000e-01 : f32
    %113 = vector.broadcast %cst_51 : f32 to vector<8x128xf32>
    %114 = arith.mulf %113, %112 : vector<8x128xf32>
    %115 = vector.extract_strided_slice %98 {offsets = [0, 256], sizes = [8, 128], strides = [1, 1]} : vector<8x512xf32> to vector<8x128xf32>
    %116 = math.tanh %115 : vector<8x128xf32>
    %117 = vector.extract_strided_slice %98 {offsets = [0, 384], sizes = [8, 128], strides = [1, 1]} : vector<8x512xf32> to vector<8x128xf32>
    %cst_52 = arith.constant 5.000000e-01 : f32
    %118 = vector.broadcast %cst_52 : f32 to vector<8x128xf32>
    %119 = arith.mulf %118, %117 : vector<8x128xf32>
    %120 = math.tanh %119 : vector<8x128xf32>
    %cst_53 = arith.constant 1.000000e+00 : f32
    %121 = vector.broadcast %cst_53 : f32 to vector<8x128xf32>
    %122 = arith.addf %120, %121 : vector<8x128xf32>
    %cst_54 = arith.constant 5.000000e-01 : f32
    %123 = vector.broadcast %cst_54 : f32 to vector<8x128xf32>
    %124 = arith.mulf %123, %122 : vector<8x128xf32>
    %125 = arith.mulf %114, %88 : vector<8x128xf32>
    %126 = arith.mulf %106, %116 : vector<8x128xf32>
    %127 = arith.addf %125, %126 : vector<8x128xf32>
    %128 = math.tanh %127 : vector<8x128xf32>
    %129 = arith.mulf %124, %128 : vector<8x128xf32>
    %c3_i32 = arith.constant 3 : i32
    %c8_i32_55 = arith.constant 8 : i32
    %130 = arith.muli %c3_i32, %c8_i32_55 : i32
    %131 = tpu.assume_multiple %130, 8 : i32
    %132 = arith.index_cast %131 : i32 to index
    %c0_56 = arith.constant 0 : index
    %133 = vector.load %arg9[%132, %c0_56] : memref<64x512xf32, #tpu.memory_space<vmem>>, vector<8x512xf32>
    %134 = arith.truncf %129 : vector<8x128xf32> to vector<8x128xbf16>
    %c0_57 = arith.constant 0 : index
    %c0_58 = arith.constant 0 : index
    %135 = vector.load %arg4[%c0_57, %c0_58] : memref<128x512xbf16, #tpu.memory_space<vmem>>, vector<128x512xbf16>
    %cst_59 = arith.constant dense<0.000000e+00> : vector<8x512xf32>
    %136 = tpu.matmul %134, %135, %cst_59 {dimension_numbers = #tpu.dot_dimension_numbers<[1], [0], [0], [1], [0, 0, 1, 1], [], []>} : vector<8x128xbf16>, vector<128x512xbf16>, vector<8x512xf32> -> vector<8x512xf32>
    %137 = arith.addf %133, %136 : vector<8x512xf32>
    %138 = vector.extract_strided_slice %137 {offsets = [0, 0], sizes = [8, 128], strides = [1, 1]} : vector<8x512xf32> to vector<8x128xf32>
    %cst_60 = arith.constant 5.000000e-01 : f32
    %139 = vector.broadcast %cst_60 : f32 to vector<8x128xf32>
    %140 = arith.mulf %139, %138 : vector<8x128xf32>
    %141 = math.tanh %140 : vector<8x128xf32>
    %cst_61 = arith.constant 1.000000e+00 : f32
    %142 = vector.broadcast %cst_61 : f32 to vector<8x128xf32>
    %143 = arith.addf %141, %142 : vector<8x128xf32>
    %cst_62 = arith.constant 5.000000e-01 : f32
    %144 = vector.broadcast %cst_62 : f32 to vector<8x128xf32>
    %145 = arith.mulf %144, %143 : vector<8x128xf32>
    %146 = vector.extract_strided_slice %137 {offsets = [0, 128], sizes = [8, 128], strides = [1, 1]} : vector<8x512xf32> to vector<8x128xf32>
    %cst_63 = arith.constant 5.000000e-01 : f32
    %147 = vector.broadcast %cst_63 : f32 to vector<8x128xf32>
    %148 = arith.mulf %147, %146 : vector<8x128xf32>
    %149 = math.tanh %148 : vector<8x128xf32>
    %cst_64 = arith.constant 1.000000e+00 : f32
    %150 = vector.broadcast %cst_64 : f32 to vector<8x128xf32>
    %151 = arith.addf %149, %150 : vector<8x128xf32>
    %cst_65 = arith.constant 5.000000e-01 : f32
    %152 = vector.broadcast %cst_65 : f32 to vector<8x128xf32>
    %153 = arith.mulf %152, %151 : vector<8x128xf32>
    %154 = vector.extract_strided_slice %137 {offsets = [0, 256], sizes = [8, 128], strides = [1, 1]} : vector<8x512xf32> to vector<8x128xf32>
    %155 = math.tanh %154 : vector<8x128xf32>
    %156 = vector.extract_strided_slice %137 {offsets = [0, 384], sizes = [8, 128], strides = [1, 1]} : vector<8x512xf32> to vector<8x128xf32>
    %cst_66 = arith.constant 5.000000e-01 : f32
    %157 = vector.broadcast %cst_66 : f32 to vector<8x128xf32>
    %158 = arith.mulf %157, %156 : vector<8x128xf32>
    %159 = math.tanh %158 : vector<8x128xf32>
    %cst_67 = arith.constant 1.000000e+00 : f32
    %160 = vector.broadcast %cst_67 : f32 to vector<8x128xf32>
    %161 = arith.addf %159, %160 : vector<8x128xf32>
    %cst_68 = arith.constant 5.000000e-01 : f32
    %162 = vector.broadcast %cst_68 : f32 to vector<8x128xf32>
    %163 = arith.mulf %162, %161 : vector<8x128xf32>
    %164 = arith.mulf %153, %127 : vector<8x128xf32>
    %165 = arith.mulf %145, %155 : vector<8x128xf32>
    %166 = arith.addf %164, %165 : vector<8x128xf32>
    %167 = math.tanh %166 : vector<8x128xf32>
    %168 = arith.mulf %163, %167 : vector<8x128xf32>
    %c4_i32 = arith.constant 4 : i32
    %c8_i32_69 = arith.constant 8 : i32
    %169 = arith.muli %c4_i32, %c8_i32_69 : i32
    %170 = tpu.assume_multiple %169, 8 : i32
    %171 = arith.index_cast %170 : i32 to index
    %c0_70 = arith.constant 0 : index
    %172 = vector.load %arg9[%171, %c0_70] : memref<64x512xf32, #tpu.memory_space<vmem>>, vector<8x512xf32>
    %173 = arith.truncf %168 : vector<8x128xf32> to vector<8x128xbf16>
    %c0_71 = arith.constant 0 : index
    %c0_72 = arith.constant 0 : index
    %174 = vector.load %arg4[%c0_71, %c0_72] : memref<128x512xbf16, #tpu.memory_space<vmem>>, vector<128x512xbf16>
    %cst_73 = arith.constant dense<0.000000e+00> : vector<8x512xf32>
    %175 = tpu.matmul %173, %174, %cst_73 {dimension_numbers = #tpu.dot_dimension_numbers<[1], [0], [0], [1], [0, 0, 1, 1], [], []>} : vector<8x128xbf16>, vector<128x512xbf16>, vector<8x512xf32> -> vector<8x512xf32>
    %176 = arith.addf %172, %175 : vector<8x512xf32>
    %177 = vector.extract_strided_slice %176 {offsets = [0, 0], sizes = [8, 128], strides = [1, 1]} : vector<8x512xf32> to vector<8x128xf32>
    %cst_74 = arith.constant 5.000000e-01 : f32
    %178 = vector.broadcast %cst_74 : f32 to vector<8x128xf32>
    %179 = arith.mulf %178, %177 : vector<8x128xf32>
    %180 = math.tanh %179 : vector<8x128xf32>
    %cst_75 = arith.constant 1.000000e+00 : f32
    %181 = vector.broadcast %cst_75 : f32 to vector<8x128xf32>
    %182 = arith.addf %180, %181 : vector<8x128xf32>
    %cst_76 = arith.constant 5.000000e-01 : f32
    %183 = vector.broadcast %cst_76 : f32 to vector<8x128xf32>
    %184 = arith.mulf %183, %182 : vector<8x128xf32>
    %185 = vector.extract_strided_slice %176 {offsets = [0, 128], sizes = [8, 128], strides = [1, 1]} : vector<8x512xf32> to vector<8x128xf32>
    %cst_77 = arith.constant 5.000000e-01 : f32
    %186 = vector.broadcast %cst_77 : f32 to vector<8x128xf32>
    %187 = arith.mulf %186, %185 : vector<8x128xf32>
    %188 = math.tanh %187 : vector<8x128xf32>
    %cst_78 = arith.constant 1.000000e+00 : f32
    %189 = vector.broadcast %cst_78 : f32 to vector<8x128xf32>
    %190 = arith.addf %188, %189 : vector<8x128xf32>
    %cst_79 = arith.constant 5.000000e-01 : f32
    %191 = vector.broadcast %cst_79 : f32 to vector<8x128xf32>
    %192 = arith.mulf %191, %190 : vector<8x128xf32>
    %193 = vector.extract_strided_slice %176 {offsets = [0, 256], sizes = [8, 128], strides = [1, 1]} : vector<8x512xf32> to vector<8x128xf32>
    %194 = math.tanh %193 : vector<8x128xf32>
    %195 = vector.extract_strided_slice %176 {offsets = [0, 384], sizes = [8, 128], strides = [1, 1]} : vector<8x512xf32> to vector<8x128xf32>
    %cst_80 = arith.constant 5.000000e-01 : f32
    %196 = vector.broadcast %cst_80 : f32 to vector<8x128xf32>
    %197 = arith.mulf %196, %195 : vector<8x128xf32>
    %198 = math.tanh %197 : vector<8x128xf32>
    %cst_81 = arith.constant 1.000000e+00 : f32
    %199 = vector.broadcast %cst_81 : f32 to vector<8x128xf32>
    %200 = arith.addf %198, %199 : vector<8x128xf32>
    %cst_82 = arith.constant 5.000000e-01 : f32
    %201 = vector.broadcast %cst_82 : f32 to vector<8x128xf32>
    %202 = arith.mulf %201, %200 : vector<8x128xf32>
    %203 = arith.mulf %192, %166 : vector<8x128xf32>
    %204 = arith.mulf %184, %194 : vector<8x128xf32>
    %205 = arith.addf %203, %204 : vector<8x128xf32>
    %206 = math.tanh %205 : vector<8x128xf32>
    %207 = arith.mulf %202, %206 : vector<8x128xf32>
    %c5_i32 = arith.constant 5 : i32
    %c8_i32_83 = arith.constant 8 : i32
    %208 = arith.muli %c5_i32, %c8_i32_83 : i32
    %209 = tpu.assume_multiple %208, 8 : i32
    %210 = arith.index_cast %209 : i32 to index
    %c0_84 = arith.constant 0 : index
    %211 = vector.load %arg9[%210, %c0_84] : memref<64x512xf32, #tpu.memory_space<vmem>>, vector<8x512xf32>
    %212 = arith.truncf %207 : vector<8x128xf32> to vector<8x128xbf16>
    %c0_85 = arith.constant 0 : index
    %c0_86 = arith.constant 0 : index
    %213 = vector.load %arg4[%c0_85, %c0_86] : memref<128x512xbf16, #tpu.memory_space<vmem>>, vector<128x512xbf16>
    %cst_87 = arith.constant dense<0.000000e+00> : vector<8x512xf32>
    %214 = tpu.matmul %212, %213, %cst_87 {dimension_numbers = #tpu.dot_dimension_numbers<[1], [0], [0], [1], [0, 0, 1, 1], [], []>} : vector<8x128xbf16>, vector<128x512xbf16>, vector<8x512xf32> -> vector<8x512xf32>
    %215 = arith.addf %211, %214 : vector<8x512xf32>
    %216 = vector.extract_strided_slice %215 {offsets = [0, 0], sizes = [8, 128], strides = [1, 1]} : vector<8x512xf32> to vector<8x128xf32>
    %cst_88 = arith.constant 5.000000e-01 : f32
    %217 = vector.broadcast %cst_88 : f32 to vector<8x128xf32>
    %218 = arith.mulf %217, %216 : vector<8x128xf32>
    %219 = math.tanh %218 : vector<8x128xf32>
    %cst_89 = arith.constant 1.000000e+00 : f32
    %220 = vector.broadcast %cst_89 : f32 to vector<8x128xf32>
    %221 = arith.addf %219, %220 : vector<8x128xf32>
    %cst_90 = arith.constant 5.000000e-01 : f32
    %222 = vector.broadcast %cst_90 : f32 to vector<8x128xf32>
    %223 = arith.mulf %222, %221 : vector<8x128xf32>
    %224 = vector.extract_strided_slice %215 {offsets = [0, 128], sizes = [8, 128], strides = [1, 1]} : vector<8x512xf32> to vector<8x128xf32>
    %cst_91 = arith.constant 5.000000e-01 : f32
    %225 = vector.broadcast %cst_91 : f32 to vector<8x128xf32>
    %226 = arith.mulf %225, %224 : vector<8x128xf32>
    %227 = math.tanh %226 : vector<8x128xf32>
    %cst_92 = arith.constant 1.000000e+00 : f32
    %228 = vector.broadcast %cst_92 : f32 to vector<8x128xf32>
    %229 = arith.addf %227, %228 : vector<8x128xf32>
    %cst_93 = arith.constant 5.000000e-01 : f32
    %230 = vector.broadcast %cst_93 : f32 to vector<8x128xf32>
    %231 = arith.mulf %230, %229 : vector<8x128xf32>
    %232 = vector.extract_strided_slice %215 {offsets = [0, 256], sizes = [8, 128], strides = [1, 1]} : vector<8x512xf32> to vector<8x128xf32>
    %233 = math.tanh %232 : vector<8x128xf32>
    %234 = vector.extract_strided_slice %215 {offsets = [0, 384], sizes = [8, 128], strides = [1, 1]} : vector<8x512xf32> to vector<8x128xf32>
    %cst_94 = arith.constant 5.000000e-01 : f32
    %235 = vector.broadcast %cst_94 : f32 to vector<8x128xf32>
    %236 = arith.mulf %235, %234 : vector<8x128xf32>
    %237 = math.tanh %236 : vector<8x128xf32>
    %cst_95 = arith.constant 1.000000e+00 : f32
    %238 = vector.broadcast %cst_95 : f32 to vector<8x128xf32>
    %239 = arith.addf %237, %238 : vector<8x128xf32>
    %cst_96 = arith.constant 5.000000e-01 : f32
    %240 = vector.broadcast %cst_96 : f32 to vector<8x128xf32>
    %241 = arith.mulf %240, %239 : vector<8x128xf32>
    %242 = arith.mulf %231, %205 : vector<8x128xf32>
    %243 = arith.mulf %223, %233 : vector<8x128xf32>
    %244 = arith.addf %242, %243 : vector<8x128xf32>
    %245 = math.tanh %244 : vector<8x128xf32>
    %246 = arith.mulf %241, %245 : vector<8x128xf32>
    %c6_i32 = arith.constant 6 : i32
    %c8_i32_97 = arith.constant 8 : i32
    %247 = arith.muli %c6_i32, %c8_i32_97 : i32
    %248 = tpu.assume_multiple %247, 8 : i32
    %249 = arith.index_cast %248 : i32 to index
    %c0_98 = arith.constant 0 : index
    %250 = vector.load %arg9[%249, %c0_98] : memref<64x512xf32, #tpu.memory_space<vmem>>, vector<8x512xf32>
    %251 = arith.truncf %246 : vector<8x128xf32> to vector<8x128xbf16>
    %c0_99 = arith.constant 0 : index
    %c0_100 = arith.constant 0 : index
    %252 = vector.load %arg4[%c0_99, %c0_100] : memref<128x512xbf16, #tpu.memory_space<vmem>>, vector<128x512xbf16>
    %cst_101 = arith.constant dense<0.000000e+00> : vector<8x512xf32>
    %253 = tpu.matmul %251, %252, %cst_101 {dimension_numbers = #tpu.dot_dimension_numbers<[1], [0], [0], [1], [0, 0, 1, 1], [], []>} : vector<8x128xbf16>, vector<128x512xbf16>, vector<8x512xf32> -> vector<8x512xf32>
    %254 = arith.addf %250, %253 : vector<8x512xf32>
    %255 = vector.extract_strided_slice %254 {offsets = [0, 0], sizes = [8, 128], strides = [1, 1]} : vector<8x512xf32> to vector<8x128xf32>
    %cst_102 = arith.constant 5.000000e-01 : f32
    %256 = vector.broadcast %cst_102 : f32 to vector<8x128xf32>
    %257 = arith.mulf %256, %255 : vector<8x128xf32>
    %258 = math.tanh %257 : vector<8x128xf32>
    %cst_103 = arith.constant 1.000000e+00 : f32
    %259 = vector.broadcast %cst_103 : f32 to vector<8x128xf32>
    %260 = arith.addf %258, %259 : vector<8x128xf32>
    %cst_104 = arith.constant 5.000000e-01 : f32
    %261 = vector.broadcast %cst_104 : f32 to vector<8x128xf32>
    %262 = arith.mulf %261, %260 : vector<8x128xf32>
    %263 = vector.extract_strided_slice %254 {offsets = [0, 128], sizes = [8, 128], strides = [1, 1]} : vector<8x512xf32> to vector<8x128xf32>
    %cst_105 = arith.constant 5.000000e-01 : f32
    %264 = vector.broadcast %cst_105 : f32 to vector<8x128xf32>
    %265 = arith.mulf %264, %263 : vector<8x128xf32>
    %266 = math.tanh %265 : vector<8x128xf32>
    %cst_106 = arith.constant 1.000000e+00 : f32
    %267 = vector.broadcast %cst_106 : f32 to vector<8x128xf32>
    %268 = arith.addf %266, %267 : vector<8x128xf32>
    %cst_107 = arith.constant 5.000000e-01 : f32
    %269 = vector.broadcast %cst_107 : f32 to vector<8x128xf32>
    %270 = arith.mulf %269, %268 : vector<8x128xf32>
    %271 = vector.extract_strided_slice %254 {offsets = [0, 256], sizes = [8, 128], strides = [1, 1]} : vector<8x512xf32> to vector<8x128xf32>
    %272 = math.tanh %271 : vector<8x128xf32>
    %273 = vector.extract_strided_slice %254 {offsets = [0, 384], sizes = [8, 128], strides = [1, 1]} : vector<8x512xf32> to vector<8x128xf32>
    %cst_108 = arith.constant 5.000000e-01 : f32
    %274 = vector.broadcast %cst_108 : f32 to vector<8x128xf32>
    %275 = arith.mulf %274, %273 : vector<8x128xf32>
    %276 = math.tanh %275 : vector<8x128xf32>
    %cst_109 = arith.constant 1.000000e+00 : f32
    %277 = vector.broadcast %cst_109 : f32 to vector<8x128xf32>
    %278 = arith.addf %276, %277 : vector<8x128xf32>
    %cst_110 = arith.constant 5.000000e-01 : f32
    %279 = vector.broadcast %cst_110 : f32 to vector<8x128xf32>
    %280 = arith.mulf %279, %278 : vector<8x128xf32>
    %281 = arith.mulf %270, %244 : vector<8x128xf32>
    %282 = arith.mulf %262, %272 : vector<8x128xf32>
    %283 = arith.addf %281, %282 : vector<8x128xf32>
    %284 = math.tanh %283 : vector<8x128xf32>
    %285 = arith.mulf %280, %284 : vector<8x128xf32>
    %c7_i32 = arith.constant 7 : i32
    %c8_i32_111 = arith.constant 8 : i32
    %286 = arith.muli %c7_i32, %c8_i32_111 : i32
    %287 = tpu.assume_multiple %286, 8 : i32
    %288 = arith.index_cast %287 : i32 to index
    %c0_112 = arith.constant 0 : index
    %289 = vector.load %arg9[%288, %c0_112] : memref<64x512xf32, #tpu.memory_space<vmem>>, vector<8x512xf32>
    %290 = arith.truncf %285 : vector<8x128xf32> to vector<8x128xbf16>
    %c0_113 = arith.constant 0 : index
    %c0_114 = arith.constant 0 : index
    %291 = vector.load %arg4[%c0_113, %c0_114] : memref<128x512xbf16, #tpu.memory_space<vmem>>, vector<128x512xbf16>
    %cst_115 = arith.constant dense<0.000000e+00> : vector<8x512xf32>
    %292 = tpu.matmul %290, %291, %cst_115 {dimension_numbers = #tpu.dot_dimension_numbers<[1], [0], [0], [1], [0, 0, 1, 1], [], []>} : vector<8x128xbf16>, vector<128x512xbf16>, vector<8x512xf32> -> vector<8x512xf32>
    %293 = arith.addf %289, %292 : vector<8x512xf32>
    %294 = vector.extract_strided_slice %293 {offsets = [0, 0], sizes = [8, 128], strides = [1, 1]} : vector<8x512xf32> to vector<8x128xf32>
    %cst_116 = arith.constant 5.000000e-01 : f32
    %295 = vector.broadcast %cst_116 : f32 to vector<8x128xf32>
    %296 = arith.mulf %295, %294 : vector<8x128xf32>
    %297 = math.tanh %296 : vector<8x128xf32>
    %cst_117 = arith.constant 1.000000e+00 : f32
    %298 = vector.broadcast %cst_117 : f32 to vector<8x128xf32>
    %299 = arith.addf %297, %298 : vector<8x128xf32>
    %cst_118 = arith.constant 5.000000e-01 : f32
    %300 = vector.broadcast %cst_118 : f32 to vector<8x128xf32>
    %301 = arith.mulf %300, %299 : vector<8x128xf32>
    %302 = vector.extract_strided_slice %293 {offsets = [0, 128], sizes = [8, 128], strides = [1, 1]} : vector<8x512xf32> to vector<8x128xf32>
    %cst_119 = arith.constant 5.000000e-01 : f32
    %303 = vector.broadcast %cst_119 : f32 to vector<8x128xf32>
    %304 = arith.mulf %303, %302 : vector<8x128xf32>
    %305 = math.tanh %304 : vector<8x128xf32>
    %cst_120 = arith.constant 1.000000e+00 : f32
    %306 = vector.broadcast %cst_120 : f32 to vector<8x128xf32>
    %307 = arith.addf %305, %306 : vector<8x128xf32>
    %cst_121 = arith.constant 5.000000e-01 : f32
    %308 = vector.broadcast %cst_121 : f32 to vector<8x128xf32>
    %309 = arith.mulf %308, %307 : vector<8x128xf32>
    %310 = vector.extract_strided_slice %293 {offsets = [0, 256], sizes = [8, 128], strides = [1, 1]} : vector<8x512xf32> to vector<8x128xf32>
    %311 = math.tanh %310 : vector<8x128xf32>
    %312 = vector.extract_strided_slice %293 {offsets = [0, 384], sizes = [8, 128], strides = [1, 1]} : vector<8x512xf32> to vector<8x128xf32>
    %cst_122 = arith.constant 5.000000e-01 : f32
    %313 = vector.broadcast %cst_122 : f32 to vector<8x128xf32>
    %314 = arith.mulf %313, %312 : vector<8x128xf32>
    %315 = math.tanh %314 : vector<8x128xf32>
    %cst_123 = arith.constant 1.000000e+00 : f32
    %316 = vector.broadcast %cst_123 : f32 to vector<8x128xf32>
    %317 = arith.addf %315, %316 : vector<8x128xf32>
    %cst_124 = arith.constant 5.000000e-01 : f32
    %318 = vector.broadcast %cst_124 : f32 to vector<8x128xf32>
    %319 = arith.mulf %318, %317 : vector<8x128xf32>
    %320 = arith.mulf %309, %283 : vector<8x128xf32>
    %321 = arith.mulf %301, %311 : vector<8x128xf32>
    %322 = arith.addf %320, %321 : vector<8x128xf32>
    %323 = math.tanh %322 : vector<8x128xf32>
    %324 = arith.mulf %319, %323 : vector<8x128xf32>
    %c8_i32_125 = arith.constant 8 : i32
    %c0_126 = arith.constant 0 : index
    %c0_127 = arith.constant 0 : index
    %325 = vector.load %arg10[%c0_126, %c0_127] : memref<8x128xf32, #tpu.memory_space<vmem>>, vector<8x128xf32>
    tpu.vector_store %arg10[%c0_126, %c0_127], %324 {strides = array<i32>} : memref<8x128xf32, #tpu.memory_space<vmem>>, vector<8x128xf32>,
    %c0_128 = arith.constant 0 : index
    %c0_129 = arith.constant 0 : index
    %326 = vector.load %arg11[%c0_128, %c0_129] : memref<8x128xf32, #tpu.memory_space<vmem>>, vector<8x128xf32>
    tpu.vector_store %arg11[%c0_128, %c0_129], %322 {strides = array<i32>} : memref<8x128xf32, #tpu.memory_space<vmem>>, vector<8x128xf32>,
    %c0_i32_130 = arith.constant 0 : i32
    %327 = arith.cmpi eq, %arg1, %c0_i32_130 : i32
    %328 = arith.extui %327 : i1 to i32
    %c0_i32_131 = arith.constant 0 : i32
    %329 = arith.cmpi ne, %328, %c0_i32_131 : i32
    scf.if %329 {
      %330 = arith.truncf %324 : vector<8x128xf32> to vector<8x128xbf16>
      %c0_132 = arith.constant 0 : index
      %c0_133 = arith.constant 0 : index
      %331 = vector.load %arg6[%c0_132, %c0_133] : memref<128x128xbf16, #tpu.memory_space<vmem>>, vector<128x128xbf16>
      %cst_134 = arith.constant dense<0.000000e+00> : vector<8x128xf32>
      %332 = tpu.matmul %330, %331, %cst_134 {dimension_numbers = #tpu.dot_dimension_numbers<[1], [0], [0], [1], [0, 0, 1, 1], [], []>} : vector<8x128xbf16>, vector<128x128xbf16>, vector<8x128xf32> -> vector<8x128xf32>
      %c0_135 = arith.constant 0 : index
      %c0_136 = arith.constant 0 : index
      %333 = vector.load %arg7[%c0_135, %c0_136] : memref<1x128xf32, #tpu.memory_space<vmem>>, vector<1x128xf32>
      %334 = vector.broadcast %333 : vector<1x128xf32> to vector<8x128xf32>
      %335 = arith.addf %332, %334 : vector<8x128xf32>
      %c0_137 = arith.constant 0 : index
      %c0_138 = arith.constant 0 : index
      %336 = vector.load %arg8[%c0_137, %c0_138] : memref<8x128xf32, #tpu.memory_space<vmem>>, vector<8x128xf32>
      tpu.vector_store %arg8[%c0_137, %c0_138], %335 {strides = array<i32>} : memref<8x128xf32, #tpu.memory_space<vmem>>, vector<8x128xf32>,
    } else {
    }
    return
  }
  func.func @transform_0(%arg0: i32, %arg1: i32) -> (i32, i32, i32) {
    %c0_i32 = arith.constant 0 : i32
    %c0_i32_0 = arith.constant 0 : i32
    return %arg0, %arg1, %c0_i32 : i32, i32, i32
  }
  func.func @transform_1(%arg0: i32, %arg1: i32) -> (i32, i32) {
    %c0_i32 = arith.constant 0 : i32
    %c0_i32_0 = arith.constant 0 : i32
    %c0_i32_1 = arith.constant 0 : i32
    return %c0_i32, %c0_i32_0 : i32, i32
  }
  func.func @transform_2(%arg0: i32, %arg1: i32) -> (i32, i32) {
    %c0_i32 = arith.constant 0 : i32
    %c0_i32_0 = arith.constant 0 : i32
    %c0_i32_1 = arith.constant 0 : i32
    return %c0_i32, %c0_i32_0 : i32, i32
  }
  func.func @transform_3(%arg0: i32, %arg1: i32) -> (i32, i32) {
    %c0_i32 = arith.constant 0 : i32
    %c0_i32_0 = arith.constant 0 : i32
    %c0_i32_1 = arith.constant 0 : i32
    return %c0_i32, %c0_i32_0 : i32, i32
  }
  func.func @transform_4(%arg0: i32, %arg1: i32) -> (i32, i32) {
    %c0_i32 = arith.constant 0 : i32
    %c0_i32_0 = arith.constant 0 : i32
    %c0_i32_1 = arith.constant 0 : i32
    return %c0_i32, %c0_i32_0 : i32, i32
  }
  func.func @transform_5(%arg0: i32, %arg1: i32) -> (i32, i32) {
    %c0_i32 = arith.constant 0 : i32
    %c0_i32_0 = arith.constant 0 : i32
    %c0_i32_1 = arith.constant 0 : i32
    return %c0_i32, %c0_i32_0 : i32, i32
  }
  func.func @transform_6(%arg0: i32, %arg1: i32) -> (i32, i32) {
    %c0_i32 = arith.constant 0 : i32
    %c0_i32_0 = arith.constant 0 : i32
    return %arg0, %c0_i32 : i32, i32
  }
}

</mosaic_0001>

<bundles_post_ra>
// kernel: tpu_custom_call.1
= control target key start
LH: loop header
LB: loop body
LE: loop exit
PB: predicated region body
PF: predicated region fallthrough
CT: control target
= control target key end

     0   :  { %11 = vsyncpa [#allocation6], 0  ;;  %s2251_s0 = inlined_call_operand.vmem [shape: bf16[1,64,16], index: 0, kind: input, shape index: {}]   ;;  %s2252_s1 = inlined_call_operand.vmem [shape: bf16[16,512], index: 1, kind: input, shape index: {}]   ;;  %s2253_s2 = inlined_call_operand.hbm [shape: bf16[128,512], index: 2, kind: input, shape index: {}]   ;;  %s2254_s3 = inlined_call_operand.vmem [shape: f32[1,512], index: 3, kind: input, shape index: {}]   ;;  %s2255_s4 = inlined_call_operand.hbm [shape: bf16[128,128], index: 4, kind: input, shape index: {}]   ;;  %s2256_s5 = inlined_call_operand.vmem [shape: f32[1,128], index: 5, kind: input, shape index: {}]   ;;  %s2257_s6 = inlined_call_operand.hbm [shape: f32[8,128], index: 6, kind: output, shape index: {}]  }
   0x1   :  { %12 = vsyncpa [#allocation9], 0 }
   0x2   :  { %13 = vsyncpa [#allocation7], 0  ;;  %s22_s23 = sshll.u32 %s2253_s2, 4  ;;  %s1673_s24 = smov [#allocation5]   ;;  %s23_s23 = int_to_ptr.hbm [resolvable:$true] %s22_s23 }
   0x3   :  { %s24_s25 = sshll.u32 %s1673_s24, 4  ;;  %s37_s28 = sshll.u32 %s2255_s4, 4  ;;  %s25_s25 = int_to_ptr.vmem [resolvable:$true] %s24_s25  ;;  %s38_s28 = int_to_ptr.hbm [resolvable:$true] %s37_s28 }
   0x4   :  { %s1674_s29 = smov 256   ;;  %s1675_s30 = smov 16  }
   0x5   :  { %30 = dma.hbm_to_vmem [thread:$0]  %s23_s23, 4096, %s25_s25, [#allocation6], %s1674_s29, %s1674_s29, %s1675_s30  }
   0x6   :  { %s1676_s7 = smov [#allocation8]   ;;  %s1677_s9 = smov 64  }
   0x7   :  { %s39_s8 = sshll.u32 %s1676_s7, 4  ;;  %s1678_s10 = smov 4   ;;  %s40_s8 = int_to_ptr.vmem [resolvable:$true] %s39_s8 }
   0x8   :  { %45 = dma.hbm_to_vmem [thread:$0]  %s38_s28, 1024, %s40_s8, [#allocation9], %s1677_s9, %s1677_s9, %s1678_s10  }
   0x9   :  { %1667 = dma.done.wait [#allocation6], 4096  }
   0xa   :  { %1668 = vsyncadd [#allocation6], 4294963200 }
   0xb   :  { %1669 = dma.done.wait [#allocation9], 1024  }
   0xc   :  { %1670 = vsyncadd [#allocation9], 4294966272  ;;  %v1267_v0 = vld [vmem:[%s2252_s1] sm:$0xf]  ;;  %v1463_v1 = vld [vmem:[%s2252_s1 + $0xc] sm:$0xf0] }
   0xd   :  { %v1275_v2 = vld [vmem:[%s2252_s1 + $0x8] sm:$0xf]  ;;  %v1268_v3 = vor.u32 %v1463_v1, %v1267_v0  ;;  %v1464_v4 = vld [vmem:[%s2252_s1 + $0x14] sm:$0xf0]  ;;  %v1462_v5 = vld [vmem:[%s2252_s1 + $0xc] sm:$0xf] }
   0xe   :  { %v1277_v6 = vld [vmem:[%s2252_s1 + $0x18] sm:$0xf0]  ;;  %v1276_v7 = vor.u32 %v1464_v4, %v1275_v2  ;;  %v1743_v9 = vld [vmem:[%s2251_s0] sm:$0xff]  ;;  %vm125_vm0 = vcmask 130048   ;;  %v1269_v12 = vld [vmem:[%s2252_s1 + $0x10] sm:$0xf0] }
   0xf   :  { %v1280_v8 = vor.u32 %v1462_v5, %v1277_v6  ;;  %v1748_v10 = vld [vmem:[%s2251_s0 + $0x18] sm:$0xff]  ;;  %v1461_v11 = vld [vmem:[%s2252_s1 + $0x4] sm:$0xf]  ;;  %145 = vmatpush.bf16.msra.mxu0 %v1268_v3  ;;  %1505 = vmatpush.bf16.msra.mxu1 %v1268_v3  ;;  %v1413_v15 = vld [vmem:[#allocation5 + $0xf0] sm:$0xf0]  ;;  %s1680_s10 = smov [#allocation10]  }
  0x10   :  { %v1493_v13 = vld [vmem:[#allocation5 + $0xe4] sm:$0xf]  ;;  %203 = vmatpush.bf16.msra.mxu2 %v1276_v7  ;;  %v1272_v14 = vor.u32 %v1461_v11, %v1269_v12  ;;  %v1419_v16 = vld [vmem:[#allocation5 + $0xe8] sm:$0xf]  ;;  %v1496_v17 = vld [vmem:[#allocation5 + $0xf4] sm:$0xf0] }
  0x11   :  { %232 = vmatpush.bf16.msra.mxu3 %v1280_v8  ;;  %v1756_v18 = vor.u32 %v1493_v13, %v1413_v15  ;;  %v1758_v19 = vor.u32 %v1496_v17, %v1419_v16  ;;  %v1411_v20 = vld [vmem:[#allocation5 + $0xe0] sm:$0xf]  ;;  %v1495_v21 = vld [vmem:[#allocation5 + $0xec] sm:$0xf0]  ;;  %v1494_v25 = vld [vmem:[#allocation5 + $0xec] sm:$0xf] }
  0x12   :  { %v1395_v22 = vld [vmem:[#allocation5 + $0xc0] sm:$0xf]  ;;  %1281 = vmatmul.msk.bf16.vlgmr.msra.gmra.mxu0 %vm125_vm0, %v1743_v9  ;;  %1284 = vmatmul.msk.bf16.vlgmr.msra.gmra.mxu1 %vm125_vm0, %v1748_v10  ;;  %v1764_v23 = vor.u32 %v1495_v21, %v1411_v20  ;;  %v1491_v24 = vld [vmem:[#allocation5 + $0xcc] sm:$0xf0]  ;;  %v1421_v26 = vld [vmem:[#allocation5 + $0xf8] sm:$0xf0] }
  0x13   :  { %174 = vmatpush.bf16.msrb.mxu1 %v1272_v14  ;;  %1289 = vmatmul.msk.bf16.vlgmr.msra.gmra.mxu2 %vm125_vm0, %v1743_v9  ;;  %v1768_v27 = vor.u32 %v1494_v25, %v1421_v26  ;;  %v1489_v28 = vld [vmem:[#allocation5 + $0xc4] sm:$0xf]  ;;  %v1397_v29 = vld [vmem:[#allocation5 + $0xd0] sm:$0xf0]  ;;  %v1403_v30 = vld [vmem:[#allocation5 + $0xc8] sm:$0xf]  ;;  %v1777_v33 = vor.u32 %v1491_v24, %v1395_v22 }
  0x14   :  { %1293 = vmatmul.msk.bf16.vlgmr.msra.gmra.mxu3 %vm125_vm0, %v1743_v9  ;;  %v1773_v31 = vor.u32 %v1489_v28, %v1397_v29  ;;  %v1492_v32 = vld [vmem:[#allocation5 + $0xd4] sm:$0xf0]  ;;  %514 = vmatpush.bf16.msrb.mxu2 %v1758_v19  ;;  %v1379_v35 = vld [vmem:[#allocation5 + $0xa0] sm:$0xf]  ;;  %v1490_v36 = vld [vmem:[#allocation5 + $0xcc] sm:$0xf] }
  0x15   :  { %488 = vmatpush.bf16.msrb.mxu0 %v1764_v23  ;;  %v1779_v34 = vor.u32 %v1492_v32, %v1403_v30  ;;  %527 = vmatpush.bf16.msrb.mxu3 %v1768_v27  ;;  %v1487_v37 = vld [vmem:[#allocation5 + $0xac] sm:$0xf0]  ;;  %v1405_v38 = vld [vmem:[#allocation5 + $0xd8] sm:$0xf0]  ;;  %v1485_v39 = vld [vmem:[#allocation5 + $0xa4] sm:$0xf] }
  0x16   :  { %v1782_v40 = vor.u32 %v1490_v36, %v1405_v38  ;;  %v1381_v41 = vld [vmem:[#allocation5 + $0xb0] sm:$0xf0]  ;;  %v1387_v42 = vld [vmem:[#allocation5 + $0xa8] sm:$0xf]  ;;  %v1488_v43 = vld [vmem:[#allocation5 + $0xb4] sm:$0xf0]  ;;  %v1789_v46 = vor.u32 %v1487_v37, %v1379_v35 }
  0x17   :  { %501 = vmatpush.bf16.msra.mxu1 %v1756_v18  ;;  %v1363_v44 = vld [vmem:[#allocation5 + $0x80] sm:$0xf]  ;;  %v1785_v45 = vor.u32 %v1485_v39, %v1381_v41  ;;  %v1483_v47 = vld [vmem:[#allocation5 + $0x8c] sm:$0xf0]  ;;  %v1791_v48 = vor.u32 %v1488_v43, %v1387_v42  ;;  %v1486_v49 = vld [vmem:[#allocation5 + $0xac] sm:$0xf] }
  0x18   :  { %515 = vmatpush.bf16.msrb.mxu2 %v1779_v34  ;;  %v1389_v50 = vld [vmem:[#allocation5 + $0xb8] sm:$0xf0]  ;;  %v1481_v52 = vld [vmem:[#allocation5 + $0x84] sm:$0xf]  ;;  %v1365_v53 = vld [vmem:[#allocation5 + $0x90] sm:$0xf0]  ;;  %v1800_v58 = vor.u32 %v1483_v47, %v1363_v44 }
  0x19   :  { %489 = vmatpush.bf16.msrb.mxu0 %v1777_v33  ;;  %528 = vmatpush.bf16.msrb.mxu3 %v1782_v40  ;;  %v1794_v51 = vor.u32 %v1486_v49, %v1389_v50  ;;  %v1371_v54 = vld [vmem:[#allocation5 + $0x88] sm:$0xf]  ;;  %v1484_v55 = vld [vmem:[#allocation5 + $0x94] sm:$0xf0]  ;;  %v1797_v56 = vor.u32 %v1481_v52, %v1365_v53  ;;  %v1482_v57 = vld [vmem:[#allocation5 + $0x8c] sm:$0xf] }
  0x1a   :  { %v1803_v59 = vor.u32 %v1484_v55, %v1371_v54  ;;  %v1373_v60 = vld [vmem:[#allocation5 + $0x98] sm:$0xf0]  ;;  %v1808_v61 = vld [vmem:[%s2251_s0 + $0x8] sm:$0xff]  ;;  %v1347_v62 = vld [vmem:[#allocation5 + $0x60] sm:$0xf]  ;;  %s1229_s2 = sshll.u32 %s1680_s10, 4  ;;  %s1230_s2 = int_to_ptr.vmem [resolvable:$true] %s1229_s2 }
  0x1b   :  { %502 = vmatpush.bf16.msra.mxu1 %v1773_v31  ;;  %v1479_v63 = vld [vmem:[#allocation5 + $0x6c] sm:$0xf0]  ;;  %v1811_v0 = vor.u32 %v1482_v57, %v1373_v60  ;;  %v1331_v2 = vld [vmem:[#allocation5 + $0x40] sm:$0xf]  ;;  %v1355_v4 = vld [vmem:[#allocation5 + $0x68] sm:$0xf] }
  0x1c   :  { %516 = vmatpush.bf16.msrb.mxu2 %v1791_v48  ;;  %v1815_v1 = vor.u32 %v1479_v63, %v1347_v62  ;;  %v1475_v3 = vld [vmem:[#allocation5 + $0x4c] sm:$0xf0]  ;;  %v1480_v5 = vld [vmem:[#allocation5 + $0x74] sm:$0xf0]  ;;  %v1478_v6 = vld [vmem:[#allocation5 + $0x6c] sm:$0xf] }
  0x1d   :  { %490 = vmatpush.bf16.msrb.mxu0 %v1789_v46  ;;  %529 = vmatpush.bf16.msrb.mxu3 %v1794_v51  ;;  %v1825_v7 = vor.u32 %v1480_v5, %v1355_v4  ;;  %v1357_v8 = vld [vmem:[#allocation5 + $0x78] sm:$0xf0]  ;;  %v1315_v11 = vld [vmem:[#allocation5 + $0x20] sm:$0xf]  ;;  %v1471_v12 = vld [vmem:[#allocation5 + $0x2c] sm:$0xf0]  ;;  %v1832_v16 = vor.u32 %v1475_v3, %v1331_v2 }
  0x1e   :  { %v1477_v13 = vld [vmem:[#allocation5 + $0x64] sm:$0xf]  ;;  %v1349_v14 = vld [vmem:[#allocation5 + $0x70] sm:$0xf0]  ;;  %v1829_v15 = vor.u32 %v1478_v6, %v1357_v8  ;;  %v1476_v20 = vld [vmem:[#allocation5 + $0x54] sm:$0xf0]  ;;  %v1846_v37 = vor.u32 %v1471_v12, %v1315_v11 }
  0x1f   :  { %503 = vmatpush.bf16.msra.mxu1 %v1785_v45  ;;  %v1834_v17 = vor.u32 %v1477_v13, %v1349_v14  ;;  %v1474_v21 = vld [vmem:[#allocation5 + $0x4c] sm:$0xf]  ;;  %v1341_v22 = vld [vmem:[#allocation5 + $0x58] sm:$0xf0]  ;;  %v1473_v25 = vld [vmem:[#allocation5 + $0x44] sm:$0xf] }
  0x20   :  { %517 = vmatpush.bf16.msrb.mxu2 %v1803_v59  ;;  %v1333_v26 = vld [vmem:[#allocation5 + $0x50] sm:$0xf0]  ;;  %v1323_v28 = vld [vmem:[#allocation5 + $0x28] sm:$0xf]  ;;  %v1841_v29 = vor.u32 %v1474_v21, %v1341_v22  ;;  %v1472_v32 = vld [vmem:[#allocation5 + $0x34] sm:$0xf0] }
  0x21   :  { %491 = vmatpush.bf16.msrb.mxu0 %v1800_v58  ;;  %530 = vmatpush.bf16.msrb.mxu3 %v1811_v0  ;;  %v1843_v30 = vor.u32 %v1473_v25, %v1333_v26  ;;  %v1470_v35 = vld [vmem:[#allocation5 + $0x2c] sm:$0xf]  ;;  %v1325_v36 = vld [vmem:[#allocation5 + $0x38] sm:$0xf0]  ;;  %v1299_v38 = vld [vmem:[#allocation5] sm:$0xf]  ;;  %v1849_v39 = vor.u32 %v1472_v32, %v1323_v28 }
  0x22   :  { %1282 = vmatmul.msk.bf16.gmra.mxu0 %vm125_vm0, %v1808_v61  ;;  %1285 = vmatmul.msk.bf16.vlgmr.msrb.gmra.mxu1 %vm125_vm0, %v1743_v9  ;;  %v1339_v9 = vld [vmem:[#allocation5 + $0x48] sm:$0xf]  ;;  %v1467_v41 = vld [vmem:[#allocation5 + $0xc] sm:$0xf0]  ;;  %v1468_v43 = vld [vmem:[#allocation5 + $0x14] sm:$0xf0]  ;;  %v1853_v44 = vor.u32 %v1470_v35, %v1325_v36 }
  0x23   :  { %504 = vmatpush.bf16.msra.mxu1 %v1797_v56  ;;  %1290 = vmatmul.msk.bf16.gmra.mxu2 %vm125_vm0, %v1808_v61  ;;  %v1837_v24 = vor.u32 %v1476_v20, %v1339_v9  ;;  %v1307_v42 = vld [vmem:[#allocation5 + $0x8] sm:$0xf]  ;;  %v1466_v47 = vld [vmem:[#allocation5 + $0xc] sm:$0xf]  ;;  %v1309_v49 = vld [vmem:[#allocation5 + $0x18] sm:$0xf0]  ;;  %v1856_v50 = vor.u32 %v1467_v41, %v1299_v38 }
  0x24   :  { %1294 = vmatmul.msk.bf16.gmra.mxu3 %vm125_vm0, %v1808_v61  ;;  %518 = vmatpush.bf16.msrb.mxu2 %v1825_v7  ;;  %v1859_v52 = vor.u32 %v1468_v43, %v1307_v42  ;;  %v1459_v53 = vld [vmem:[%s2251_s0 + $0x10] sm:$0xff]  ;;  %v1865_v54 = vor.u32 %v1466_v47, %v1309_v49  ;;  %v1469_v55 = vld [vmem:[#allocation5 + $0x24] sm:$0xf]  ;;  %s1231_s4 = sshll.u32 %s2257_s6, 4  ;;  %s1232_s4 = int_to_ptr.hbm [resolvable:$true] %s1231_s4 }
  0x25   :  { %492 = vmatpush.bf16.msrb.mxu0 %v1815_v1  ;;  %531 = vmatpush.bf16.msrb.mxu3 %v1829_v15  ;;  %v1317_v57 = vld [vmem:[#allocation5 + $0x30] sm:$0xf0]  ;;  %v1465_v62 = vld [vmem:[#allocation5 + $0x4] sm:$0xf] }
  0x26   :  { %v1874_v60 = vor.u32 %v1469_v55, %v1317_v57  ;;  %v1301_v63 = vld [vmem:[#allocation5 + $0x10] sm:$0xf0] }
  0x27   :  { %505 = vmatpush.bf16.msra.mxu1 %v1834_v17  ;;  %v1879_v2 = vor.u32 %v1465_v62, %v1301_v63 }
  0x28   :  { %519 = vmatpush.bf16.msrb.mxu2 %v1837_v24 }
  0x29   :  { %493 = vmatpush.bf16.msrb.mxu0 %v1832_v16  ;;  %532 = vmatpush.bf16.msrb.mxu3 %v1841_v29 }
  0x2b   :  { %506 = vmatpush.bf16.msra.mxu1 %v1843_v30 }
  0x2c   :  { %520 = vmatpush.bf16.msrb.mxu2 %v1849_v39 }
  0x2d   :  { %494 = vmatpush.bf16.msrb.mxu0 %v1846_v37  ;;  %533 = vmatpush.bf16.msrb.mxu3 %v1853_v44 }
  0x2f   :  { %507 = vmatpush.bf16.msra.mxu1 %v1874_v60 }
  0x30   :  { %521 = vmatpush.bf16.msrb.mxu2 %v1859_v52 }
  0x31   :  { %495 = vmatpush.bf16.msrb.mxu0 %v1856_v50  ;;  %534 = vmatpush.bf16.msrb.mxu3 %v1865_v54 }
  0x32   :  { %1283 = vmatmul.msk.bf16.gmra.mxu0 %vm125_vm0, %v1459_v53  ;;  %1286 = vmatmul.msk.bf16.gmra.mxu1 %vm125_vm0, %v1808_v61  ;;  %v1679_v61 = vmov 0.0|0.0  }
  0x33   :  { %1291 = vmatmul.msk.bf16.gmra.mxu2 %vm125_vm0, %v1459_v53  ;;  %508 = vmatpush.bf16.msra.mxu1 %v1879_v2 }
  0x34   :  { %1295 = vmatmul.msk.bf16.gmra.mxu3 %vm125_vm0, %v1459_v53  ;;  %596 = vmatpush.bf16.msra.mxu2 %v1758_v19 }
  0x35   :  { %570 = vmatpush.bf16.msra.mxu0 %v1764_v23  ;;  %609 = vmatpush.bf16.msra.mxu3 %v1768_v27 }
  0x37   :  { %583 = vmatpush.bf16.msrb.mxu1 %v1756_v18 }
  0x38   :  { %597 = vmatpush.bf16.msra.mxu2 %v1779_v34 }
  0x39   :  { %571 = vmatpush.bf16.msra.mxu0 %v1777_v33  ;;  %610 = vmatpush.bf16.msra.mxu3 %v1782_v40 }
  0x3b   :  { %584 = vmatpush.bf16.msrb.mxu1 %v1773_v31 }
  0x3c   :  { %598 = vmatpush.bf16.msra.mxu2 %v1791_v48 }
  0x3d   :  { %572 = vmatpush.bf16.msra.mxu0 %v1789_v46  ;;  %611 = vmatpush.bf16.msra.mxu3 %v1794_v51 }
  0x3f   :  { %585 = vmatpush.bf16.msrb.mxu1 %v1785_v45 }
  0x40   :  { %599 = vmatpush.bf16.msra.mxu2 %v1803_v59 }
  0x41   :  { %573 = vmatpush.bf16.msra.mxu0 %v1800_v58  ;;  %612 = vmatpush.bf16.msra.mxu3 %v1811_v0 }
  0x42   :  { %1287 = vmatmul.msk.bf16.gmra.mxu1 %vm125_vm0, %v1459_v53  ;;  %496 = vmatmul.bf16.vlgmr.msrb.gmra.mxu0 %v1679_v61 }
  0x43   :  { %1292 = vmatmul.msk.bf16.gmra.mxu2 %vm125_vm0, %v1748_v10  ;;  %586 = vmatpush.bf16.msrb.mxu1 %v1797_v56 }
  0x44   :  { %1296 = vmatmul.msk.bf16.gmra.mxu3 %vm125_vm0, %v1748_v10  ;;  %600 = vmatpush.bf16.msra.mxu2 %v1825_v7 }
  0x45   :  { %574 = vmatpush.bf16.msra.mxu0 %v1815_v1  ;;  %613 = vmatpush.bf16.msra.mxu3 %v1829_v15 }
  0x47   :  { %587 = vmatpush.bf16.msrb.mxu1 %v1834_v17 }
  0x48   :  { %601 = vmatpush.bf16.msra.mxu2 %v1837_v24 }
  0x49   :  { %575 = vmatpush.bf16.msra.mxu0 %v1832_v16  ;;  %614 = vmatpush.bf16.msra.mxu3 %v1841_v29 }
  0x4b   :  { %588 = vmatpush.bf16.msrb.mxu1 %v1843_v30 }
  0x4c   :  { %602 = vmatpush.bf16.msra.mxu2 %v1849_v39 }
  0x4d   :  { %576 = vmatpush.bf16.msra.mxu0 %v1846_v37  ;;  %615 = vmatpush.bf16.msra.mxu3 %v1853_v44 }
  0x4f   :  { %589 = vmatpush.bf16.msrb.mxu1 %v1874_v60 }
  0x50   :  { %603 = vmatpush.bf16.msra.mxu2 %v1859_v52 }
  0x51   :  { %577 = vmatpush.bf16.msra.mxu0 %v1856_v50  ;;  %616 = vmatpush.bf16.msra.mxu3 %v1865_v54 }
  0x52   :  { %1288 = vmatmul.msk.bf16.gmra.mxu1 %vm125_vm0, %v1748_v10  ;;  %v75_v10 = vld [vmem:[%s2254_s3] sm:$0xf] }
  0x53   :  { %522 = vmatmul.bf16.vlgmr.msrb.gmra.mxu2 %v1679_v61  ;;  %590 = vmatpush.bf16.msrb.mxu1 %v1879_v2  ;;  %v1955_v3 = vperm.slane %v75_v10, 0  ;;  %v79_v9 = vperm.slane %v75_v10, 2  ;;  %v1969_v20 = vperm.slane %v75_v10, 3  ;;  %v78_v38 = vperm.slane %v75_v10, 1 }
  0x54   :  { %535 = vmatmul.bf16.vlgmr.msrb.gmra.mxu3 %v1679_v61  ;;  %678 = vmatpush.bf16.msrb.mxu2 %v1758_v19 }
  0x55   :  { %652 = vmatpush.bf16.msrb.mxu0 %v1764_v23  ;;  %691 = vmatpush.bf16.msrb.mxu3 %v1768_v27  ;;  %2259 = vst [vmem:[#allocation14_spill] sm:$0xff] %v1955_v3 }
  0x58   :  { %679 = vmatpush.bf16.msrb.mxu2 %v1779_v34 }
  0x59   :  { %653 = vmatpush.bf16.msrb.mxu0 %v1777_v33  ;;  %692 = vmatpush.bf16.msrb.mxu3 %v1782_v40 }
  0x5c   :  { %680 = vmatpush.bf16.msrb.mxu2 %v1791_v48 }
  0x5d   :  { %654 = vmatpush.bf16.msrb.mxu0 %v1789_v46  ;;  %693 = vmatpush.bf16.msrb.mxu3 %v1794_v51 }
  0x60   :  { %681 = vmatpush.bf16.msrb.mxu2 %v1803_v59 }
  0x61   :  { %655 = vmatpush.bf16.msrb.mxu0 %v1800_v58  ;;  %694 = vmatpush.bf16.msrb.mxu3 %v1811_v0 }
  0x62   :  { %509 = vmatmul.bf16.vlgmr.msra.gmra.mxu1 %v1679_v61 }
  0x63   :  { %665 = vmatpush.bf16.msra.mxu1 %v1756_v18 }
  0x64   :  { %682 = vmatpush.bf16.msrb.mxu2 %v1825_v7 }
  0x65   :  { %656 = vmatpush.bf16.msrb.mxu0 %v1815_v1  ;;  %695 = vmatpush.bf16.msrb.mxu3 %v1829_v15 }
  0x67   :  { %666 = vmatpush.bf16.msra.mxu1 %v1773_v31 }
  0x68   :  { %683 = vmatpush.bf16.msrb.mxu2 %v1837_v24 }
  0x69   :  { %657 = vmatpush.bf16.msrb.mxu0 %v1832_v16  ;;  %696 = vmatpush.bf16.msrb.mxu3 %v1841_v29 }
  0x6b   :  { %667 = vmatpush.bf16.msra.mxu1 %v1785_v45 }
  0x6c   :  { %684 = vmatpush.bf16.msrb.mxu2 %v1849_v39 }
  0x6d   :  { %658 = vmatpush.bf16.msrb.mxu0 %v1846_v37  ;;  %697 = vmatpush.bf16.msrb.mxu3 %v1853_v44 }
  0x6f   :  { %668 = vmatpush.bf16.msra.mxu1 %v1797_v56 }
  0x70   :  { %685 = vmatpush.bf16.msrb.mxu2 %v1859_v52 }
  0x71   :  { %659 = vmatpush.bf16.msrb.mxu0 %v1856_v50  ;;  %698 = vmatpush.bf16.msrb.mxu3 %v1865_v54 }
  0x73   :  { %669 = vmatpush.bf16.msra.mxu1 %v1834_v17 }
  0x77   :  { %670 = vmatpush.bf16.msra.mxu1 %v1843_v30 }
  0x7b   :  { %671 = vmatpush.bf16.msra.mxu1 %v1874_v60 }
  0x7f   :  { %672 = vmatpush.bf16.msra.mxu1 %v1879_v2 }
  0x8f   :  { %v147_v4 = vpop.f32.mrf.mxu0  ;;  %v162_v5 = vpop.f32.mrf.mxu1 }
  0x90   :  { %v1958_v6 = vadd.f32 %v162_v5, %v1955_v3 }
  0x92   :  { %2260 = vst [vmem:[#allocation15_spill] sm:$0xff] %v1958_v6 }
  0x96   :  { %v1960_v8 = vpop.f32.mrf.mxu2 }
  0x97   :  { %v1962_v11 = vpop.f32.mrf.mxu3  ;;  %v149_v12 = vpop.f32.mrf.mxu0 }
  0x98   :  { %v1965_v13 = vadd.f32 %v149_v12, %v1955_v3  ;;  %v1967_v14 = vpop.f32.mrf.mxu1 }
  0x99   :  { %2261 = vst [vmem:[#allocation16_spill] sm:$0xff] %v1967_v14 }
  0x9e   :  { %v207_v21 = vpop.f32.mrf.mxu2 }
  0x9f   :  { %v1971_v22 = vadd.f32 %v207_v21, %v79_v9  ;;  %v236_v25 = vpop.f32.mrf.mxu3  ;;  %v152_v26 = vpop.f32.mrf.mxu0 }
  0xa0   :  { %v1974_v28 = vadd.f32 %v236_v25, %v1969_v20  ;;  %v1977_v32 = vadd.f32 %v152_v26, %v1955_v3  ;;  %v176_v35 = vpop.f32.mrf.mxu1 }
  0xa6   :  { %v210_v36 = vpop.f32.mrf.mxu2 }
  0xa7   :  { %v1979_v41 = vadd.f32 %v210_v36, %v79_v9  ;;  %v239_v42 = vpop.f32.mrf.mxu3  ;;  %v154_v43 = vpop.f32.mrf.mxu0 }
  0xa8   :  { %v1982_v47 = vadd.f32 %v239_v42, %v1969_v20  ;;  %v1985_v49 = vadd.f32 %v154_v43, %v1955_v3  ;;  %v178_v53 = vpop.f32.mrf.mxu1 }
  0xa9   :  { %v1987_v55 = vadd.f32 %v178_v53, %v78_v38 }
  0xae   :  { %v212_v57 = vpop.f32.mrf.mxu2 }
  0xaf   :  { %v1989_v62 = vadd.f32 %v212_v57, %v79_v9  ;;  %v241_v63 = vpop.f32.mrf.mxu3  ;;  %v157_v61 = vpop.f32.mrf.mxu0 }
  0xb0   :  { %v1992_v10 = vadd.f32 %v241_v63, %v1969_v20  ;;  %v1995_v5 = vadd.f32 %v157_v61, %v1955_v3  ;;  %v181_v12 = vpop.f32.mrf.mxu1 }
  0xb1   :  { %2262 = vst [vmem:[#allocation17_spill] sm:$0xff] %v1989_v62  ;;  %v1997_v21 = vadd.f32 %v181_v12, %v78_v38 }
  0xb2   :  { %2263 = vst [vmem:[#allocation18_spill] sm:$0xff] %v1992_v10 }
  0xb3   :  { %2264 = vst [vmem:[#allocation19_spill] sm:$0xff] %v1995_v5 }
  0xb6   :  { %v215_v25 = vpop.f32.mrf.mxu2 }
  0xb7   :  { %v1999_v26 = vadd.f32 %v215_v25, %v79_v9  ;;  %v244_v36 = vpop.f32.mrf.mxu3  ;;  %v159_v42 = vpop.f32.mrf.mxu0 }
  0xb8   :  { %v2002_v43 = vadd.f32 %v244_v36, %v1969_v20  ;;  %v2005_v53 = vadd.f32 %v159_v42, %v1955_v3  ;;  %v183_v57 = vpop.f32.mrf.mxu1  ;;  %v148_v36 = vadd.f32 %v147_v4, %v1955_v3 }
  0xb9   :  { %2265 = vst [vmem:[#allocation20_spill] sm:$0xff] %v1999_v26  ;;  %v2007_v63 = vadd.f32 %v183_v57, %v78_v38 }
  0xba   :  { %2266 = vst [vmem:[#allocation21_spill] sm:$0xff] %v2002_v43 }
  0xbb   :  { %2267 = vst [vmem:[#allocation22_spill] sm:$0xff] %v2005_v53 }
  0xbc   :  { %2268 = vst [vmem:[#allocation23_spill] sm:$0xff] %v2007_v63 }
  0xbe   :  { %v217_v14 = vpop.f32.mrf.mxu2 }
  0xbf   :  { %v2009_v61 = vadd.f32 %v217_v14, %v79_v9  ;;  %v246_v6 = vpop.f32.mrf.mxu3  ;;  %v497_v12 = vpop.f32.mrf.mxu0 }
  0xc0   :  { %v2012_v5 = vadd.f32 %v246_v6, %v1969_v20  ;;  %v186_v25 = vpop.f32.mrf.mxu1 }
  0xc1   :  { %2269 = vst [vmem:[#allocation24_spill] sm:$0xff] %v2009_v61  ;;  %v2014_v26 = vadd.f32 %v186_v25, %v78_v38  ;;  %v540_v61 = vadd.f32 %v497_v12, %v148_v36 }
  0xc2   :  { %2270 = vst [vmem:[#allocation25_spill] sm:$0xff] %v2012_v5 }
  0xc3   :  { %2271 = vst [vmem:[#allocation26_spill] sm:$0xff] %v2014_v26  ;;  %v544_v63 = vmul.f32 0.5, %v540_v61 }
  0xc5   :  { %1515 = vtanh.f32 %v544_v63 }
  0xc6   :  { %v220_v10 = vpop.f32.mrf.mxu2 }
  0xc7   :  { %v2017_v43 = vadd.f32 %v220_v10, %v79_v9  ;;  %v249_v42 = vpop.f32.mrf.mxu3  ;;  %v499_v53 = vpop.f32.mrf.mxu0 }
  0xc8   :  { %v2020_v57 = vadd.f32 %v249_v42, %v1969_v20  ;;  %v188_v14 = vpop.f32.mrf.mxu1  ;;  %v206_v53 = vadd.f32 %v1960_v8, %v79_v9  ;;  %v235_v8 = vadd.f32 %v1962_v11, %v1969_v20 }
  0xc9   :  { %2272 = vst [vmem:[#allocation27_spill] sm:$0xff] %v2017_v43  ;;  %v2022_v62 = vadd.f32 %v188_v14, %v78_v38 }
  0xca   :  { %2273 = vst [vmem:[#allocation28_spill] sm:$0xff] %v2020_v57 }
  0xcb   :  { %2274 = vst [vmem:[#allocation29_spill] sm:$0xff] %v2022_v62  ;;  %v1516_v3 = vpop.eup %1515 }
  0xcc   :  { %v546_v14 = vadd.f32 1.0, %v1516_v3 }
  0xce   :  { %v222_v6 = vpop.f32.mrf.mxu2 }
  0xcf   :  { %v2024_v5 = vadd.f32 %v222_v6, %v79_v9  ;;  %v251_v25 = vpop.f32.mrf.mxu3  ;;  %v547_v6 = vmul.f32 0.5, %v546_v14 }
  0xd0   :  { %v2027_v26 = vadd.f32 %v251_v25, %v1969_v20  ;;  %v191_v4 = vpop.f32.mrf.mxu1  ;;  %v177_v25 = vadd.f32 %v176_v35, %v78_v38 }
  0xd1   :  { %2275 = vst [vmem:[#allocation30_spill] sm:$0xff] %v2024_v5  ;;  %v2029_v10 = vadd.f32 %v191_v4, %v78_v38 }
  0xd2   :  { %2276 = vst [vmem:[#allocation31_spill] sm:$0xff] %v2027_v26 }
  0xd3   :  { %2277 = vst [vmem:[#allocation32_spill] sm:$0xff] %v2029_v10 }
  0xd6   :  { %v523_v42 = vpop.f32.mrf.mxu2 }
  0xd7   :  { %v542_v57 = vadd.f32 %v523_v42, %v206_v53  ;;  %v536_v12 = vpop.f32.mrf.mxu3 }
  0xd8   :  { %v193_v36 = vpop.f32.mrf.mxu1  ;;  %v543_v10 = vadd.f32 %v536_v12, %v235_v8 }
  0xd9   :  { %1517 = vtanh.f32 %v542_v57  ;;  %v2032_v61 = vadd.f32 %v193_v36, %v78_v38 }
  0xda   :  { %v553_v53 = vmul.f32 0.5, %v543_v10 }
  0xdb   :  { %2278 = vst [vmem:[#allocation33_spill] sm:$0xff] %v2032_v61 }
  0xde   :  { %v525_v5 = vpop.f32.mrf.mxu2 }
  0xdf   :  { %v1518_v43 = vpop.eup %1517  ;;  %v538_v26 = vpop.f32.mrf.mxu3 }
  0xe0   :  { %v558_v62 = vmul.f32 %v1518_v43, %v547_v6  ;;  %v510_v63 = vpop.f32.mrf.mxu1 }
  0xe1   :  { %v541_v4 = vadd.f32 %v510_v63, %v177_v25 }
  0xe3   :  { %v548_v9 = vmul.f32 0.5, %v541_v4 }
  0xe5   :  { %1519 = vtanh.f32 %v548_v9 }
  0xe6   :  { %1521 = vtanh.f32 %v553_v53 }
  0xe8   :  { %v512_v42 = vpop.f32.mrf.mxu1 }
  0xeb   :  { %v1520_v57 = vpop.eup %1519 }
  0xec   :  { %v550_v36 = vadd.f32 1.0, %v1520_v57  ;;  %v1522_v5 = vpop.eup %1521 }
  0xed   :  { %v555_v35 = vadd.f32 1.0, %v1522_v5 }
  0xee   :  { %v551_v3 = vmul.f32 0.5, %v550_v36 }
  0xef   :  { %v556_v38 = vmul.f32 0.5, %v555_v35 }
  0xf0   :  { %v557_v14 = vmul.f32 0.0, %v551_v3 }
  0xf2   :  { %v2036_v61 = vadd.f32 %v558_v62, %v557_v14 }
  0xf4   :  { %1523 = vtanh.f32 %v2036_v61 }
  0xfa   :  { %v1524_v26 = vpop.eup %1523 }
  0xfb   :  { %v561_v43 = vmul.f32 %v1524_v26, %v556_v38 }
  0xfd   :  { %v569_v11 = vpack.c.bf16 %v561_v43, %v561_v43 }
  0xff   :  { %578 = vmatmul.bf16.vlgmr.msra.gmra.mxu0 %v569_v11  ;;  %591 = vmatmul.bf16.vlgmr.msrb.gmra.mxu1 %v569_v11 }
 0x100   :  { %604 = vmatmul.bf16.vlgmr.msra.gmra.mxu2 %v569_v11  ;;  %617 = vmatmul.bf16.vlgmr.msra.gmra.mxu3 %v569_v11 }
 0x101   :  { %734 = vmatpush.bf16.msra.mxu0 %v1764_v23  ;;  %747 = vmatpush.bf16.msrb.mxu1 %v1756_v18 }
 0x102   :  { %760 = vmatpush.bf16.msra.mxu2 %v1758_v19  ;;  %773 = vmatpush.bf16.msra.mxu3 %v1768_v27 }
 0x105   :  { %735 = vmatpush.bf16.msra.mxu0 %v1777_v33  ;;  %748 = vmatpush.bf16.msrb.mxu1 %v1773_v31 }
 0x106   :  { %761 = vmatpush.bf16.msra.mxu2 %v1779_v34  ;;  %774 = vmatpush.bf16.msra.mxu3 %v1782_v40 }
 0x109   :  { %736 = vmatpush.bf16.msra.mxu0 %v1789_v46  ;;  %749 = vmatpush.bf16.msrb.mxu1 %v1785_v45 }
 0x10a   :  { %762 = vmatpush.bf16.msra.mxu2 %v1791_v48  ;;  %775 = vmatpush.bf16.msra.mxu3 %v1794_v51 }
 0x10d   :  { %737 = vmatpush.bf16.msra.mxu0 %v1800_v58  ;;  %750 = vmatpush.bf16.msrb.mxu1 %v1797_v56 }
 0x10e   :  { %763 = vmatpush.bf16.msra.mxu2 %v1803_v59  ;;  %776 = vmatpush.bf16.msra.mxu3 %v1811_v0 }
 0x111   :  { %738 = vmatpush.bf16.msra.mxu0 %v1815_v1  ;;  %751 = vmatpush.bf16.msrb.mxu1 %v1834_v17 }
 0x112   :  { %764 = vmatpush.bf16.msra.mxu2 %v1825_v7  ;;  %777 = vmatpush.bf16.msra.mxu3 %v1829_v15 }
 0x115   :  { %739 = vmatpush.bf16.msra.mxu0 %v1832_v16  ;;  %752 = vmatpush.bf16.msrb.mxu1 %v1843_v30 }
 0x116   :  { %765 = vmatpush.bf16.msra.mxu2 %v1837_v24  ;;  %778 = vmatpush.bf16.msra.mxu3 %v1841_v29 }
 0x119   :  { %740 = vmatpush.bf16.msra.mxu0 %v1846_v37  ;;  %753 = vmatpush.bf16.msrb.mxu1 %v1874_v60 }
 0x11a   :  { %766 = vmatpush.bf16.msra.mxu2 %v1849_v39  ;;  %779 = vmatpush.bf16.msra.mxu3 %v1853_v44 }
 0x11d   :  { %741 = vmatpush.bf16.msra.mxu0 %v1856_v50  ;;  %754 = vmatpush.bf16.msrb.mxu1 %v1879_v2 }
 0x11e   :  { %767 = vmatpush.bf16.msra.mxu2 %v1859_v52  ;;  %780 = vmatpush.bf16.msra.mxu3 %v1865_v54 }
 0x17c   :  { %v579_v20 = vpop.f32.mrf.mxu0  ;;  %v592_v62 = vpop.f32.mrf.mxu1 }
 0x17d   :  { %v622_v10 = vadd.f32 %v579_v20, %v1965_v13  ;;  %v623_v12 = vadd.f32 %v592_v62, %v1987_v55 }
 0x17f   :  { %v626_v6 = vmul.f32 0.5, %v622_v10  ;;  %v630_v25 = vmul.f32 0.5, %v623_v12 }
 0x181   :  { %1525 = vtanh.f32 %v626_v6 }
 0x182   :  { %1527 = vtanh.f32 %v630_v25 }
 0x183   :  { %v605_v63 = vpop.f32.mrf.mxu2  ;;  %v618_v4 = vpop.f32.mrf.mxu3 }
 0x184   :  { %v624_v8 = vadd.f32 %v605_v63, %v1971_v22  ;;  %v625_v9 = vadd.f32 %v618_v4, %v1974_v28  ;;  %v581_v53 = vpop.f32.mrf.mxu0  ;;  %v594_v42 = vpop.f32.mrf.mxu1 }
 0x186   :  { %1529 = vtanh.f32 %v624_v8  ;;  %v635_v57 = vmul.f32 0.5, %v625_v9 }
 0x187   :  { %v1526_v36 = vpop.eup %1525 }
 0x188   :  { %v1528_v3 = vpop.eup %1527  ;;  %v628_v14 = vadd.f32 1.0, %v1526_v36  ;;  %1531 = vtanh.f32 %v635_v57 }
 0x189   :  { %v632_v13 = vadd.f32 1.0, %v1528_v3 }
 0x18a   :  { %v629_v55 = vmul.f32 0.5, %v628_v14 }
 0x18b   :  { %v633_v5 = vmul.f32 0.5, %v632_v13  ;;  %v607_v35 = vpop.f32.mrf.mxu2  ;;  %v620_v38 = vpop.f32.mrf.mxu3 }
 0x18c   :  { %v1530_v26 = vpop.eup %1529 }
 0x18d   :  { %v639_v43 = vmul.f32 %v633_v5, %v2036_v61  ;;  %v640_v11 = vmul.f32 %v1530_v26, %v629_v55 }
 0x18e   :  { %v1532_v22 = vpop.eup %1531 }
 0x18f   :  { %v2076_v20 = vadd.f32 %v640_v11, %v639_v43  ;;  %v637_v28 = vadd.f32 1.0, %v1532_v22 }
 0x191   :  { %1533 = vtanh.f32 %v2076_v20  ;;  %v638_v62 = vmul.f32 0.5, %v637_v28 }
 0x197   :  { %v1534_v10 = vpop.eup %1533 }
 0x198   :  { %v643_v12 = vmul.f32 %v1534_v10, %v638_v62 }
 0x19a   :  { %v651_v6 = vpack.c.bf16 %v643_v12, %v643_v12 }
 0x19c   :  { %660 = vmatmul.bf16.vlgmr.msrb.gmra.mxu0 %v651_v6  ;;  %673 = vmatmul.bf16.vlgmr.msra.gmra.mxu1 %v651_v6 }
 0x19d   :  { %686 = vmatmul.bf16.vlgmr.msrb.gmra.mxu2 %v651_v6  ;;  %699 = vmatmul.bf16.vlgmr.msrb.gmra.mxu3 %v651_v6 }
 0x19e   :  { %816 = vmatpush.bf16.msrb.mxu0 %v1764_v23  ;;  %829 = vmatpush.bf16.msra.mxu1 %v1756_v18 }
 0x19f   :  { %842 = vmatpush.bf16.msrb.mxu2 %v1758_v19  ;;  %855 = vmatpush.bf16.msrb.mxu3 %v1768_v27 }
 0x1a2   :  { %817 = vmatpush.bf16.msrb.mxu0 %v1777_v33  ;;  %830 = vmatpush.bf16.msra.mxu1 %v1773_v31 }
 0x1a3   :  { %843 = vmatpush.bf16.msrb.mxu2 %v1779_v34  ;;  %856 = vmatpush.bf16.msrb.mxu3 %v1782_v40 }
 0x1a6   :  { %818 = vmatpush.bf16.msrb.mxu0 %v1789_v46  ;;  %831 = vmatpush.bf16.msra.mxu1 %v1785_v45 }
 0x1a7   :  { %844 = vmatpush.bf16.msrb.mxu2 %v1791_v48  ;;  %857 = vmatpush.bf16.msrb.mxu3 %v1794_v51 }
 0x1aa   :  { %819 = vmatpush.bf16.msrb.mxu0 %v1800_v58  ;;  %832 = vmatpush.bf16.msra.mxu1 %v1797_v56 }
 0x1ab   :  { %845 = vmatpush.bf16.msrb.mxu2 %v1803_v59  ;;  %858 = vmatpush.bf16.msrb.mxu3 %v1811_v0 }
 0x1ae   :  { %820 = vmatpush.bf16.msrb.mxu0 %v1815_v1  ;;  %833 = vmatpush.bf16.msra.mxu1 %v1834_v17 }
 0x1af   :  { %846 = vmatpush.bf16.msrb.mxu2 %v1825_v7  ;;  %859 = vmatpush.bf16.msrb.mxu3 %v1829_v15 }
 0x1b2   :  { %821 = vmatpush.bf16.msrb.mxu0 %v1832_v16  ;;  %834 = vmatpush.bf16.msra.mxu1 %v1843_v30 }
 0x1b3   :  { %847 = vmatpush.bf16.msrb.mxu2 %v1837_v24  ;;  %860 = vmatpush.bf16.msrb.mxu3 %v1841_v29 }
 0x1b6   :  { %822 = vmatpush.bf16.msrb.mxu0 %v1846_v37  ;;  %835 = vmatpush.bf16.msra.mxu1 %v1874_v60 }
 0x1b7   :  { %848 = vmatpush.bf16.msrb.mxu2 %v1849_v39  ;;  %861 = vmatpush.bf16.msrb.mxu3 %v1853_v44 }
 0x1ba   :  { %823 = vmatpush.bf16.msrb.mxu0 %v1856_v50  ;;  %836 = vmatpush.bf16.msra.mxu1 %v1879_v2 }
 0x1bb   :  { %849 = vmatpush.bf16.msrb.mxu2 %v1859_v52  ;;  %862 = vmatpush.bf16.msrb.mxu3 %v1865_v54 }
 0x219   :  { %v661_v61 = vpop.f32.mrf.mxu0  ;;  %v674_v25 = vpop.f32.mrf.mxu1 }
 0x21a   :  { %v704_v63 = vadd.f32 %v661_v61, %v1977_v32  ;;  %v705_v4 = vadd.f32 %v674_v25, %v1997_v21 }
 0x21c   :  { %v708_v8 = vmul.f32 0.5, %v704_v63  ;;  %v712_v9 = vmul.f32 0.5, %v705_v4  ;;  %v2279_v4 = vld [vmem:[#allocation23_spill] sm:$0xff] }
 0x21e   :  { %1535 = vtanh.f32 %v708_v8 }
 0x21f   :  { %1537 = vtanh.f32 %v712_v9 }
 0x220   :  { %v687_v53 = vpop.f32.mrf.mxu2  ;;  %v700_v42 = vpop.f32.mrf.mxu3 }
 0x221   :  { %v706_v57 = vadd.f32 %v687_v53, %v1979_v41  ;;  %v707_v36 = vadd.f32 %v700_v42, %v1982_v47  ;;  %v663_v3 = vpop.f32.mrf.mxu0  ;;  %v676_v14 = vpop.f32.mrf.mxu1 }
 0x222   :  { %v2281_v14 = vld [vmem:[#allocation18_spill] sm:$0xff] }
 0x223   :  { %1539 = vtanh.f32 %v706_v57  ;;  %v717_v13 = vmul.f32 0.5, %v707_v36  ;;  %v2280_v36 = vld [vmem:[#allocation17_spill] sm:$0xff] }
 0x224   :  { %v1536_v55 = vpop.eup %1535 }
 0x225   :  { %v1538_v5 = vpop.eup %1537  ;;  %v710_v35 = vadd.f32 1.0, %v1536_v55  ;;  %1541 = vtanh.f32 %v717_v13 }
 0x226   :  { %v714_v32 = vadd.f32 1.0, %v1538_v5 }
 0x227   :  { %v711_v21 = vmul.f32 0.5, %v710_v35 }
 0x228   :  { %v715_v38 = vmul.f32 0.5, %v714_v32  ;;  %v689_v26 = vpop.f32.mrf.mxu2  ;;  %v702_v43 = vpop.f32.mrf.mxu3 }
 0x229   :  { %v1540_v11 = vpop.eup %1539 }
 0x22a   :  { %v721_v22 = vmul.f32 %v715_v38, %v2076_v20  ;;  %v722_v28 = vmul.f32 %v1540_v11, %v711_v21 }
 0x22b   :  { %v1542_v41 = vpop.eup %1541 }
 0x22c   :  { %v2116_v62 = vadd.f32 %v722_v28, %v721_v22  ;;  %v719_v47 = vadd.f32 1.0, %v1542_v41 }
 0x22e   :  { %1543 = vtanh.f32 %v2116_v62  ;;  %v720_v10 = vmul.f32 0.5, %v719_v47 }
 0x234   :  { %v1544_v12 = vpop.eup %1543 }
 0x235   :  { %v725_v6 = vmul.f32 %v1544_v12, %v720_v10 }
 0x237   :  { %v733_v61 = vpack.c.bf16 %v725_v6, %v725_v6 }
 0x239   :  { %742 = vmatmul.bf16.vlgmr.msra.gmra.mxu0 %v733_v61  ;;  %755 = vmatmul.bf16.vlgmr.msrb.gmra.mxu1 %v733_v61 }
 0x23a   :  { %768 = vmatmul.bf16.vlgmr.msra.gmra.mxu2 %v733_v61  ;;  %781 = vmatmul.bf16.vlgmr.msra.gmra.mxu3 %v733_v61 }
 0x23b   :  { %898 = vmatpush.bf16.msra.mxu0 %v1764_v23  ;;  %911 = vmatpush.bf16.msrb.mxu1 %v1756_v18 }
 0x23c   :  { %924 = vmatpush.bf16.msra.mxu2 %v1758_v19  ;;  %937 = vmatpush.bf16.msra.mxu3 %v1768_v27 }
 0x23f   :  { %899 = vmatpush.bf16.msra.mxu0 %v1777_v33  ;;  %912 = vmatpush.bf16.msrb.mxu1 %v1773_v31 }
 0x240   :  { %925 = vmatpush.bf16.msra.mxu2 %v1779_v34  ;;  %938 = vmatpush.bf16.msra.mxu3 %v1782_v40 }
 0x243   :  { %900 = vmatpush.bf16.msra.mxu0 %v1789_v46  ;;  %913 = vmatpush.bf16.msrb.mxu1 %v1785_v45 }
 0x244   :  { %926 = vmatpush.bf16.msra.mxu2 %v1791_v48  ;;  %939 = vmatpush.bf16.msra.mxu3 %v1794_v51 }
 0x247   :  { %901 = vmatpush.bf16.msra.mxu0 %v1800_v58  ;;  %914 = vmatpush.bf16.msrb.mxu1 %v1797_v56 }
 0x248   :  { %927 = vmatpush.bf16.msra.mxu2 %v1803_v59  ;;  %940 = vmatpush.bf16.msra.mxu3 %v1811_v0 }
 0x24b   :  { %902 = vmatpush.bf16.msra.mxu0 %v1815_v1  ;;  %915 = vmatpush.bf16.msrb.mxu1 %v1834_v17 }
 0x24c   :  { %928 = vmatpush.bf16.msra.mxu2 %v1825_v7  ;;  %941 = vmatpush.bf16.msra.mxu3 %v1829_v15 }
 0x24f   :  { %903 = vmatpush.bf16.msra.mxu0 %v1832_v16  ;;  %916 = vmatpush.bf16.msrb.mxu1 %v1843_v30 }
 0x250   :  { %929 = vmatpush.bf16.msra.mxu2 %v1837_v24  ;;  %942 = vmatpush.bf16.msra.mxu3 %v1841_v29 }
 0x253   :  { %904 = vmatpush.bf16.msra.mxu0 %v1846_v37  ;;  %917 = vmatpush.bf16.msrb.mxu1 %v1874_v60 }
 0x254   :  { %930 = vmatpush.bf16.msra.mxu2 %v1849_v39  ;;  %943 = vmatpush.bf16.msra.mxu3 %v1853_v44 }
 0x257   :  { %905 = vmatpush.bf16.msra.mxu0 %v1856_v50  ;;  %918 = vmatpush.bf16.msrb.mxu1 %v1879_v2 }
 0x258   :  { %931 = vmatpush.bf16.msra.mxu2 %v1859_v52  ;;  %944 = vmatpush.bf16.msra.mxu3 %v1865_v54 }
 0x2b6   :  { %v743_v20 = vpop.f32.mrf.mxu0  ;;  %v756_v25 = vpop.f32.mrf.mxu1 }
 0x2b7   :  { %v786_v63 = vadd.f32 %v743_v20, %v1985_v49  ;;  %v787_v8 = vadd.f32 %v756_v25, %v2279_v4 }
 0x2b9   :  { %v790_v9 = vmul.f32 0.5, %v786_v63  ;;  %v794_v53 = vmul.f32 0.5, %v787_v8  ;;  %v2282_v8 = vld [vmem:[#allocation19_spill] sm:$0xff] }
 0x2bb   :  { %1545 = vtanh.f32 %v790_v9 }
 0x2bc   :  { %1547 = vtanh.f32 %v794_v53  ;;  %v2283_v53 = vld [vmem:[#allocation26_spill] sm:$0xff] }
 0x2bd   :  { %v769_v42 = vpop.f32.mrf.mxu2  ;;  %v782_v57 = vpop.f32.mrf.mxu3 }
 0x2be   :  { %v788_v3 = vadd.f32 %v769_v42, %v2280_v36  ;;  %v789_v13 = vadd.f32 %v782_v57, %v2281_v14  ;;  %v745_v55 = vpop.f32.mrf.mxu0  ;;  %v758_v5 = vpop.f32.mrf.mxu1 }
 0x2bf   :  { %v2285_v5 = vld [vmem:[#allocation21_spill] sm:$0xff] }
 0x2c0   :  { %1549 = vtanh.f32 %v788_v3  ;;  %v799_v35 = vmul.f32 0.5, %v789_v13  ;;  %v2284_v13 = vld [vmem:[#allocation20_spill] sm:$0xff] }
 0x2c1   :  { %v1546_v32 = vpop.eup %1545 }
 0x2c2   :  { %v1548_v21 = vpop.eup %1547  ;;  %v792_v38 = vadd.f32 1.0, %v1546_v32  ;;  %1551 = vtanh.f32 %v799_v35 }
 0x2c3   :  { %v796_v49 = vadd.f32 1.0, %v1548_v21 }
 0x2c4   :  { %v793_v26 = vmul.f32 0.5, %v792_v38 }
 0x2c5   :  { %v797_v43 = vmul.f32 0.5, %v796_v49  ;;  %v771_v11 = vpop.f32.mrf.mxu2  ;;  %v784_v22 = vpop.f32.mrf.mxu3 }
 0x2c6   :  { %v1550_v28 = vpop.eup %1549 }
 0x2c7   :  { %v803_v41 = vmul.f32 %v797_v43, %v2116_v62  ;;  %v804_v47 = vmul.f32 %v1550_v28, %v793_v26 }
 0x2c8   :  { %v1552_v10 = vpop.eup %1551 }
 0x2c9   :  { %v2156_v12 = vadd.f32 %v804_v47, %v803_v41  ;;  %v801_v6 = vadd.f32 1.0, %v1552_v10 }
 0x2cb   :  { %1553 = vtanh.f32 %v2156_v12  ;;  %v802_v61 = vmul.f32 0.5, %v801_v6 }
 0x2d1   :  { %v1554_v20 = vpop.eup %1553 }
 0x2d2   :  { %v807_v25 = vmul.f32 %v1554_v20, %v802_v61 }
 0x2d4   :  { %v815_v63 = vpack.c.bf16 %v807_v25, %v807_v25 }
 0x2d6   :  { %824 = vmatmul.bf16.vlgmr.msrb.gmra.mxu0 %v815_v63  ;;  %837 = vmatmul.bf16.vlgmr.msra.gmra.mxu1 %v815_v63 }
 0x2d7   :  { %850 = vmatmul.bf16.vlgmr.msrb.gmra.mxu2 %v815_v63  ;;  %863 = vmatmul.bf16.vlgmr.msrb.gmra.mxu3 %v815_v63 }
 0x2d8   :  { %980 = vmatpush.bf16.msrb.mxu0 %v1764_v23  ;;  %993 = vmatpush.bf16.msra.mxu1 %v1756_v18 }
 0x2d9   :  { %1006 = vmatpush.bf16.msrb.mxu2 %v1758_v19  ;;  %1019 = vmatpush.bf16.msrb.mxu3 %v1768_v27 }
 0x2dc   :  { %981 = vmatpush.bf16.msrb.mxu0 %v1777_v33  ;;  %994 = vmatpush.bf16.msra.mxu1 %v1773_v31 }
 0x2dd   :  { %1007 = vmatpush.bf16.msrb.mxu2 %v1779_v34  ;;  %1020 = vmatpush.bf16.msrb.mxu3 %v1782_v40 }
 0x2e0   :  { %982 = vmatpush.bf16.msrb.mxu0 %v1789_v46  ;;  %995 = vmatpush.bf16.msra.mxu1 %v1785_v45 }
 0x2e1   :  { %1008 = vmatpush.bf16.msrb.mxu2 %v1791_v48  ;;  %1021 = vmatpush.bf16.msrb.mxu3 %v1794_v51 }
 0x2e4   :  { %983 = vmatpush.bf16.msrb.mxu0 %v1800_v58  ;;  %996 = vmatpush.bf16.msra.mxu1 %v1797_v56 }
 0x2e5   :  { %1009 = vmatpush.bf16.msrb.mxu2 %v1803_v59  ;;  %1022 = vmatpush.bf16.msrb.mxu3 %v1811_v0 }
 0x2e8   :  { %984 = vmatpush.bf16.msrb.mxu0 %v1815_v1  ;;  %997 = vmatpush.bf16.msra.mxu1 %v1834_v17 }
 0x2e9   :  { %1010 = vmatpush.bf16.msrb.mxu2 %v1825_v7  ;;  %1023 = vmatpush.bf16.msrb.mxu3 %v1829_v15 }
 0x2ec   :  { %985 = vmatpush.bf16.msrb.mxu0 %v1832_v16  ;;  %998 = vmatpush.bf16.msra.mxu1 %v1843_v30 }
 0x2ed   :  { %1011 = vmatpush.bf16.msrb.mxu2 %v1837_v24  ;;  %1024 = vmatpush.bf16.msrb.mxu3 %v1841_v29 }
 0x2f0   :  { %986 = vmatpush.bf16.msrb.mxu0 %v1846_v37  ;;  %999 = vmatpush.bf16.msra.mxu1 %v1874_v60 }
 0x2f1   :  { %1012 = vmatpush.bf16.msrb.mxu2 %v1849_v39  ;;  %1025 = vmatpush.bf16.msrb.mxu3 %v1853_v44 }
 0x2f4   :  { %987 = vmatpush.bf16.msrb.mxu0 %v1856_v50  ;;  %1000 = vmatpush.bf16.msra.mxu1 %v1879_v2 }
 0x2f5   :  { %1013 = vmatpush.bf16.msrb.mxu2 %v1859_v52  ;;  %1026 = vmatpush.bf16.msrb.mxu3 %v1865_v54 }
 0x353   :  { %v825_v62 = vpop.f32.mrf.mxu0  ;;  %v838_v4 = vpop.f32.mrf.mxu1 }
 0x354   :  { %v868_v9 = vadd.f32 %v825_v62, %v2282_v8  ;;  %v869_v42 = vadd.f32 %v838_v4, %v2283_v53 }
 0x356   :  { %v872_v57 = vmul.f32 0.5, %v868_v9  ;;  %v876_v36 = vmul.f32 0.5, %v869_v42 }
 0x358   :  { %1555 = vtanh.f32 %v872_v57 }
 0x359   :  { %1557 = vtanh.f32 %v876_v36 }
 0x35a   :  { %v851_v3 = vpop.f32.mrf.mxu2  ;;  %v864_v14 = vpop.f32.mrf.mxu3 }
 0x35b   :  { %v870_v55 = vadd.f32 %v851_v3, %v2284_v13  ;;  %v871_v35 = vadd.f32 %v864_v14, %v2285_v5  ;;  %v827_v32 = vpop.f32.mrf.mxu0  ;;  %v840_v21 = vpop.f32.mrf.mxu1  ;;  %v2290_v3 = vld [vmem:[#allocation15_spill] sm:$0xff]  ;;  %v2291_v13 = vld [vmem:[#allocation32_spill] sm:$0xff] }
 0x35d   :  { %1559 = vtanh.f32 %v870_v55  ;;  %v881_v38 = vmul.f32 0.5, %v871_v35 }
 0x35e   :  { %v1556_v49 = vpop.eup %1555 }
 0x35f   :  { %v1558_v26 = vpop.eup %1557  ;;  %v874_v43 = vadd.f32 1.0, %v1556_v49  ;;  %1561 = vtanh.f32 %v881_v38  ;;  %v2292_v38 = vld [vmem:[#allocation27_spill] sm:$0xff] }
 0x360   :  { %v878_v11 = vadd.f32 1.0, %v1558_v26  ;;  %v2293_v26 = vld [vmem:[#allocation28_spill] sm:$0xff] }
 0x361   :  { %v875_v22 = vmul.f32 0.5, %v874_v43 }
 0x362   :  { %v879_v28 = vmul.f32 0.5, %v878_v11  ;;  %v853_v41 = vpop.f32.mrf.mxu2  ;;  %v866_v47 = vpop.f32.mrf.mxu3 }
 0x363   :  { %v1560_v10 = vpop.eup %1559 }
 0x364   :  { %v885_v6 = vmul.f32 %v879_v28, %v2156_v12  ;;  %v886_v61 = vmul.f32 %v1560_v10, %v875_v22 }
 0x365   :  { %v1562_v20 = vpop.eup %1561 }
 0x366   :  { %v2196_v25 = vadd.f32 %v886_v61, %v885_v6  ;;  %v883_v63 = vadd.f32 1.0, %v1562_v20 }
 0x368   :  { %1563 = vtanh.f32 %v2196_v25  ;;  %v884_v62 = vmul.f32 0.5, %v883_v63 }
 0x36e   :  { %v1564_v4 = vpop.eup %1563 }
 0x36f   :  { %v889_v8 = vmul.f32 %v1564_v4, %v884_v62 }
 0x371   :  { %v897_v9 = vpack.c.bf16 %v889_v8, %v889_v8 }
 0x373   :  { %906 = vmatmul.bf16.vlgmr.msra.gmra.mxu0 %v897_v9  ;;  %919 = vmatmul.bf16.vlgmr.msrb.gmra.mxu1 %v897_v9 }
 0x374   :  { %932 = vmatmul.bf16.vlgmr.msra.gmra.mxu2 %v897_v9  ;;  %945 = vmatmul.bf16.vlgmr.msra.gmra.mxu3 %v897_v9 }
 0x375   :  { %1062 = vmatpush.bf16.msra.mxu0 %v1764_v23  ;;  %1075 = vmatpush.bf16.msrb.mxu1 %v1756_v18  ;;  %v2286_v23 = vld [vmem:[#allocation22_spill] sm:$0xff] }
 0x376   :  { %1088 = vmatpush.bf16.msra.mxu2 %v1758_v19  ;;  %1101 = vmatpush.bf16.msra.mxu3 %v1768_v27 }
 0x379   :  { %1063 = vmatpush.bf16.msra.mxu0 %v1777_v33  ;;  %1076 = vmatpush.bf16.msrb.mxu1 %v1773_v31  ;;  %v2287_v31 = vld [vmem:[#allocation29_spill] sm:$0xff] }
 0x37a   :  { %1089 = vmatpush.bf16.msra.mxu2 %v1779_v34  ;;  %1102 = vmatpush.bf16.msra.mxu3 %v1782_v40 }
 0x37d   :  { %1064 = vmatpush.bf16.msra.mxu0 %v1789_v46  ;;  %1077 = vmatpush.bf16.msrb.mxu1 %v1785_v45 }
 0x37e   :  { %1090 = vmatpush.bf16.msra.mxu2 %v1791_v48  ;;  %1103 = vmatpush.bf16.msra.mxu3 %v1794_v51  ;;  %v2288_v48 = vld [vmem:[#allocation24_spill] sm:$0xff] }
 0x381   :  { %1065 = vmatpush.bf16.msra.mxu0 %v1800_v58  ;;  %1078 = vmatpush.bf16.msrb.mxu1 %v1797_v56  ;;  %v2289_v56 = vld [vmem:[#allocation25_spill] sm:$0xff] }
 0x382   :  { %1091 = vmatpush.bf16.msra.mxu2 %v1803_v59  ;;  %1104 = vmatpush.bf16.msra.mxu3 %v1811_v0 }
 0x385   :  { %1066 = vmatpush.bf16.msra.mxu0 %v1815_v1  ;;  %1079 = vmatpush.bf16.msrb.mxu1 %v1834_v17 }
 0x386   :  { %1092 = vmatpush.bf16.msra.mxu2 %v1825_v7  ;;  %1105 = vmatpush.bf16.msra.mxu3 %v1829_v15 }
 0x389   :  { %1067 = vmatpush.bf16.msra.mxu0 %v1832_v16  ;;  %1080 = vmatpush.bf16.msrb.mxu1 %v1843_v30 }
 0x38a   :  { %1093 = vmatpush.bf16.msra.mxu2 %v1837_v24  ;;  %1106 = vmatpush.bf16.msra.mxu3 %v1841_v29 }
 0x38d   :  { %1068 = vmatpush.bf16.msra.mxu0 %v1846_v37  ;;  %1081 = vmatpush.bf16.msrb.mxu1 %v1874_v60 }
 0x38e   :  { %1094 = vmatpush.bf16.msra.mxu2 %v1849_v39  ;;  %1107 = vmatpush.bf16.msra.mxu3 %v1853_v44 }
 0x391   :  { %1069 = vmatpush.bf16.msra.mxu0 %v1856_v50  ;;  %1082 = vmatpush.bf16.msrb.mxu1 %v1879_v2 }
 0x392   :  { %1095 = vmatpush.bf16.msra.mxu2 %v1859_v52  ;;  %1108 = vmatpush.bf16.msra.mxu3 %v1865_v54 }
 0x3f0   :  { %v907_v18 = vpop.f32.mrf.mxu0  ;;  %v920_v19 = vpop.f32.mrf.mxu1 }
 0x3f1   :  { %v950_v27 = vadd.f32 %v907_v18, %v2286_v23  ;;  %v951_v33 = vadd.f32 %v920_v19, %v2287_v31 }
 0x3f3   :  { %v954_v34 = vmul.f32 0.5, %v950_v27  ;;  %v958_v40 = vmul.f32 0.5, %v951_v33 }
 0x3f5   :  { %1565 = vtanh.f32 %v954_v34  ;;  %v1504_v34 = vld [vmem:[#allocation8 + $0x38] sm:$0xff] }
 0x3f6   :  { %1567 = vtanh.f32 %v958_v40  ;;  %v1503_v40 = vld [vmem:[#allocation8 + $0x30] sm:$0xff] }
 0x3f7   :  { %v933_v45 = vpop.f32.mrf.mxu2  ;;  %v946_v46 = vpop.f32.mrf.mxu3 }
 0x3f8   :  { %v952_v51 = vadd.f32 %v933_v45, %v2288_v48  ;;  %v953_v58 = vadd.f32 %v946_v46, %v2289_v56  ;;  %v909_v59 = vpop.f32.mrf.mxu0  ;;  %v922_v0 = vpop.f32.mrf.mxu1  ;;  %v1502_v45 = vld [vmem:[#allocation8 + $0x28] sm:$0xff]  ;;  %v1501_v46 = vld [vmem:[#allocation8 + $0x20] sm:$0xff]  ;;  %v1500_v48 = vld [vmem:[#allocation8 + $0x18] sm:$0xff] }
 0x3f9   :  { %v1498_v56 = vld [vmem:[#allocation8 + $0x8] sm:$0xff]  ;;  %v2295_v0 = vld [vmem:[#allocation16_spill] sm:$0xff] }
 0x3fa   :  { %1569 = vtanh.f32 %v952_v51  ;;  %v963_v1 = vmul.f32 0.5, %v953_v58  ;;  %v1499_v51 = vld [vmem:[#allocation8 + $0x10] sm:$0xff]  ;;  %v1497_v58 = vld [vmem:[#allocation8] sm:$0xff]  ;;  %v2294_v59 = vld [vmem:[#allocation14_spill] sm:$0xff] }
 0x3fb   :  { %v1566_v7 = vpop.eup %1565 }
 0x3fc   :  { %v1568_v15 = vpop.eup %1567  ;;  %v956_v16 = vadd.f32 1.0, %v1566_v7  ;;  %1571 = vtanh.f32 %v963_v1  ;;  %v165_v1 = vadd.f32 %v2295_v0, %v2294_v59 }
 0x3fd   :  { %v960_v17 = vadd.f32 1.0, %v1568_v15 }
 0x3fe   :  { %v957_v24 = vmul.f32 0.5, %v956_v16 }
 0x3ff   :  { %v961_v29 = vmul.f32 0.5, %v960_v17  ;;  %v935_v30 = vpop.f32.mrf.mxu2  ;;  %v948_v37 = vpop.f32.mrf.mxu3  ;;  %v2296_v17 = vld [vmem:[#allocation33_spill] sm:$0xff] }
 0x400   :  { %v1570_v39 = vpop.eup %1569 }
 0x401   :  { %v967_v44 = vmul.f32 %v961_v29, %v2196_v25  ;;  %v968_v50 = vmul.f32 %v1570_v39, %v957_v24 }
 0x402   :  { %v1572_v52 = vpop.eup %1571 }
 0x403   :  { %v969_v54 = vadd.f32 %v968_v50, %v967_v44  ;;  %v965_v60 = vadd.f32 1.0, %v1572_v52  ;;  %v2297_v44 = vld [vmem:[#allocation30_spill] sm:$0xff]  ;;  %v2298_v52 = vld [vmem:[#allocation31_spill] sm:$0xff] }
 0x405   :  { %1573 = vtanh.f32 %v969_v54  ;;  %v966_v2 = vmul.f32 0.5, %v965_v60 }
 0x40b   :  { %v1574_v12 = vpop.eup %1573 }
 0x40c   :  { %v971_v53 = vmul.f32 %v1574_v12, %v966_v2 }
 0x40e   :  { %v979_v42 = vpack.c.bf16 %v971_v53, %v971_v53 }
 0x410   :  { %988 = vmatmul.bf16.vlgmr.msrb.gmra.mxu0 %v979_v42  ;;  %1001 = vmatmul.bf16.vlgmr.msra.gmra.mxu1 %v979_v42 }
 0x411   :  { %1014 = vmatmul.bf16.vlgmr.msrb.gmra.mxu2 %v979_v42  ;;  %1027 = vmatmul.bf16.vlgmr.msrb.gmra.mxu3 %v979_v42 }
 0x412   :  { %1210 = vmatpush.bf16.msrb.mxu0 %v1504_v34 }
 0x416   :  { %1211 = vmatpush.bf16.msrb.mxu0 %v1503_v40 }
 0x41a   :  { %1212 = vmatpush.bf16.msrb.mxu0 %v1502_v45 }
 0x41e   :  { %1213 = vmatpush.bf16.msrb.mxu0 %v1501_v46 }
 0x422   :  { %1214 = vmatpush.bf16.msrb.mxu0 %v1500_v48 }
 0x426   :  { %1215 = vmatpush.bf16.msrb.mxu0 %v1499_v51 }
 0x42a   :  { %1216 = vmatpush.bf16.msrb.mxu0 %v1498_v56 }
 0x42e   :  { %1217 = vmatpush.bf16.msrb.mxu0 %v1497_v58 }
 0x48d   :  { %v989_v57 = vpop.f32.mrf.mxu0  ;;  %v1002_v36 = vpop.f32.mrf.mxu1 }
 0x48e   :  { %v1032_v14 = vadd.f32 %v989_v57, %v2290_v3  ;;  %v1033_v55 = vadd.f32 %v1002_v36, %v2291_v13 }
 0x490   :  { %v1036_v5 = vmul.f32 0.5, %v1032_v14  ;;  %v1040_v35 = vmul.f32 0.5, %v1033_v55 }
 0x492   :  { %1575 = vtanh.f32 %v1036_v5 }
 0x493   :  { %1577 = vtanh.f32 %v1040_v35 }
 0x494   :  { %v1015_v32 = vpop.f32.mrf.mxu2  ;;  %v1028_v21 = vpop.f32.mrf.mxu3 }
 0x495   :  { %v1034_v49 = vadd.f32 %v1015_v32, %v2292_v38  ;;  %v1035_v43 = vadd.f32 %v1028_v21, %v2293_v26  ;;  %v991_v11 = vpop.f32.mrf.mxu0  ;;  %v1004_v22 = vpop.f32.mrf.mxu1 }
 0x497   :  { %1579 = vtanh.f32 %v1034_v49  ;;  %v1045_v28 = vmul.f32 0.5, %v1035_v43 }
 0x498   :  { %v1576_v41 = vpop.eup %1575 }
 0x499   :  { %v1578_v47 = vpop.eup %1577  ;;  %v1038_v10 = vadd.f32 1.0, %v1576_v41  ;;  %1581 = vtanh.f32 %v1045_v28  ;;  %v1514_v28 = vld [vmem:[%s2256_s5] ss:$0 sm:$0xff] }
 0x49a   :  { %v1042_v6 = vadd.f32 1.0, %v1578_v47 }
 0x49b   :  { %v1039_v61 = vmul.f32 0.5, %v1038_v10 }
 0x49c   :  { %v1043_v20 = vmul.f32 0.5, %v1042_v6  ;;  %v1017_v25 = vpop.f32.mrf.mxu2  ;;  %v1030_v63 = vpop.f32.mrf.mxu3 }
 0x49d   :  { %v1580_v62 = vpop.eup %1579 }
 0x49e   :  { %v1049_v4 = vmul.f32 %v1043_v20, %v969_v54  ;;  %v1050_v8 = vmul.f32 %v1580_v62, %v1039_v61 }
 0x49f   :  { %v1582_v9 = vpop.eup %1581 }
 0x4a0   :  { %v1051_v18 = vadd.f32 %v1050_v8, %v1049_v4  ;;  %v1047_v19 = vadd.f32 1.0, %v1582_v9 }
 0x4a2   :  { %1583 = vtanh.f32 %v1051_v18  ;;  %v1048_v23 = vmul.f32 0.5, %v1047_v19 }
 0x4a8   :  { %v1584_v27 = vpop.eup %1583 }
 0x4a9   :  { %v1053_v31 = vmul.f32 %v1584_v27, %v1048_v23 }
 0x4ab   :  { %v1061_v33 = vpack.c.bf16 %v1053_v31, %v1053_v31 }
 0x4ad   :  { %1070 = vmatmul.bf16.vlgmr.msra.gmra.mxu0 %v1061_v33  ;;  %1083 = vmatmul.bf16.vlgmr.msrb.gmra.mxu1 %v1061_v33 }
 0x4ae   :  { %1096 = vmatmul.bf16.vlgmr.msra.gmra.mxu2 %v1061_v33  ;;  %1109 = vmatmul.bf16.vlgmr.msra.gmra.mxu3 %v1061_v33 }
 0x52a   :  { %v1071_v7 = vpop.f32.mrf.mxu0  ;;  %v1084_v15 = vpop.f32.mrf.mxu1 }
 0x52b   :  { %v1114_v16 = vadd.f32 %v1071_v7, %v165_v1  ;;  %v1115_v24 = vadd.f32 %v1084_v15, %v2296_v17 }
 0x52d   :  { %v1118_v29 = vmul.f32 0.5, %v1114_v16  ;;  %v1122_v30 = vmul.f32 0.5, %v1115_v24 }
 0x52f   :  { %1585 = vtanh.f32 %v1118_v29 }
 0x530   :  { %1587 = vtanh.f32 %v1122_v30 }
 0x531   :  { %v1097_v37 = vpop.f32.mrf.mxu2  ;;  %v1110_v39 = vpop.f32.mrf.mxu3 }
 0x532   :  { %v1116_v50 = vadd.f32 %v1097_v37, %v2297_v44  ;;  %v1117_v54 = vadd.f32 %v1110_v39, %v2298_v52  ;;  %v1073_v60 = vpop.f32.mrf.mxu0  ;;  %v1086_v2 = vpop.f32.mrf.mxu1 }
 0x534   :  { %1589 = vtanh.f32 %v1116_v50  ;;  %v1127_v12 = vmul.f32 0.5, %v1117_v54 }
 0x535   :  { %v1586_v53 = vpop.eup %1585 }
 0x536   :  { %v1588_v42 = vpop.eup %1587  ;;  %v1120_v57 = vadd.f32 1.0, %v1586_v53  ;;  %1591 = vtanh.f32 %v1127_v12 }
 0x537   :  { %v1124_v36 = vadd.f32 1.0, %v1588_v42 }
 0x538   :  { %v1121_v3 = vmul.f32 0.5, %v1120_v57 }
 0x539   :  { %v1125_v14 = vmul.f32 0.5, %v1124_v36  ;;  %v1099_v13 = vpop.f32.mrf.mxu2  ;;  %v1112_v55 = vpop.f32.mrf.mxu3 }
 0x53a   :  { %v1590_v5 = vpop.eup %1589 }
 0x53b   :  { %v1131_v35 = vmul.f32 %v1125_v14, %v1051_v18  ;;  %v1132_v32 = vmul.f32 %v1590_v5, %v1121_v3 }
 0x53c   :  { %v1592_v21 = vpop.eup %1591 }
 0x53d   :  { %v1133_v38 = vadd.f32 %v1132_v32, %v1131_v35  ;;  %v1129_v49 = vadd.f32 1.0, %v1592_v21 }
 0x53f   :  { %1593 = vtanh.f32 %v1133_v38  ;;  %v1130_v26 = vmul.f32 0.5, %v1129_v49 }
 0x545   :  { %v1594_v43 = vpop.eup %1593 }
 0x546   :  { %v1135_v11 = vmul.f32 %v1594_v43, %v1130_v26 }
 0x548   :  { %v1141_v22 = vpack.c.bf16 %v1135_v11, %v1135_v11 }
 0x54a   :  { %1218 = vmatmul.bf16.vlgmr.msrb.gmra.mxu0 %v1141_v22 }
 0x5c7   :  { %v1219_v41 = vpop.f32.mrf.mxu0 }
 0x5c8   :  { %v1220_v47 = vadd.f32 %v1514_v28, %v1219_v41 }
 0x5ca   :  { %1223 = vst [vmem:[#allocation10] sm:$0xff] %v1220_v47 }
 0x5cb   :  { %1234 = dma.vmem_to_hbm [thread:$0]  %s1230_s2, 128, %s1232_s4, [#allocation7]  }
 0x5cf   :  { %v1221_v10 = vpop.f32.mrf.mxu0 }
 0x5d0   :  { %1671 = dma.done.wait [#allocation7], 128  }
 0x5d1   :  { %1672 = vsyncadd [#allocation7], 4294967168 }
 0x5d2   :  { %1239 = vsyncpa [#allocation6], 1 }
 0x5d3   :  { %1240 = vsyncpa [#allocation9], 1 }
 0x5d4   :  { %1241 = vsyncpa [#allocation7], 1 }

// kernel: tpu_custom_call.1
= control target key start
LH: loop header
LB: loop body
LE: loop exit
PB: predicated region body
PF: predicated region fallthrough
CT: control target
= control target key end

     0   :  { %11 = vsyncpa [#allocation6], 0  ;;  %s2251_s0 = inlined_call_operand.vmem [shape: bf16[1,64,16], index: 0, kind: input, shape index: {}]   ;;  %s2252_s1 = inlined_call_operand.vmem [shape: bf16[16,512], index: 1, kind: input, shape index: {}]   ;;  %s2253_s2 = inlined_call_operand.hbm [shape: bf16[128,512], index: 2, kind: input, shape index: {}]   ;;  %s2254_s3 = inlined_call_operand.vmem [shape: f32[1,512], index: 3, kind: input, shape index: {}]   ;;  %s2255_s4 = inlined_call_operand.hbm [shape: bf16[128,128], index: 4, kind: input, shape index: {}]   ;;  %s2256_s5 = inlined_call_operand.vmem [shape: f32[1,128], index: 5, kind: input, shape index: {}]   ;;  %s2257_s6 = inlined_call_operand.hbm [shape: f32[8,128], index: 6, kind: output, shape index: {}]  }
   0x1   :  { %12 = vsyncpa [#allocation9], 0 }
   0x2   :  { %13 = vsyncpa [#allocation7], 0  ;;  %s22_s23 = sshll.u32 %s2253_s2, 4  ;;  %s1673_s24 = smov [#allocation5]   ;;  %s23_s23 = int_to_ptr.hbm [resolvable:$true] %s22_s23 }
   0x3   :  { %s24_s25 = sshll.u32 %s1673_s24, 4  ;;  %s37_s28 = sshll.u32 %s2255_s4, 4  ;;  %s25_s25 = int_to_ptr.vmem [resolvable:$true] %s24_s25  ;;  %s38_s28 = int_to_ptr.hbm [resolvable:$true] %s37_s28 }
   0x4   :  { %s1674_s29 = smov 256   ;;  %s1675_s30 = smov 16  }
   0x5   :  { %30 = dma.hbm_to_vmem [thread:$0]  %s23_s23, 4096, %s25_s25, [#allocation6], %s1674_s29, %s1674_s29, %s1675_s30  }
   0x6   :  { %s1676_s7 = smov [#allocation8]   ;;  %s1677_s9 = smov 64  }
   0x7   :  { %s39_s8 = sshll.u32 %s1676_s7, 4  ;;  %s1678_s10 = smov 4   ;;  %s40_s8 = int_to_ptr.vmem [resolvable:$true] %s39_s8 }
   0x8   :  { %45 = dma.hbm_to_vmem [thread:$0]  %s38_s28, 1024, %s40_s8, [#allocation9], %s1677_s9, %s1677_s9, %s1678_s10  }
   0x9   :  { %1667 = dma.done.wait [#allocation6], 4096  }
   0xa   :  { %1668 = vsyncadd [#allocation6], 4294963200 }
   0xb   :  { %1669 = dma.done.wait [#allocation9], 1024  }
   0xc   :  { %1670 = vsyncadd [#allocation9], 4294966272  ;;  %v1267_v0 = vld [vmem:[%s2252_s1] sm:$0xf]  ;;  %v1463_v1 = vld [vmem:[%s2252_s1 + $0xc] sm:$0xf0] }
   0xd   :  { %v1275_v2 = vld [vmem:[%s2252_s1 + $0x8] sm:$0xf]  ;;  %v1268_v3 = vor.u32 %v1463_v1, %v1267_v0  ;;  %v1464_v4 = vld [vmem:[%s2252_s1 + $0x14] sm:$0xf0]  ;;  %v1462_v5 = vld [vmem:[%s2252_s1 + $0xc] sm:$0xf] }
   0xe   :  { %v1277_v6 = vld [vmem:[%s2252_s1 + $0x18] sm:$0xf0]  ;;  %v1276_v7 = vor.u32 %v1464_v4, %v1275_v2  ;;  %v1743_v9 = vld [vmem:[%s2251_s0] sm:$0xff]  ;;  %vm125_vm0 = vcmask 130048   ;;  %v1269_v12 = vld [vmem:[%s2252_s1 + $0x10] sm:$0xf0] }
   0xf   :  { %v1280_v8 = vor.u32 %v1462_v5, %v1277_v6  ;;  %v1748_v10 = vld [vmem:[%s2251_s0 + $0x18] sm:$0xff]  ;;  %v1461_v11 = vld [vmem:[%s2252_s1 + $0x4] sm:$0xf]  ;;  %145 = vmatpush.bf16.msra.mxu0 %v1268_v3  ;;  %1505 = vmatpush.bf16.msra.mxu1 %v1268_v3  ;;  %v1413_v15 = vld [vmem:[#allocation5 + $0xf0] sm:$0xf0]  ;;  %s1680_s10 = smov [#allocation10]  }
  0x10   :  { %v1493_v13 = vld [vmem:[#allocation5 + $0xe4] sm:$0xf]  ;;  %203 = vmatpush.bf16.msra.mxu2 %v1276_v7  ;;  %v1272_v14 = vor.u32 %v1461_v11, %v1269_v12  ;;  %v1419_v16 = vld [vmem:[#allocation5 + $0xe8] sm:$0xf]  ;;  %v1496_v17 = vld [vmem:[#allocation5 + $0xf4] sm:$0xf0] }
  0x11   :  { %232 = vmatpush.bf16.msra.mxu3 %v1280_v8  ;;  %v1756_v18 = vor.u32 %v1493_v13, %v1413_v15  ;;  %v1758_v19 = vor.u32 %v1496_v17, %v1419_v16  ;;  %v1411_v20 = vld [vmem:[#allocation5 + $0xe0] sm:$0xf]  ;;  %v1495_v21 = vld [vmem:[#allocation5 + $0xec] sm:$0xf0]  ;;  %v1494_v25 = vld [vmem:[#allocation5 + $0xec] sm:$0xf] }
  0x12   :  { %v1395_v22 = vld [vmem:[#allocation5 + $0xc0] sm:$0xf]  ;;  %1281 = vmatmul.msk.bf16.vlgmr.msra.gmra.mxu0 %vm125_vm0, %v1743_v9  ;;  %1284 = vmatmul.msk.bf16.vlgmr.msra.gmra.mxu1 %vm125_vm0, %v1748_v10  ;;  %v1764_v23 = vor.u32 %v1495_v21, %v1411_v20  ;;  %v1491_v24 = vld [vmem:[#allocation5 + $0xcc] sm:$0xf0]  ;;  %v1421_v26 = vld [vmem:[#allocation5 + $0xf8] sm:$0xf0] }
  0x13   :  { %174 = vmatpush.bf16.msrb.mxu1 %v1272_v14  ;;  %1289 = vmatmul.msk.bf16.vlgmr.msra.gmra.mxu2 %vm125_vm0, %v1743_v9  ;;  %v1768_v27 = vor.u32 %v1494_v25, %v1421_v26  ;;  %v1489_v28 = vld [vmem:[#allocation5 + $0xc4] sm:$0xf]  ;;  %v1397_v29 = vld [vmem:[#allocation5 + $0xd0] sm:$0xf0]  ;;  %v1403_v30 = vld [vmem:[#allocation5 + $0xc8] sm:$0xf]  ;;  %v1777_v33 = vor.u32 %v1491_v24, %v1395_v22 }
  0x14   :  { %1293 = vmatmul.msk.bf16.vlgmr.msra.gmra.mxu3 %vm125_vm0, %v1743_v9  ;;  %v1773_v31 = vor.u32 %v1489_v28, %v1397_v29  ;;  %v1492_v32 = vld [vmem:[#allocation5 + $0xd4] sm:$0xf0]  ;;  %514 = vmatpush.bf16.msrb.mxu2 %v1758_v19  ;;  %v1379_v35 = vld [vmem:[#allocation5 + $0xa0] sm:$0xf]  ;;  %v1490_v36 = vld [vmem:[#allocation5 + $0xcc] sm:$0xf] }
  0x15   :  { %488 = vmatpush.bf16.msrb.mxu0 %v1764_v23  ;;  %v1779_v34 = vor.u32 %v1492_v32, %v1403_v30  ;;  %527 = vmatpush.bf16.msrb.mxu3 %v1768_v27  ;;  %v1487_v37 = vld [vmem:[#allocation5 + $0xac] sm:$0xf0]  ;;  %v1405_v38 = vld [vmem:[#allocation5 + $0xd8] sm:$0xf0]  ;;  %v1485_v39 = vld [vmem:[#allocation5 + $0xa4] sm:$0xf] }
  0x16   :  { %v1782_v40 = vor.u32 %v1490_v36, %v1405_v38  ;;  %v1381_v41 = vld [vmem:[#allocation5 + $0xb0] sm:$0xf0]  ;;  %v1387_v42 = vld [vmem:[#allocation5 + $0xa8] sm:$0xf]  ;;  %v1488_v43 = vld [vmem:[#allocation5 + $0xb4] sm:$0xf0]  ;;  %v1789_v46 = vor.u32 %v1487_v37, %v1379_v35 }
  0x17   :  { %501 = vmatpush.bf16.msra.mxu1 %v1756_v18  ;;  %v1363_v44 = vld [vmem:[#allocation5 + $0x80] sm:$0xf]  ;;  %v1785_v45 = vor.u32 %v1485_v39, %v1381_v41  ;;  %v1483_v47 = vld [vmem:[#allocation5 + $0x8c] sm:$0xf0]  ;;  %v1791_v48 = vor.u32 %v1488_v43, %v1387_v42  ;;  %v1486_v49 = vld [vmem:[#allocation5 + $0xac] sm:$0xf] }
  0x18   :  { %515 = vmatpush.bf16.msrb.mxu2 %v1779_v34  ;;  %v1389_v50 = vld [vmem:[#allocation5 + $0xb8] sm:$0xf0]  ;;  %v1481_v52 = vld [vmem:[#allocation5 + $0x84] sm:$0xf]  ;;  %v1365_v53 = vld [vmem:[#allocation5 + $0x90] sm:$0xf0]  ;;  %v1800_v58 = vor.u32 %v1483_v47, %v1363_v44 }
  0x19   :  { %489 = vmatpush.bf16.msrb.mxu0 %v1777_v33  ;;  %528 = vmatpush.bf16.msrb.mxu3 %v1782_v40  ;;  %v1794_v51 = vor.u32 %v1486_v49, %v1389_v50  ;;  %v1371_v54 = vld [vmem:[#allocation5 + $0x88] sm:$0xf]  ;;  %v1484_v55 = vld [vmem:[#allocation5 + $0x94] sm:$0xf0]  ;;  %v1797_v56 = vor.u32 %v1481_v52, %v1365_v53  ;;  %v1482_v57 = vld [vmem:[#allocation5 + $0x8c] sm:$0xf] }
  0x1a   :  { %v1803_v59 = vor.u32 %v1484_v55, %v1371_v54  ;;  %v1373_v60 = vld [vmem:[#allocation5 + $0x98] sm:$0xf0]  ;;  %v1808_v61 = vld [vmem:[%s2251_s0 + $0x8] sm:$0xff]  ;;  %v1347_v62 = vld [vmem:[#allocation5 + $0x60] sm:$0xf]  ;;  %s1229_s2 = sshll.u32 %s1680_s10, 4  ;;  %s1230_s2 = int_to_ptr.vmem [resolvable:$true] %s1229_s2 }
  0x1b   :  { %502 = vmatpush.bf16.msra.mxu1 %v1773_v31  ;;  %v1479_v63 = vld [vmem:[#allocation5 + $0x6c] sm:$0xf0]  ;;  %v1811_v0 = vor.u32 %v1482_v57, %v1373_v60  ;;  %v1331_v2 = vld [vmem:[#allocation5 + $0x40] sm:$0xf]  ;;  %v1355_v4 = vld [vmem:[#allocation5 + $0x68] sm:$0xf] }
  0x1c   :  { %516 = vmatpush.bf16.msrb.mxu2 %v1791_v48  ;;  %v1815_v1 = vor.u32 %v1479_v63, %v1347_v62  ;;  %v1475_v3 = vld [vmem:[#allocation5 + $0x4c] sm:$0xf0]  ;;  %v1480_v5 = vld [vmem:[#allocation5 + $0x74] sm:$0xf0]  ;;  %v1478_v6 = vld [vmem:[#allocation5 + $0x6c] sm:$0xf] }
  0x1d   :  { %490 = vmatpush.bf16.msrb.mxu0 %v1789_v46  ;;  %529 = vmatpush.bf16.msrb.mxu3 %v1794_v51  ;;  %v1825_v7 = vor.u32 %v1480_v5, %v1355_v4  ;;  %v1357_v8 = vld [vmem:[#allocation5 + $0x78] sm:$0xf0]  ;;  %v1315_v11 = vld [vmem:[#allocation5 + $0x20] sm:$0xf]  ;;  %v1471_v12 = vld [vmem:[#allocation5 + $0x2c] sm:$0xf0]  ;;  %v1832_v16 = vor.u32 %v1475_v3, %v1331_v2 }
  0x1e   :  { %v1477_v13 = vld [vmem:[#allocation5 + $0x64] sm:$0xf]  ;;  %v1349_v14 = vld [vmem:[#allocation5 + $0x70] sm:$0xf0]  ;;  %v1829_v15 = vor.u32 %v1478_v6, %v1357_v8  ;;  %v1476_v20 = vld [vmem:[#allocation5 + $0x54] sm:$0xf0]  ;;  %v1846_v37 = vor.u32 %v1471_v12, %v1315_v11 }
  0x1f   :  { %503 = vmatpush.bf16.msra.mxu1 %v1785_v45  ;;  %v1834_v17 = vor.u32 %v1477_v13, %v1349_v14  ;;  %v1474_v21 = vld [vmem:[#allocation5 + $0x4c] sm:$0xf]  ;;  %v1341_v22 = vld [vmem:[#allocation5 + $0x58] sm:$0xf0]  ;;  %v1473_v25 = vld [vmem:[#allocation5 + $0x44] sm:$0xf] }
  0x20   :  { %517 = vmatpush.bf16.msrb.mxu2 %v1803_v59  ;;  %v1333_v26 = vld [vmem:[#allocation5 + $0x50] sm:$0xf0]  ;;  %v1323_v28 = vld [vmem:[#allocation5 + $0x28] sm:$0xf]  ;;  %v1841_v29 = vor.u32 %v1474_v21, %v1341_v22  ;;  %v1472_v32 = vld [vmem:[#allocation5 + $0x34] sm:$0xf0] }
  0x21   :  { %491 = vmatpush.bf16.msrb.mxu0 %v1800_v58  ;;  %530 = vmatpush.bf16.msrb.mxu3 %v1811_v0  ;;  %v1843_v30 = vor.u32 %v1473_v25, %v1333_v26  ;;  %v1470_v35 = vld [vmem:[#allocation5 + $0x2c] sm:$0xf]  ;;  %v1325_v36 = vld [vmem:[#allocation5 + $0x38] sm:$0xf0]  ;;  %v1299_v38 = vld [vmem:[#allocation5] sm:$0xf]  ;;  %v1849_v39 = vor.u32 %v1472_v32, %v1323_v28 }
  0x22   :  { %1282 = vmatmul.msk.bf16.gmra.mxu0 %vm125_vm0, %v1808_v61  ;;  %1285 = vmatmul.msk.bf16.vlgmr.msrb.gmra.mxu1 %vm125_vm0, %v1743_v9  ;;  %v1339_v9 = vld [vmem:[#allocation5 + $0x48] sm:$0xf]  ;;  %v1467_v41 = vld [vmem:[#allocation5 + $0xc] sm:$0xf0]  ;;  %v1468_v43 = vld [vmem:[#allocation5 + $0x14] sm:$0xf0]  ;;  %v1853_v44 = vor.u32 %v1470_v35, %v1325_v36 }
  0x23   :  { %504 = vmatpush.bf16.msra.mxu1 %v1797_v56  ;;  %1290 = vmatmul.msk.bf16.gmra.mxu2 %vm125_vm0, %v1808_v61  ;;  %v1837_v24 = vor.u32 %v1476_v20, %v1339_v9  ;;  %v1307_v42 = vld [vmem:[#allocation5 + $0x8] sm:$0xf]  ;;  %v1466_v47 = vld [vmem:[#allocation5 + $0xc] sm:$0xf]  ;;  %v1309_v49 = vld [vmem:[#allocation5 + $0x18] sm:$0xf0]  ;;  %v1856_v50 = vor.u32 %v1467_v41, %v1299_v38 }
  0x24   :  { %1294 = vmatmul.msk.bf16.gmra.mxu3 %vm125_vm0, %v1808_v61  ;;  %518 = vmatpush.bf16.msrb.mxu2 %v1825_v7  ;;  %v1859_v52 = vor.u32 %v1468_v43, %v1307_v42  ;;  %v1459_v53 = vld [vmem:[%s2251_s0 + $0x10] sm:$0xff]  ;;  %v1865_v54 = vor.u32 %v1466_v47, %v1309_v49  ;;  %v1469_v55 = vld [vmem:[#allocation5 + $0x24] sm:$0xf]  ;;  %s1231_s4 = sshll.u32 %s2257_s6, 4  ;;  %s1232_s4 = int_to_ptr.hbm [resolvable:$true] %s1231_s4 }
  0x25   :  { %492 = vmatpush.bf16.msrb.mxu0 %v1815_v1  ;;  %531 = vmatpush.bf16.msrb.mxu3 %v1829_v15  ;;  %v1317_v57 = vld [vmem:[#allocation5 + $0x30] sm:$0xf0]  ;;  %v1465_v62 = vld [vmem:[#allocation5 + $0x4] sm:$0xf] }
  0x26   :  { %v1874_v60 = vor.u32 %v1469_v55, %v1317_v57  ;;  %v1301_v63 = vld [vmem:[#allocation5 + $0x10] sm:$0xf0] }
  0x27   :  { %505 = vmatpush.bf16.msra.mxu1 %v1834_v17  ;;  %v1879_v2 = vor.u32 %v1465_v62, %v1301_v63 }
  0x28   :  { %519 = vmatpush.bf16.msrb.mxu2 %v1837_v24 }
  0x29   :  { %493 = vmatpush.bf16.msrb.mxu0 %v1832_v16  ;;  %532 = vmatpush.bf16.msrb.mxu3 %v1841_v29 }
  0x2b   :  { %506 = vmatpush.bf16.msra.mxu1 %v1843_v30 }
  0x2c   :  { %520 = vmatpush.bf16.msrb.mxu2 %v1849_v39 }
  0x2d   :  { %494 = vmatpush.bf16.msrb.mxu0 %v1846_v37  ;;  %533 = vmatpush.bf16.msrb.mxu3 %v1853_v44 }
  0x2f   :  { %507 = vmatpush.bf16.msra.mxu1 %v1874_v60 }
  0x30   :  { %521 = vmatpush.bf16.msrb.mxu2 %v1859_v52 }
  0x31   :  { %495 = vmatpush.bf16.msrb.mxu0 %v1856_v50  ;;  %534 = vmatpush.bf16.msrb.mxu3 %v1865_v54 }
  0x32   :  { %1283 = vmatmul.msk.bf16.gmra.mxu0 %vm125_vm0, %v1459_v53  ;;  %1286 = vmatmul.msk.bf16.gmra.mxu1 %vm125_vm0, %v1808_v61  ;;  %v1679_v61 = vmov 0.0|0.0  }
  0x33   :  { %1291 = vmatmul.msk.bf16.gmra.mxu2 %vm125_vm0, %v1459_v53  ;;  %508 = vmatpush.bf16.msra.mxu1 %v1879_v2 }
  0x34   :  { %1295 = vmatmul.msk.bf16.gmra.mxu3 %vm125_vm0, %v1459_v53  ;;  %596 = vmatpush.bf16.msra.mxu2 %v1758_v19 }
  0x35   :  { %570 = vmatpush.bf16.msra.mxu0 %v1764_v23  ;;  %609 = vmatpush.bf16.msra.mxu3 %v1768_v27 }
  0x37   :  { %583 = vmatpush.bf16.msrb.mxu1 %v1756_v18 }
  0x38   :  { %597 = vmatpush.bf16.msra.mxu2 %v1779_v34 }
  0x39   :  { %571 = vmatpush.bf16.msra.mxu0 %v1777_v33  ;;  %610 = vmatpush.bf16.msra.mxu3 %v1782_v40 }
  0x3b   :  { %584 = vmatpush.bf16.msrb.mxu1 %v1773_v31 }
  0x3c   :  { %598 = vmatpush.bf16.msra.mxu2 %v1791_v48 }
  0x3d   :  { %572 = vmatpush.bf16.msra.mxu0 %v1789_v46  ;;  %611 = vmatpush.bf16.msra.mxu3 %v1794_v51 }
  0x3f   :  { %585 = vmatpush.bf16.msrb.mxu1 %v1785_v45 }
  0x40   :  { %599 = vmatpush.bf16.msra.mxu2 %v1803_v59 }
  0x41   :  { %573 = vmatpush.bf16.msra.mxu0 %v1800_v58  ;;  %612 = vmatpush.bf16.msra.mxu3 %v1811_v0 }
  0x42   :  { %1287 = vmatmul.msk.bf16.gmra.mxu1 %vm125_vm0, %v1459_v53  ;;  %496 = vmatmul.bf16.vlgmr.msrb.gmra.mxu0 %v1679_v61 }
  0x43   :  { %1292 = vmatmul.msk.bf16.gmra.mxu2 %vm125_vm0, %v1748_v10  ;;  %586 = vmatpush.bf16.msrb.mxu1 %v1797_v56 }
  0x44   :  { %1296 = vmatmul.msk.bf16.gmra.mxu3 %vm125_vm0, %v1748_v10  ;;  %600 = vmatpush.bf16.msra.mxu2 %v1825_v7 }
  0x45   :  { %574 = vmatpush.bf16.msra.mxu0 %v1815_v1  ;;  %613 = vmatpush.bf16.msra.mxu3 %v1829_v15 }
  0x47   :  { %587 = vmatpush.bf16.msrb.mxu1 %v1834_v17 }
  0x48   :  { %601 = vmatpush.bf16.msra.mxu2 %v1837_v24 }
  0x49   :  { %575 = vmatpush.bf16.msra.mxu0 %v1832_v16  ;;  %614 = vmatpush.bf16.msra.mxu3 %v1841_v29 }
  0x4b   :  { %588 = vmatpush.bf16.msrb.mxu1 %v1843_v30 }
  0x4c   :  { %602 = vmatpush.bf16.msra.mxu2 %v1849_v39 }
  0x4d   :  { %576 = vmatpush.bf16.msra.mxu0 %v1846_v37  ;;  %615 = vmatpush.bf16.msra.mxu3 %v1853_v44 }
  0x4f   :  { %589 = vmatpush.bf16.msrb.mxu1 %v1874_v60 }
  0x50   :  { %603 = vmatpush.bf16.msra.mxu2 %v1859_v52 }
  0x51   :  { %577 = vmatpush.bf16.msra.mxu0 %v1856_v50  ;;  %616 = vmatpush.bf16.msra.mxu3 %v1865_v54 }
  0x52   :  { %1288 = vmatmul.msk.bf16.gmra.mxu1 %vm125_vm0, %v1748_v10  ;;  %v75_v10 = vld [vmem:[%s2254_s3] sm:$0xf] }
  0x53   :  { %522 = vmatmul.bf16.vlgmr.msrb.gmra.mxu2 %v1679_v61  ;;  %590 = vmatpush.bf16.msrb.mxu1 %v1879_v2  ;;  %v1955_v3 = vperm.slane %v75_v10, 0  ;;  %v79_v9 = vperm.slane %v75_v10, 2  ;;  %v1969_v20 = vperm.slane %v75_v10, 3  ;;  %v78_v38 = vperm.slane %v75_v10, 1 }
  0x54   :  { %535 = vmatmul.bf16.vlgmr.msrb.gmra.mxu3 %v1679_v61  ;;  %678 = vmatpush.bf16.msrb.mxu2 %v1758_v19 }
  0x55   :  { %652 = vmatpush.bf16.msrb.mxu0 %v1764_v23  ;;  %691 = vmatpush.bf16.msrb.mxu3 %v1768_v27  ;;  %2259 = vst [vmem:[#allocation14_spill] sm:$0xff] %v1955_v3 }
  0x58   :  { %679 = vmatpush.bf16.msrb.mxu2 %v1779_v34 }
  0x59   :  { %653 = vmatpush.bf16.msrb.mxu0 %v1777_v33  ;;  %692 = vmatpush.bf16.msrb.mxu3 %v1782_v40 }
  0x5c   :  { %680 = vmatpush.bf16.msrb.mxu2 %v1791_v48 }
  0x5d   :  { %654 = vmatpush.bf16.msrb.mxu0 %v1789_v46  ;;  %693 = vmatpush.bf16.msrb.mxu3 %v1794_v51 }
  0x60   :  { %681 = vmatpush.bf16.msrb.mxu2 %v1803_v59 }
  0x61   :  { %655 = vmatpush.bf16.msrb.mxu0 %v1800_v58  ;;  %694 = vmatpush.bf16.msrb.mxu3 %v1811_v0 }
  0x62   :  { %509 = vmatmul.bf16.vlgmr.msra.gmra.mxu1 %v1679_v61 }
  0x63   :  { %665 = vmatpush.bf16.msra.mxu1 %v1756_v18 }
  0x64   :  { %682 = vmatpush.bf16.msrb.mxu2 %v1825_v7 }
  0x65   :  { %656 = vmatpush.bf16.msrb.mxu0 %v1815_v1  ;;  %695 = vmatpush.bf16.msrb.mxu3 %v1829_v15 }
  0x67   :  { %666 = vmatpush.bf16.msra.mxu1 %v1773_v31 }
  0x68   :  { %683 = vmatpush.bf16.msrb.mxu2 %v1837_v24 }
  0x69   :  { %657 = vmatpush.bf16.msrb.mxu0 %v1832_v16  ;;  %696 = vmatpush.bf16.msrb.mxu3 %v1841_v29 }
  0x6b   :  { %667 = vmatpush.bf16.msra.mxu1 %v1785_v45 }
  0x6c   :  { %684 = vmatpush.bf16.msrb.mxu2 %v1849_v39 }
  0x6d   :  { %658 = vmatpush.bf16.msrb.mxu0 %v1846_v37  ;;  %697 = vmatpush.bf16.msrb.mxu3 %v1853_v44 }
  0x6f   :  { %668 = vmatpush.bf16.msra.mxu1 %v1797_v56 }
  0x70   :  { %685 = vmatpush.bf16.msrb.mxu2 %v1859_v52 }
  0x71   :  { %659 = vmatpush.bf16.msrb.mxu0 %v1856_v50  ;;  %698 = vmatpush.bf16.msrb.mxu3 %v1865_v54 }
  0x73   :  { %669 = vmatpush.bf16.msra.mxu1 %v1834_v17 }
  0x77   :  { %670 = vmatpush.bf16.msra.mxu1 %v1843_v30 }
  0x7b   :  { %671 = vmatpush.bf16.msra.mxu1 %v1874_v60 }
  0x7f   :  { %672 = vmatpush.bf16.msra.mxu1 %v1879_v2 }
  0x8f   :  { %v147_v4 = vpop.f32.mrf.mxu0  ;;  %v162_v5 = vpop.f32.mrf.mxu1 }
  0x90   :  { %v1958_v6 = vadd.f32 %v162_v5, %v1955_v3 }
  0x92   :  { %2260 = vst [vmem:[#allocation15_spill] sm:$0xff] %v1958_v6 }
  0x96   :  { %v1960_v8 = vpop.f32.mrf.mxu2 }
  0x97   :  { %v1962_v11 = vpop.f32.mrf.mxu3  ;;  %v149_v12 = vpop.f32.mrf.mxu0 }
  0x98   :  { %v1965_v13 = vadd.f32 %v149_v12, %v1955_v3  ;;  %v1967_v14 = vpop.f32.mrf.mxu1 }
  0x99   :  { %2261 = vst [vmem:[#allocation16_spill] sm:$0xff] %v1967_v14 }
  0x9e   :  { %v207_v21 = vpop.f32.mrf.mxu2 }
  0x9f   :  { %v1971_v22 = vadd.f32 %v207_v21, %v79_v9  ;;  %v236_v25 = vpop.f32.mrf.mxu3  ;;  %v152_v26 = vpop.f32.mrf.mxu0 }
  0xa0   :  { %v1974_v28 = vadd.f32 %v236_v25, %v1969_v20  ;;  %v1977_v32 = vadd.f32 %v152_v26, %v1955_v3  ;;  %v176_v35 = vpop.f32.mrf.mxu1 }
  0xa6   :  { %v210_v36 = vpop.f32.mrf.mxu2 }
  0xa7   :  { %v1979_v41 = vadd.f32 %v210_v36, %v79_v9  ;;  %v239_v42 = vpop.f32.mrf.mxu3  ;;  %v154_v43 = vpop.f32.mrf.mxu0 }
  0xa8   :  { %v1982_v47 = vadd.f32 %v239_v42, %v1969_v20  ;;  %v1985_v49 = vadd.f32 %v154_v43, %v1955_v3  ;;  %v178_v53 = vpop.f32.mrf.mxu1 }
  0xa9   :  { %v1987_v55 = vadd.f32 %v178_v53, %v78_v38 }
  0xae   :  { %v212_v57 = vpop.f32.mrf.mxu2 }
  0xaf   :  { %v1989_v62 = vadd.f32 %v212_v57, %v79_v9  ;;  %v241_v63 = vpop.f32.mrf.mxu3  ;;  %v157_v61 = vpop.f32.mrf.mxu0 }
  0xb0   :  { %v1992_v10 = vadd.f32 %v241_v63, %v1969_v20  ;;  %v1995_v5 = vadd.f32 %v157_v61, %v1955_v3  ;;  %v181_v12 = vpop.f32.mrf.mxu1 }
  0xb1   :  { %2262 = vst [vmem:[#allocation17_spill] sm:$0xff] %v1989_v62  ;;  %v1997_v21 = vadd.f32 %v181_v12, %v78_v38 }
  0xb2   :  { %2263 = vst [vmem:[#allocation18_spill] sm:$0xff] %v1992_v10 }
  0xb3   :  { %2264 = vst [vmem:[#allocation19_spill] sm:$0xff] %v1995_v5 }
  0xb6   :  { %v215_v25 = vpop.f32.mrf.mxu2 }
  0xb7   :  { %v1999_v26 = vadd.f32 %v215_v25, %v79_v9  ;;  %v244_v36 = vpop.f32.mrf.mxu3  ;;  %v159_v42 = vpop.f32.mrf.mxu0 }
  0xb8   :  { %v2002_v43 = vadd.f32 %v244_v36, %v1969_v20  ;;  %v2005_v53 = vadd.f32 %v159_v42, %v1955_v3  ;;  %v183_v57 = vpop.f32.mrf.mxu1  ;;  %v148_v36 = vadd.f32 %v147_v4, %v1955_v3 }
  0xb9   :  { %2265 = vst [vmem:[#allocation20_spill] sm:$0xff] %v1999_v26  ;;  %v2007_v63 = vadd.f32 %v183_v57, %v78_v38 }
  0xba   :  { %2266 = vst [vmem:[#allocation21_spill] sm:$0xff] %v2002_v43 }
  0xbb   :  { %2267 = vst [vmem:[#allocation22_spill] sm:$0xff] %v2005_v53 }
  0xbc   :  { %2268 = vst [vmem:[#allocation23_spill] sm:$0xff] %v2007_v63 }
  0xbe   :  { %v217_v14 = vpop.f32.mrf.mxu2 }
  0xbf   :  { %v2009_v61 = vadd.f32 %v217_v14, %v79_v9  ;;  %v246_v6 = vpop.f32.mrf.mxu3  ;;  %v497_v12 = vpop.f32.mrf.mxu0 }
  0xc0   :  { %v2012_v5 = vadd.f32 %v246_v6, %v1969_v20  ;;  %v186_v25 = vpop.f32.mrf.mxu1 }
  0xc1   :  { %2269 = vst [vmem:[#allocation24_spill] sm:$0xff] %v2009_v61  ;;  %v2014_v26 = vadd.f32 %v186_v25, %v78_v38  ;;  %v540_v61 = vadd.f32 %v497_v12, %v148_v36 }
  0xc2   :  { %2270 = vst [vmem:[#allocation25_spill] sm:$0xff] %v2012_v5 }
  0xc3   :  { %2271 = vst [vmem:[#allocation26_spill] sm:$0xff] %v2014_v26  ;;  %v544_v63 = vmul.f32 0.5, %v540_v61 }
  0xc5   :  { %1515 = vtanh.f32 %v544_v63 }
  0xc6   :  { %v220_v10 = vpop.f32.mrf.mxu2 }
  0xc7   :  { %v2017_v43 = vadd.f32 %v220_v10, %v79_v9  ;;  %v249_v42 = vpop.f32.mrf.mxu3  ;;  %v499_v53 = vpop.f32.mrf.mxu0 }
  0xc8   :  { %v2020_v57 = vadd.f32 %v249_v42, %v1969_v20  ;;  %v188_v14 = vpop.f32.mrf.mxu1  ;;  %v206_v53 = vadd.f32 %v1960_v8, %v79_v9  ;;  %v235_v8 = vadd.f32 %v1962_v11, %v1969_v20 }
  0xc9   :  { %2272 = vst [vmem:[#allocation27_spill] sm:$0xff] %v2017_v43  ;;  %v2022_v62 = vadd.f32 %v188_v14, %v78_v38 }
  0xca   :  { %2273 = vst [vmem:[#allocation28_spill] sm:$0xff] %v2020_v57 }
  0xcb   :  { %2274 = vst [vmem:[#allocation29_spill] sm:$0xff] %v2022_v62  ;;  %v1516_v3 = vpop.eup %1515 }
  0xcc   :  { %v546_v14 = vadd.f32 1.0, %v1516_v3 }
  0xce   :  { %v222_v6 = vpop.f32.mrf.mxu2 }
  0xcf   :  { %v2024_v5 = vadd.f32 %v222_v6, %v79_v9  ;;  %v251_v25 = vpop.f32.mrf.mxu3  ;;  %v547_v6 = vmul.f32 0.5, %v546_v14 }
  0xd0   :  { %v2027_v26 = vadd.f32 %v251_v25, %v1969_v20  ;;  %v191_v4 = vpop.f32.mrf.mxu1  ;;  %v177_v25 = vadd.f32 %v176_v35, %v78_v38 }
  0xd1   :  { %2275 = vst [vmem:[#allocation30_spill] sm:$0xff] %v2024_v5  ;;  %v2029_v10 = vadd.f32 %v191_v4, %v78_v38 }
  0xd2   :  { %2276 = vst [vmem:[#allocation31_spill] sm:$0xff] %v2027_v26 }
  0xd3   :  { %2277 = vst [vmem:[#allocation32_spill] sm:$0xff] %v2029_v10 }
  0xd6   :  { %v523_v42 = vpop.f32.mrf.mxu2 }
  0xd7   :  { %v542_v57 = vadd.f32 %v523_v42, %v206_v53  ;;  %v536_v12 = vpop.f32.mrf.mxu3 }
  0xd8   :  { %v193_v36 = vpop.f32.mrf.mxu1  ;;  %v543_v10 = vadd.f32 %v536_v12, %v235_v8 }
  0xd9   :  { %1517 = vtanh.f32 %v542_v57  ;;  %v2032_v61 = vadd.f32 %v193_v36, %v78_v38 }
  0xda   :  { %v553_v53 = vmul.f32 0.5, %v543_v10 }
  0xdb   :  { %2278 = vst [vmem:[#allocation33_spill] sm:$0xff] %v2032_v61 }
  0xde   :  { %v525_v5 = vpop.f32.mrf.mxu2 }
  0xdf   :  { %v1518_v43 = vpop.eup %1517  ;;  %v538_v26 = vpop.f32.mrf.mxu3 }
  0xe0   :  { %v558_v62 = vmul.f32 %v1518_v43, %v547_v6  ;;  %v510_v63 = vpop.f32.mrf.mxu1 }
  0xe1   :  { %v541_v4 = vadd.f32 %v510_v63, %v177_v25 }
  0xe3   :  { %v548_v9 = vmul.f32 0.5, %v541_v4 }
  0xe5   :  { %1519 = vtanh.f32 %v548_v9 }
  0xe6   :  { %1521 = vtanh.f32 %v553_v53 }
  0xe8   :  { %v512_v42 = vpop.f32.mrf.mxu1 }
  0xeb   :  { %v1520_v57 = vpop.eup %1519 }
  0xec   :  { %v550_v36 = vadd.f32 1.0, %v1520_v57  ;;  %v1522_v5 = vpop.eup %1521 }
  0xed   :  { %v555_v35 = vadd.f32 1.0, %v1522_v5 }
  0xee   :  { %v551_v3 = vmul.f32 0.5, %v550_v36 }
  0xef   :  { %v556_v38 = vmul.f32 0.5, %v555_v35 }
  0xf0   :  { %v557_v14 = vmul.f32 0.0, %v551_v3 }
  0xf2   :  { %v2036_v61 = vadd.f32 %v558_v62, %v557_v14 }
  0xf4   :  { %1523 = vtanh.f32 %v2036_v61 }
  0xfa   :  { %v1524_v26 = vpop.eup %1523 }
  0xfb   :  { %v561_v43 = vmul.f32 %v1524_v26, %v556_v38 }
  0xfd   :  { %v569_v11 = vpack.c.bf16 %v561_v43, %v561_v43 }
  0xff   :  { %578 = vmatmul.bf16.vlgmr.msra.gmra.mxu0 %v569_v11  ;;  %591 = vmatmul.bf16.vlgmr.msrb.gmra.mxu1 %v569_v11 }
 0x100   :  { %604 = vmatmul.bf16.vlgmr.msra.gmra.mxu2 %v569_v11  ;;  %617 = vmatmul.bf16.vlgmr.msra.gmra.mxu3 %v569_v11 }
 0x101   :  { %734 = vmatpush.bf16.msra.mxu0 %v1764_v23  ;;  %747 = vmatpush.bf16.msrb.mxu1 %v1756_v18 }
 0x102   :  { %760 = vmatpush.bf16.msra.mxu2 %v1758_v19  ;;  %773 = vmatpush.bf16.msra.mxu3 %v1768_v27 }
 0x105   :  { %735 = vmatpush.bf16.msra.mxu0 %v1777_v33  ;;  %748 = vmatpush.bf16.msrb.mxu1 %v1773_v31 }
 0x106   :  { %761 = vmatpush.bf16.msra.mxu2 %v1779_v34  ;;  %774 = vmatpush.bf16.msra.mxu3 %v1782_v40 }
 0x109   :  { %736 = vmatpush.bf16.msra.mxu0 %v1789_v46  ;;  %749 = vmatpush.bf16.msrb.mxu1 %v1785_v45 }
 0x10a   :  { %762 = vmatpush.bf16.msra.mxu2 %v1791_v48  ;;  %775 = vmatpush.bf16.msra.mxu3 %v1794_v51 }
 0x10d   :  { %737 = vmatpush.bf16.msra.mxu0 %v1800_v58  ;;  %750 = vmatpush.bf16.msrb.mxu1 %v1797_v56 }
 0x10e   :  { %763 = vmatpush.bf16.msra.mxu2 %v1803_v59  ;;  %776 = vmatpush.bf16.msra.mxu3 %v1811_v0 }
 0x111   :  { %738 = vmatpush.bf16.msra.mxu0 %v1815_v1  ;;  %751 = vmatpush.bf16.msrb.mxu1 %v1834_v17 }
 0x112   :  { %764 = vmatpush.bf16.msra.mxu2 %v1825_v7  ;;  %777 = vmatpush.bf16.msra.mxu3 %v1829_v15 }
 0x115   :  { %739 = vmatpush.bf16.msra.mxu0 %v1832_v16  ;;  %752 = vmatpush.bf16.msrb.mxu1 %v1843_v30 }
 0x116   :  { %765 = vmatpush.bf16.msra.mxu2 %v1837_v24  ;;  %778 = vmatpush.bf16.msra.mxu3 %v1841_v29 }
 0x119   :  { %740 = vmatpush.bf16.msra.mxu0 %v1846_v37  ;;  %753 = vmatpush.bf16.msrb.mxu1 %v1874_v60 }
 0x11a   :  { %766 = vmatpush.bf16.msra.mxu2 %v1849_v39  ;;  %779 = vmatpush.bf16.msra.mxu3 %v1853_v44 }
 0x11d   :  { %741 = vmatpush.bf16.msra.mxu0 %v1856_v50  ;;  %754 = vmatpush.bf16.msrb.mxu1 %v1879_v2 }
 0x11e   :  { %767 = vmatpush.bf16.msra.mxu2 %v1859_v52  ;;  %780 = vmatpush.bf16.msra.mxu3 %v1865_v54 }
 0x17c   :  { %v579_v20 = vpop.f32.mrf.mxu0  ;;  %v592_v62 = vpop.f32.mrf.mxu1 }
 0x17d   :  { %v622_v10 = vadd.f32 %v579_v20, %v1965_v13  ;;  %v623_v12 = vadd.f32 %v592_v62, %v1987_v55 }
 0x17f   :  { %v626_v6 = vmul.f32 0.5, %v622_v10  ;;  %v630_v25 = vmul.f32 0.5, %v623_v12 }
 0x181   :  { %1525 = vtanh.f32 %v626_v6 }
 0x182   :  { %1527 = vtanh.f32 %v630_v25 }
 0x183   :  { %v605_v63 = vpop.f32.mrf.mxu2  ;;  %v618_v4 = vpop.f32.mrf.mxu3 }
 0x184   :  { %v624_v8 = vadd.f32 %v605_v63, %v1971_v22  ;;  %v625_v9 = vadd.f32 %v618_v4, %v1974_v28  ;;  %v581_v53 = vpop.f32.mrf.mxu0  ;;  %v594_v42 = vpop.f32.mrf.mxu1 }
 0x186   :  { %1529 = vtanh.f32 %v624_v8  ;;  %v635_v57 = vmul.f32 0.5, %v625_v9 }
 0x187   :  { %v1526_v36 = vpop.eup %1525 }
 0x188   :  { %v1528_v3 = vpop.eup %1527  ;;  %v628_v14 = vadd.f32 1.0, %v1526_v36  ;;  %1531 = vtanh.f32 %v635_v57 }
 0x189   :  { %v632_v13 = vadd.f32 1.0, %v1528_v3 }
 0x18a   :  { %v629_v55 = vmul.f32 0.5, %v628_v14 }
 0x18b   :  { %v633_v5 = vmul.f32 0.5, %v632_v13  ;;  %v607_v35 = vpop.f32.mrf.mxu2  ;;  %v620_v38 = vpop.f32.mrf.mxu3 }
 0x18c   :  { %v1530_v26 = vpop.eup %1529 }
 0x18d   :  { %v639_v43 = vmul.f32 %v633_v5, %v2036_v61  ;;  %v640_v11 = vmul.f32 %v1530_v26, %v629_v55 }
 0x18e   :  { %v1532_v22 = vpop.eup %1531 }
 0x18f   :  { %v2076_v20 = vadd.f32 %v640_v11, %v639_v43  ;;  %v637_v28 = vadd.f32 1.0, %v1532_v22 }
 0x191   :  { %1533 = vtanh.f32 %v2076_v20  ;;  %v638_v62 = vmul.f32 0.5, %v637_v28 }
 0x197   :  { %v1534_v10 = vpop.eup %1533 }
 0x198   :  { %v643_v12 = vmul.f32 %v1534_v10, %v638_v62 }
 0x19a   :  { %v651_v6 = vpack.c.bf16 %v643_v12, %v643_v12 }
 0x19c   :  { %660 = vmatmul.bf16.vlgmr.msrb.gmra.mxu0 %v651_v6  ;;  %673 = vmatmul.bf16.vlgmr.msra.gmra.mxu1 %v651_v6 }
 0x19d   :  { %686 = vmatmul.bf16.vlgmr.msrb.gmra.mxu2 %v651_v6  ;;  %699 = vmatmul.bf16.vlgmr.msrb.gmra.mxu3 %v651_v6 }
 0x19e   :  { %816 = vmatpush.bf16.msrb.mxu0 %v1764_v23  ;;  %829 = vmatpush.bf16.msra.mxu1 %v1756_v18 }
 0x19f   :  { %842 = vmatpush.bf16.msrb.mxu2 %v1758_v19  ;;  %855 = vmatpush.bf16.msrb.mxu3 %v1768_v27 }
 0x1a2   :  { %817 = vmatpush.bf16.msrb.mxu0 %v1777_v33  ;;  %830 = vmatpush.bf16.msra.mxu1 %v1773_v31 }
 0x1a3   :  { %843 = vmatpush.bf16.msrb.mxu2 %v1779_v34  ;;  %856 = vmatpush.bf16.msrb.mxu3 %v1782_v40 }
 0x1a6   :  { %818 = vmatpush.bf16.msrb.mxu0 %v1789_v46  ;;  %831 = vmatpush.bf16.msra.mxu1 %v1785_v45 }
 0x1a7   :  { %844 = vmatpush.bf16.msrb.mxu2 %v1791_v48  ;;  %857 = vmatpush.bf16.msrb.mxu3 %v1794_v51 }
 0x1aa   :  { %819 = vmatpush.bf16.msrb.mxu0 %v1800_v58  ;;  %832 = vmatpush.bf16.msra.mxu1 %v1797_v56 }
 0x1ab   :  { %845 = vmatpush.bf16.msrb.mxu2 %v1803_v59  ;;  %858 = vmatpush.bf16.msrb.mxu3 %v1811_v0 }
 0x1ae   :  { %820 = vmatpush.bf16.msrb.mxu0 %v1815_v1  ;;  %833 = vmatpush.bf16.msra.mxu1 %v1834_v17 }
 0x1af   :  { %846 = vmatpush.bf16.msrb.mxu2 %v1825_v7  ;;  %859 = vmatpush.bf16.msrb.mxu3 %v1829_v15 }
 0x1b2   :  { %821 = vmatpush.bf16.msrb.mxu0 %v1832_v16  ;;  %834 = vmatpush.bf16.msra.mxu1 %v1843_v30 }
 0x1b3   :  { %847 = vmatpush.bf16.msrb.mxu2 %v1837_v24  ;;  %860 = vmatpush.bf16.msrb.mxu3 %v1841_v29 }
 0x1b6   :  { %822 = vmatpush.bf16.msrb.mxu0 %v1846_v37  ;;  %835 = vmatpush.bf16.msra.mxu1 %v1874_v60 }
 0x1b7   :  { %848 = vmatpush.bf16.msrb.mxu2 %v1849_v39  ;;  %861 = vmatpush.bf16.msrb.mxu3 %v1853_v44 }
 0x1ba   :  { %823 = vmatpush.bf16.msrb.mxu0 %v1856_v50  ;;  %836 = vmatpush.bf16.msra.mxu1 %v1879_v2 }
 0x1bb   :  { %849 = vmatpush.bf16.msrb.mxu2 %v1859_v52  ;;  %862 = vmatpush.bf16.msrb.mxu3 %v1865_v54 }
 0x219   :  { %v661_v61 = vpop.f32.mrf.mxu0  ;;  %v674_v25 = vpop.f32.mrf.mxu1 }
 0x21a   :  { %v704_v63 = vadd.f32 %v661_v61, %v1977_v32  ;;  %v705_v4 = vadd.f32 %v674_v25, %v1997_v21 }
 0x21c   :  { %v708_v8 = vmul.f32 0.5, %v704_v63  ;;  %v712_v9 = vmul.f32 0.5, %v705_v4  ;;  %v2279_v4 = vld [vmem:[#allocation23_spill] sm:$0xff] }
 0x21e   :  { %1535 = vtanh.f32 %v708_v8 }
 0x21f   :  { %1537 = vtanh.f32 %v712_v9 }
 0x220   :  { %v687_v53 = vpop.f32.mrf.mxu2  ;;  %v700_v42 = vpop.f32.mrf.mxu3 }
 0x221   :  { %v706_v57 = vadd.f32 %v687_v53, %v1979_v41  ;;  %v707_v36 = vadd.f32 %v700_v42, %v1982_v47  ;;  %v663_v3 = vpop.f32.mrf.mxu0  ;;  %v676_v14 = vpop.f32.mrf.mxu1 }
 0x222   :  { %v2281_v14 = vld [vmem:[#allocation18_spill] sm:$0xff] }
 0x223   :  { %1539 = vtanh.f32 %v706_v57  ;;  %v717_v13 = vmul.f32 0.5, %v707_v36  ;;  %v2280_v36 = vld [vmem:[#allocation17_spill] sm:$0xff] }
 0x224   :  { %v1536_v55 = vpop.eup %1535 }
 0x225   :  { %v1538_v5 = vpop.eup %1537  ;;  %v710_v35 = vadd.f32 1.0, %v1536_v55  ;;  %1541 = vtanh.f32 %v717_v13 }
 0x226   :  { %v714_v32 = vadd.f32 1.0, %v1538_v5 }
 0x227   :  { %v711_v21 = vmul.f32 0.5, %v710_v35 }
 0x228   :  { %v715_v38 = vmul.f32 0.5, %v714_v32  ;;  %v689_v26 = vpop.f32.mrf.mxu2  ;;  %v702_v43 = vpop.f32.mrf.mxu3 }
 0x229   :  { %v1540_v11 = vpop.eup %1539 }
 0x22a   :  { %v721_v22 = vmul.f32 %v715_v38, %v2076_v20  ;;  %v722_v28 = vmul.f32 %v1540_v11, %v711_v21 }
 0x22b   :  { %v1542_v41 = vpop.eup %1541 }
 0x22c   :  { %v2116_v62 = vadd.f32 %v722_v28, %v721_v22  ;;  %v719_v47 = vadd.f32 1.0, %v1542_v41 }
 0x22e   :  { %1543 = vtanh.f32 %v2116_v62  ;;  %v720_v10 = vmul.f32 0.5, %v719_v47 }
 0x234   :  { %v1544_v12 = vpop.eup %1543 }
 0x235   :  { %v725_v6 = vmul.f32 %v1544_v12, %v720_v10 }
 0x237   :  { %v733_v61 = vpack.c.bf16 %v725_v6, %v725_v6 }
 0x239   :  { %742 = vmatmul.bf16.vlgmr.msra.gmra.mxu0 %v733_v61  ;;  %755 = vmatmul.bf16.vlgmr.msrb.gmra.mxu1 %v733_v61 }
 0x23a   :  { %768 = vmatmul.bf16.vlgmr.msra.gmra.mxu2 %v733_v61  ;;  %781 = vmatmul.bf16.vlgmr.msra.gmra.mxu3 %v733_v61 }
 0x23b   :  { %898 = vmatpush.bf16.msra.mxu0 %v1764_v23  ;;  %911 = vmatpush.bf16.msrb.mxu1 %v1756_v18 }
 0x23c   :  { %924 = vmatpush.bf16.msra.mxu2 %v1758_v19  ;;  %937 = vmatpush.bf16.msra.mxu3 %v1768_v27 }
 0x23f   :  { %899 = vmatpush.bf16.msra.mxu0 %v1777_v33  ;;  %912 = vmatpush.bf16.msrb.mxu1 %v1773_v31 }
 0x240   :  { %925 = vmatpush.bf16.msra.mxu2 %v1779_v34  ;;  %938 = vmatpush.bf16.msra.mxu3 %v1782_v40 }
 0x243   :  { %900 = vmatpush.bf16.msra.mxu0 %v1789_v46  ;;  %913 = vmatpush.bf16.msrb.mxu1 %v1785_v45 }
 0x244   :  { %926 = vmatpush.bf16.msra.mxu2 %v1791_v48  ;;  %939 = vmatpush.bf16.msra.mxu3 %v1794_v51 }
 0x247   :  { %901 = vmatpush.bf16.msra.mxu0 %v1800_v58  ;;  %914 = vmatpush.bf16.msrb.mxu1 %v1797_v56 }
 0x248   :  { %927 = vmatpush.bf16.msra.mxu2 %v1803_v59  ;;  %940 = vmatpush.bf16.msra.mxu3 %v1811_v0 }
 0x24b   :  { %902 = vmatpush.bf16.msra.mxu0 %v1815_v1  ;;  %915 = vmatpush.bf16.msrb.mxu1 %v1834_v17 }
 0x24c   :  { %928 = vmatpush.bf16.msra.mxu2 %v1825_v7  ;;  %941 = vmatpush.bf16.msra.mxu3 %v1829_v15 }
 0x24f   :  { %903 = vmatpush.bf16.msra.mxu0 %v1832_v16  ;;  %916 = vmatpush.bf16.msrb.mxu1 %v1843_v30 }
 0x250   :  { %929 = vmatpush.bf16.msra.mxu2 %v1837_v24  ;;  %942 = vmatpush.bf16.msra.mxu3 %v1841_v29 }
 0x253   :  { %904 = vmatpush.bf16.msra.mxu0 %v1846_v37  ;;  %917 = vmatpush.bf16.msrb.mxu1 %v1874_v60 }
 0x254   :  { %930 = vmatpush.bf16.msra.mxu2 %v1849_v39  ;;  %943 = vmatpush.bf16.msra.mxu3 %v1853_v44 }
 0x257   :  { %905 = vmatpush.bf16.msra.mxu0 %v1856_v50  ;;  %918 = vmatpush.bf16.msrb.mxu1 %v1879_v2 }
 0x258   :  { %931 = vmatpush.bf16.msra.mxu2 %v1859_v52  ;;  %944 = vmatpush.bf16.msra.mxu3 %v1865_v54 }
 0x2b6   :  { %v743_v20 = vpop.f32.mrf.mxu0  ;;  %v756_v25 = vpop.f32.mrf.mxu1 }
 0x2b7   :  { %v786_v63 = vadd.f32 %v743_v20, %v1985_v49  ;;  %v787_v8 = vadd.f32 %v756_v25, %v2279_v4 }
 0x2b9   :  { %v790_v9 = vmul.f32 0.5, %v786_v63  ;;  %v794_v53 = vmul.f32 0.5, %v787_v8  ;;  %v2282_v8 = vld [vmem:[#allocation19_spill] sm:$0xff] }
 0x2bb   :  { %1545 = vtanh.f32 %v790_v9 }
 0x2bc   :  { %1547 = vtanh.f32 %v794_v53  ;;  %v2283_v53 = vld [vmem:[#allocation26_spill] sm:$0xff] }
 0x2bd   :  { %v769_v42 = vpop.f32.mrf.mxu2  ;;  %v782_v57 = vpop.f32.mrf.mxu3 }
 0x2be   :  { %v788_v3 = vadd.f32 %v769_v42, %v2280_v36  ;;  %v789_v13 = vadd.f32 %v782_v57, %v2281_v14  ;;  %v745_v55 = vpop.f32.mrf.mxu0  ;;  %v758_v5 = vpop.f32.mrf.mxu1 }
 0x2bf   :  { %v2285_v5 = vld [vmem:[#allocation21_spill] sm:$0xff] }
 0x2c0   :  { %1549 = vtanh.f32 %v788_v3  ;;  %v799_v35 = vmul.f32 0.5, %v789_v13  ;;  %v2284_v13 = vld [vmem:[#allocation20_spill] sm:$0xff] }
 0x2c1   :  { %v1546_v32 = vpop.eup %1545 }
 0x2c2   :  { %v1548_v21 = vpop.eup %1547  ;;  %v792_v38 = vadd.f32 1.0, %v1546_v32  ;;  %1551 = vtanh.f32 %v799_v35 }
 0x2c3   :  { %v796_v49 = vadd.f32 1.0, %v1548_v21 }
 0x2c4   :  { %v793_v26 = vmul.f32 0.5, %v792_v38 }
 0x2c5   :  { %v797_v43 = vmul.f32 0.5, %v796_v49  ;;  %v771_v11 = vpop.f32.mrf.mxu2  ;;  %v784_v22 = vpop.f32.mrf.mxu3 }
 0x2c6   :  { %v1550_v28 = vpop.eup %1549 }
 0x2c7   :  { %v803_v41 = vmul.f32 %v797_v43, %v2116_v62  ;;  %v804_v47 = vmul.f32 %v1550_v28, %v793_v26 }
 0x2c8   :  { %v1552_v10 = vpop.eup %1551 }
 0x2c9   :  { %v2156_v12 = vadd.f32 %v804_v47, %v803_v41  ;;  %v801_v6 = vadd.f32 1.0, %v1552_v10 }
 0x2cb   :  { %1553 = vtanh.f32 %v2156_v12  ;;  %v802_v61 = vmul.f32 0.5, %v801_v6 }
 0x2d1   :  { %v1554_v20 = vpop.eup %1553 }
 0x2d2   :  { %v807_v25 = vmul.f32 %v1554_v20, %v802_v61 }
 0x2d4   :  { %v815_v63 = vpack.c.bf16 %v807_v25, %v807_v25 }
 0x2d6   :  { %824 = vmatmul.bf16.vlgmr.msrb.gmra.mxu0 %v815_v63  ;;  %837 = vmatmul.bf16.vlgmr.msra.gmra.mxu1 %v815_v63 }
 0x2d7   :  { %850 = vmatmul.bf16.vlgmr.msrb.gmra.mxu2 %v815_v63  ;;  %863 = vmatmul.bf16.vlgmr.msrb.gmra.mxu3 %v815_v63 }
 0x2d8   :  { %980 = vmatpush.bf16.msrb.mxu0 %v1764_v23  ;;  %993 = vmatpush.bf16.msra.mxu1 %v1756_v18 }
 0x2d9   :  { %1006 = vmatpush.bf16.msrb.mxu2 %v1758_v19  ;;  %1019 = vmatpush.bf16.msrb.mxu3 %v1768_v27 }
 0x2dc   :  { %981 = vmatpush.bf16.msrb.mxu0 %v1777_v33  ;;  %994 = vmatpush.bf16.msra.mxu1 %v1773_v31 }
 0x2dd   :  { %1007 = vmatpush.bf16.msrb.mxu2 %v1779_v34  ;;  %1020 = vmatpush.bf16.msrb.mxu3 %v1782_v40 }
 0x2e0   :  { %982 = vmatpush.bf16.msrb.mxu0 %v1789_v46  ;;  %995 = vmatpush.bf16.msra.mxu1 %v1785_v45 }
 0x2e1   :  { %1008 = vmatpush.bf16.msrb.mxu2 %v1791_v48  ;;  %1021 = vmatpush.bf16.msrb.mxu3 %v1794_v51 }
 0x2e4   :  { %983 = vmatpush.bf16.msrb.mxu0 %v1800_v58  ;;  %996 = vmatpush.bf16.msra.mxu1 %v1797_v56 }
 0x2e5   :  { %1009 = vmatpush.bf16.msrb.mxu2 %v1803_v59  ;;  %1022 = vmatpush.bf16.msrb.mxu3 %v1811_v0 }
 0x2e8   :  { %984 = vmatpush.bf16.msrb.mxu0 %v1815_v1  ;;  %997 = vmatpush.bf16.msra.mxu1 %v1834_v17 }
 0x2e9   :  { %1010 = vmatpush.bf16.msrb.mxu2 %v1825_v7  ;;  %1023 = vmatpush.bf16.msrb.mxu3 %v1829_v15 }
 0x2ec   :  { %985 = vmatpush.bf16.msrb.mxu0 %v1832_v16  ;;  %998 = vmatpush.bf16.msra.mxu1 %v1843_v30 }
 0x2ed   :  { %1011 = vmatpush.bf16.msrb.mxu2 %v1837_v24  ;;  %1024 = vmatpush.bf16.msrb.mxu3 %v1841_v29 }
 0x2f0   :  { %986 = vmatpush.bf16.msrb.mxu0 %v1846_v37  ;;  %999 = vmatpush.bf16.msra.mxu1 %v1874_v60 }
 0x2f1   :  { %1012 = vmatpush.bf16.msrb.mxu2 %v1849_v39  ;;  %1025 = vmatpush.bf16.msrb.mxu3 %v1853_v44 }
 0x2f4   :  { %987 = vmatpush.bf16.msrb.mxu0 %v1856_v50  ;;  %1000 = vmatpush.bf16.msra.mxu1 %v1879_v2 }
 0x2f5   :  { %1013 = vmatpush.bf16.msrb.mxu2 %v1859_v52  ;;  %1026 = vmatpush.bf16.msrb.mxu3 %v1865_v54 }
 0x353   :  { %v825_v62 = vpop.f32.mrf.mxu0  ;;  %v838_v4 = vpop.f32.mrf.mxu1 }
 0x354   :  { %v868_v9 = vadd.f32 %v825_v62, %v2282_v8  ;;  %v869_v42 = vadd.f32 %v838_v4, %v2283_v53 }
 0x356   :  { %v872_v57 = vmul.f32 0.5, %v868_v9  ;;  %v876_v36 = vmul.f32 0.5, %v869_v42 }
 0x358   :  { %1555 = vtanh.f32 %v872_v57 }
 0x359   :  { %1557 = vtanh.f32 %v876_v36 }
 0x35a   :  { %v851_v3 = vpop.f32.mrf.mxu2  ;;  %v864_v14 = vpop.f32.mrf.mxu3 }
 0x35b   :  { %v870_v55 = vadd.f32 %v851_v3, %v2284_v13  ;;  %v871_v35 = vadd.f32 %v864_v14, %v2285_v5  ;;  %v827_v32 = vpop.f32.mrf.mxu0  ;;  %v840_v21 = vpop.f32.mrf.mxu1  ;;  %v2290_v3 = vld [vmem:[#allocation15_spill] sm:$0xff]  ;;  %v2291_v13 = vld [vmem:[#allocation32_spill] sm:$0xff] }
 0x35d   :  { %1559 = vtanh.f32 %v870_v55  ;;  %v881_v38 = vmul.f32 0.5, %v871_v35 }
 0x35e   :  { %v1556_v49 = vpop.eup %1555 }
 0x35f   :  { %v1558_v26 = vpop.eup %1557  ;;  %v874_v43 = vadd.f32 1.0, %v1556_v49  ;;  %1561 = vtanh.f32 %v881_v38  ;;  %v2292_v38 = vld [vmem:[#allocation27_spill] sm:$0xff] }
 0x360   :  { %v878_v11 = vadd.f32 1.0, %v1558_v26  ;;  %v2293_v26 = vld [vmem:[#allocation28_spill] sm:$0xff] }
 0x361   :  { %v875_v22 = vmul.f32 0.5, %v874_v43 }
 0x362   :  { %v879_v28 = vmul.f32 0.5, %v878_v11  ;;  %v853_v41 = vpop.f32.mrf.mxu2  ;;  %v866_v47 = vpop.f32.mrf.mxu3 }
 0x363   :  { %v1560_v10 = vpop.eup %1559 }
 0x364   :  { %v885_v6 = vmul.f32 %v879_v28, %v2156_v12  ;;  %v886_v61 = vmul.f32 %v1560_v10, %v875_v22 }
 0x365   :  { %v1562_v20 = vpop.eup %1561 }
 0x366   :  { %v2196_v25 = vadd.f32 %v886_v61, %v885_v6  ;;  %v883_v63 = vadd.f32 1.0, %v1562_v20 }
 0x368   :  { %1563 = vtanh.f32 %v2196_v25  ;;  %v884_v62 = vmul.f32 0.5, %v883_v63 }
 0x36e   :  { %v1564_v4 = vpop.eup %1563 }
 0x36f   :  { %v889_v8 = vmul.f32 %v1564_v4, %v884_v62 }
 0x371   :  { %v897_v9 = vpack.c.bf16 %v889_v8, %v889_v8 }
 0x373   :  { %906 = vmatmul.bf16.vlgmr.msra.gmra.mxu0 %v897_v9  ;;  %919 = vmatmul.bf16.vlgmr.msrb.gmra.mxu1 %v897_v9 }
 0x374   :  { %932 = vmatmul.bf16.vlgmr.msra.gmra.mxu2 %v897_v9  ;;  %945 = vmatmul.bf16.vlgmr.msra.gmra.mxu3 %v897_v9 }
 0x375   :  { %1062 = vmatpush.bf16.msra.mxu0 %v1764_v23  ;;  %1075 = vmatpush.bf16.msrb.mxu1 %v1756_v18  ;;  %v2286_v23 = vld [vmem:[#allocation22_spill] sm:$0xff] }
 0x376   :  { %1088 = vmatpush.bf16.msra.mxu2 %v1758_v19  ;;  %1101 = vmatpush.bf16.msra.mxu3 %v1768_v27 }
 0x379   :  { %1063 = vmatpush.bf16.msra.mxu0 %v1777_v33  ;;  %1076 = vmatpush.bf16.msrb.mxu1 %v1773_v31  ;;  %v2287_v31 = vld [vmem:[#allocation29_spill] sm:$0xff] }
 0x37a   :  { %1089 = vmatpush.bf16.msra.mxu2 %v1779_v34  ;;  %1102 = vmatpush.bf16.msra.mxu3 %v1782_v40 }
 0x37d   :  { %1064 = vmatpush.bf16.msra.mxu0 %v1789_v46  ;;  %1077 = vmatpush.bf16.msrb.mxu1 %v1785_v45 }
 0x37e   :  { %1090 = vmatpush.bf16.msra.mxu2 %v1791_v48  ;;  %1103 = vmatpush.bf16.msra.mxu3 %v1794_v51  ;;  %v2288_v48 = vld [vmem:[#allocation24_spill] sm:$0xff] }
 0x381   :  { %1065 = vmatpush.bf16.msra.mxu0 %v1800_v58  ;;  %1078 = vmatpush.bf16.msrb.mxu1 %v1797_v56  ;;  %v2289_v56 = vld [vmem:[#allocation25_spill] sm:$0xff] }
 0x382   :  { %1091 = vmatpush.bf16.msra.mxu2 %v1803_v59  ;;  %1104 = vmatpush.bf16.msra.mxu3 %v1811_v0 }
 0x385   :  { %1066 = vmatpush.bf16.msra.mxu0 %v1815_v1  ;;  %1079 = vmatpush.bf16.msrb.mxu1 %v1834_v17 }
 0x386   :  { %1092 = vmatpush.bf16.msra.mxu2 %v1825_v7  ;;  %1105 = vmatpush.bf16.msra.mxu3 %v1829_v15 }
 0x389   :  { %1067 = vmatpush.bf16.msra.mxu0 %v1832_v16  ;;  %1080 = vmatpush.bf16.msrb.mxu1 %v1843_v30 }
 0x38a   :  { %1093 = vmatpush.bf16.msra.mxu2 %v1837_v24  ;;  %1106 = vmatpush.bf16.msra.mxu3 %v1841_v29 }
 0x38d   :  { %1068 = vmatpush.bf16.msra.mxu0 %v1846_v37  ;;  %1081 = vmatpush.bf16.msrb.mxu1 %v1874_v60 }
 0x38e   :  { %1094 = vmatpush.bf16.msra.mxu2 %v1849_v39  ;;  %1107 = vmatpush.bf16.msra.mxu3 %v1853_v44 }
 0x391   :  { %1069 = vmatpush.bf16.msra.mxu0 %v1856_v50  ;;  %1082 = vmatpush.bf16.msrb.mxu1 %v1879_v2 }
 0x392   :  { %1095 = vmatpush.bf16.msra.mxu2 %v1859_v52  ;;  %1108 = vmatpush.bf16.msra.mxu3 %v1865_v54 }
 0x3f0   :  { %v907_v18 = vpop.f32.mrf.mxu0  ;;  %v920_v19 = vpop.f32.mrf.mxu1 }
 0x3f1   :  { %v950_v27 = vadd.f32 %v907_v18, %v2286_v23  ;;  %v951_v33 = vadd.f32 %v920_v19, %v2287_v31 }
 0x3f3   :  { %v954_v34 = vmul.f32 0.5, %v950_v27  ;;  %v958_v40 = vmul.f32 0.5, %v951_v33 }
 0x3f5   :  { %1565 = vtanh.f32 %v954_v34  ;;  %v1504_v34 = vld [vmem:[#allocation8 + $0x38] sm:$0xff] }
 0x3f6   :  { %1567 = vtanh.f32 %v958_v40  ;;  %v1503_v40 = vld [vmem:[#allocation8 + $0x30] sm:$0xff] }
 0x3f7   :  { %v933_v45 = vpop.f32.mrf.mxu2  ;;  %v946_v46 = vpop.f32.mrf.mxu3 }
 0x3f8   :  { %v952_v51 = vadd.f32 %v933_v45, %v2288_v48  ;;  %v953_v58 = vadd.f32 %v946_v46, %v2289_v56  ;;  %v909_v59 = vpop.f32.mrf.mxu0  ;;  %v922_v0 = vpop.f32.mrf.mxu1  ;;  %v1502_v45 = vld [vmem:[#allocation8 + $0x28] sm:$0xff]  ;;  %v1501_v46 = vld [vmem:[#allocation8 + $0x20] sm:$0xff]  ;;  %v1500_v48 = vld [vmem:[#allocation8 + $0x18] sm:$0xff] }
 0x3f9   :  { %v1498_v56 = vld [vmem:[#allocation8 + $0x8] sm:$0xff]  ;;  %v2295_v0 = vld [vmem:[#allocation16_spill] sm:$0xff] }
 0x3fa   :  { %1569 = vtanh.f32 %v952_v51  ;;  %v963_v1 = vmul.f32 0.5, %v953_v58  ;;  %v1499_v51 = vld [vmem:[#allocation8 + $0x10] sm:$0xff]  ;;  %v1497_v58 = vld [vmem:[#allocation8] sm:$0xff]  ;;  %v2294_v59 = vld [vmem:[#allocation14_spill] sm:$0xff] }
 0x3fb   :  { %v1566_v7 = vpop.eup %1565 }
 0x3fc   :  { %v1568_v15 = vpop.eup %1567  ;;  %v956_v16 = vadd.f32 1.0, %v1566_v7  ;;  %1571 = vtanh.f32 %v963_v1  ;;  %v165_v1 = vadd.f32 %v2295_v0, %v2294_v59 }
 0x3fd   :  { %v960_v17 = vadd.f32 1.0, %v1568_v15 }
 0x3fe   :  { %v957_v24 = vmul.f32 0.5, %v956_v16 }
 0x3ff   :  { %v961_v29 = vmul.f32 0.5, %v960_v17  ;;  %v935_v30 = vpop.f32.mrf.mxu2  ;;  %v948_v37 = vpop.f32.mrf.mxu3  ;;  %v2296_v17 = vld [vmem:[#allocation33_spill] sm:$0xff] }
 0x400   :  { %v1570_v39 = vpop.eup %1569 }
 0x401   :  { %v967_v44 = vmul.f32 %v961_v29, %v2196_v25  ;;  %v968_v50 = vmul.f32 %v1570_v39, %v957_v24 }
 0x402   :  { %v1572_v52 = vpop.eup %1571 }
 0x403   :  { %v969_v54 = vadd.f32 %v968_v50, %v967_v44  ;;  %v965_v60 = vadd.f32 1.0, %v1572_v52  ;;  %v2297_v44 = vld [vmem:[#allocation30_spill] sm:$0xff]  ;;  %v2298_v52 = vld [vmem:[#allocation31_spill] sm:$0xff] }
 0x405   :  { %1573 = vtanh.f32 %v969_v54  ;;  %v966_v2 = vmul.f32 0.5, %v965_v60 }
 0x40b   :  { %v1574_v12 = vpop.eup %1573 }
 0x40c   :  { %v971_v53 = vmul.f32 %v1574_v12, %v966_v2 }
 0x40e   :  { %v979_v42 = vpack.c.bf16 %v971_v53, %v971_v53 }
 0x410   :  { %988 = vmatmul.bf16.vlgmr.msrb.gmra.mxu0 %v979_v42  ;;  %1001 = vmatmul.bf16.vlgmr.msra.gmra.mxu1 %v979_v42 }
 0x411   :  { %1014 = vmatmul.bf16.vlgmr.msrb.gmra.mxu2 %v979_v42  ;;  %1027 = vmatmul.bf16.vlgmr.msrb.gmra.mxu3 %v979_v42 }
 0x412   :  { %1210 = vmatpush.bf16.msrb.mxu0 %v1504_v34 }
 0x416   :  { %1211 = vmatpush.bf16.msrb.mxu0 %v1503_v40 }
 0x41a   :  { %1212 = vmatpush.bf16.msrb.mxu0 %v1502_v45 }
 0x41e   :  { %1213 = vmatpush.bf16.msrb.mxu0 %v1501_v46 }
 0x422   :  { %1214 = vmatpush.bf16.msrb.mxu0 %v1500_v48 }
 0x426   :  { %1215 = vmatpush.bf16.msrb.mxu0 %v1499_v51 }
 0x42a   :  { %1216 = vmatpush.bf16.msrb.mxu0 %v1498_v56 }
 0x42e   :  { %1217 = vmatpush.bf16.msrb.mxu0 %v1497_v58 }
 0x48d   :  { %v989_v57 = vpop.f32.mrf.mxu0  ;;  %v1002_v36 = vpop.f32.mrf.mxu1 }
 0x48e   :  { %v1032_v14 = vadd.f32 %v989_v57, %v2290_v3  ;;  %v1033_v55 = vadd.f32 %v1002_v36, %v2291_v13 }
 0x490   :  { %v1036_v5 = vmul.f32 0.5, %v1032_v14  ;;  %v1040_v35 = vmul.f32 0.5, %v1033_v55 }
 0x492   :  { %1575 = vtanh.f32 %v1036_v5 }
 0x493   :  { %1577 = vtanh.f32 %v1040_v35 }
 0x494   :  { %v1015_v32 = vpop.f32.mrf.mxu2  ;;  %v1028_v21 = vpop.f32.mrf.mxu3 }
 0x495   :  { %v1034_v49 = vadd.f32 %v1015_v32, %v2292_v38  ;;  %v1035_v43 = vadd.f32 %v1028_v21, %v2293_v26  ;;  %v991_v11 = vpop.f32.mrf.mxu0  ;;  %v1004_v22 = vpop.f32.mrf.mxu1 }
 0x497   :  { %1579 = vtanh.f32 %v1034_v49  ;;  %v1045_v28 = vmul.f32 0.5, %v1035_v43 }
 0x498   :  { %v1576_v41 = vpop.eup %1575 }
 0x499   :  { %v1578_v47 = vpop.eup %1577  ;;  %v1038_v10 = vadd.f32 1.0, %v1576_v41  ;;  %1581 = vtanh.f32 %v1045_v28  ;;  %v1514_v28 = vld [vmem:[%s2256_s5] ss:$0 sm:$0xff] }
 0x49a   :  { %v1042_v6 = vadd.f32 1.0, %v1578_v47 }
 0x49b   :  { %v1039_v61 = vmul.f32 0.5, %v1038_v10 }
 0x49c   :  { %v1043_v20 = vmul.f32 0.5, %v1042_v6  ;;  %v1017_v25 = vpop.f32.mrf.mxu2  ;;  %v1030_v63 = vpop.f32.mrf.mxu3 }
 0x49d   :  { %v1580_v62 = vpop.eup %1579 }
 0x49e   :  { %v1049_v4 = vmul.f32 %v1043_v20, %v969_v54  ;;  %v1050_v8 = vmul.f32 %v1580_v62, %v1039_v61 }
 0x49f   :  { %v1582_v9 = vpop.eup %1581 }
 0x4a0   :  { %v1051_v18 = vadd.f32 %v1050_v8, %v1049_v4  ;;  %v1047_v19 = vadd.f32 1.0, %v1582_v9 }
 0x4a2   :  { %1583 = vtanh.f32 %v1051_v18  ;;  %v1048_v23 = vmul.f32 0.5, %v1047_v19 }
 0x4a8   :  { %v1584_v27 = vpop.eup %1583 }
 0x4a9   :  { %v1053_v31 = vmul.f32 %v1584_v27, %v1048_v23 }
 0x4ab   :  { %v1061_v33 = vpack.c.bf16 %v1053_v31, %v1053_v31 }
 0x4ad   :  { %1070 = vmatmul.bf16.vlgmr.msra.gmra.mxu0 %v1061_v33  ;;  %1083 = vmatmul.bf16.vlgmr.msrb.gmra.mxu1 %v1061_v33 }
 0x4ae   :  { %1096 = vmatmul.bf16.vlgmr.msra.gmra.mxu2 %v1061_v33  ;;  %1109 = vmatmul.bf16.vlgmr.msra.gmra.mxu3 %v1061_v33 }
 0x52a   :  { %v1071_v7 = vpop.f32.mrf.mxu0  ;;  %v1084_v15 = vpop.f32.mrf.mxu1 }
 0x52b   :  { %v1114_v16 = vadd.f32 %v1071_v7, %v165_v1  ;;  %v1115_v24 = vadd.f32 %v1084_v15, %v2296_v17 }
 0x52d   :  { %v1118_v29 = vmul.f32 0.5, %v1114_v16  ;;  %v1122_v30 = vmul.f32 0.5, %v1115_v24 }
 0x52f   :  { %1585 = vtanh.f32 %v1118_v29 }
 0x530   :  { %1587 = vtanh.f32 %v1122_v30 }
 0x531   :  { %v1097_v37 = vpop.f32.mrf.mxu2  ;;  %v1110_v39 = vpop.f32.mrf.mxu3 }
 0x532   :  { %v1116_v50 = vadd.f32 %v1097_v37, %v2297_v44  ;;  %v1117_v54 = vadd.f32 %v1110_v39, %v2298_v52  ;;  %v1073_v60 = vpop.f32.mrf.mxu0  ;;  %v1086_v2 = vpop.f32.mrf.mxu1 }
 0x534   :  { %1589 = vtanh.f32 %v1116_v50  ;;  %v1127_v12 = vmul.f32 0.5, %v1117_v54 }
 0x535   :  { %v1586_v53 = vpop.eup %1585 }
 0x536   :  { %v1588_v42 = vpop.eup %1587  ;;  %v1120_v57 = vadd.f32 1.0, %v1586_v53  ;;  %1591 = vtanh.f32 %v1127_v12 }
 0x537   :  { %v1124_v36 = vadd.f32 1.0, %v1588_v42 }
 0x538   :  { %v1121_v3 = vmul.f32 0.5, %v1120_v57 }
 0x539   :  { %v1125_v14 = vmul.f32 0.5, %v1124_v36  ;;  %v1099_v13 = vpop.f32.mrf.mxu2  ;;  %v1112_v55 = vpop.f32.mrf.mxu3 }
 0x53a   :  { %v1590_v5 = vpop.eup %1589 }
 0x53b   :  { %v1131_v35 = vmul.f32 %v1125_v14, %v1051_v18  ;;  %v1132_v32 = vmul.f32 %v1590_v5, %v1121_v3 }
 0x53c   :  { %v1592_v21 = vpop.eup %1591 }
 0x53d   :  { %v1133_v38 = vadd.f32 %v1132_v32, %v1131_v35  ;;  %v1129_v49 = vadd.f32 1.0, %v1592_v21 }
 0x53f   :  { %1593 = vtanh.f32 %v1133_v38  ;;  %v1130_v26 = vmul.f32 0.5, %v1129_v49 }
 0x545   :  { %v1594_v43 = vpop.eup %1593 }
 0x546   :  { %v1135_v11 = vmul.f32 %v1594_v43, %v1130_v26 }
 0x548   :  { %v1141_v22 = vpack.c.bf16 %v1135_v11, %v1135_v11 }
 0x54a   :  { %1218 = vmatmul.bf16.vlgmr.msrb.gmra.mxu0 %v1141_v22 }
 0x5c7   :  { %v1219_v41 = vpop.f32.mrf.mxu0 }
 0x5c8   :  { %v1220_v47 = vadd.f32 %v1514_v28, %v1219_v41 }
 0x5ca   :  { %1223 = vst [vmem:[#allocation10] sm:$0xff] %v1220_v47 }
 0x5cb   :  { %1234 = dma.vmem_to_hbm [thread:$0]  %s1230_s2, 128, %s1232_s4, [#allocation7]  }
 0x5cf   :  { %v1221_v10 = vpop.f32.mrf.mxu0 }
 0x5d0   :  { %1671 = dma.done.wait [#allocation7], 128  }
 0x5d1   :  { %1672 = vsyncadd [#allocation7], 4294967168 }
 0x5d2   :  { %1239 = vsyncpa [#allocation6], 1 }
 0x5d3   :  { %1240 = vsyncpa [#allocation9], 1 }
 0x5d4   :  { %1241 = vsyncpa [#allocation7], 1 }

</bundles_post_ra>
